<compile_context>
chip_gen: v5e
topology: v5e:2x2
jax: 0.10.0
libtpu: 0.0.40
codegen_flags: <defaults>
</compile_context>

<pallas_src>
import functools

import jax
import jax.numpy as jnp
from jax import lax
from jax.experimental import pallas as pl
from jax.experimental.pallas import tpu as pltpu


def _pick_row_tile(h_out, w_out, max_rows=512):
    """Largest divisor TH of h_out with TH * w_out <= max_rows (matmul row budget)."""
    best = 1
    for th in range(1, h_out + 1):
        if h_out % th == 0 and th * w_out <= max_rows:
            best = th
    return best


# ----------------------- kernel 1: conv (im2col matmul) + batch-stat sums -----------------------
def _make_conv_stats_kernel(ksize, h_out, w_out, c_in, c_out, th):
    n_tiles = h_out // th
    kk = ksize * ksize

    def kernel(xp_ref, w_ref, conv_ref, sum_ref, sqs_ref, col_ref):
        # xp_ref  : (1, Hp, Wp, Cin)       f32  zero-padded input image (NHWC)
        # w_ref   : (K*K*Cin, Cout)        bf16 im2col-flattened conv weights
        # conv_ref: (1, Hout, Wout, Cout)  f32  raw conv output (pre-BN)
        # sum_ref : (1, Cout)  f32  sum_{N,H,W} conv      (accumulated across the grid)
        # sqs_ref : (1, Cout)  f32  sum_{N,H,W} conv**2   (accumulated across the grid)
        # col_ref : (TH, Wout, K*K*Cin) f32 VMEM scratch: im2col block
        @pl.when(pl.program_id(0) == 0)
        def _init():
            sum_ref[...] = jnp.zeros_like(sum_ref)
            sqs_ref[...] = jnp.zeros_like(sqs_ref)

        s_img = jnp.zeros((1, c_out), jnp.float32)
        q_img = jnp.zeros((1, c_out), jnp.float32)

        for t in range(n_tiles):                      # static row-block loop
            r0 = t * th
            # Assemble the im2col block: tap (ky, kx) lands in the static lane range
            # [(ky*K + kx)*Cin, +Cin).  All slice starts are static Python ints.
            for ky in range(ksize):
                for kx in range(ksize):
                    tap = xp_ref[0, pl.ds(r0 + ky, th), pl.ds(kx, w_out), :]
                    col_ref[:, :, pl.ds((ky * ksize + kx) * c_in, c_in)] = tap
            # Single K-deep MXU matmul per row block: (TH*Wout, K*K*Cin) @ (K*K*Cin, Cout)
            patches = col_ref[...].reshape(th * w_out, kk * c_in).astype(jnp.bfloat16)
            y = jnp.dot(patches, w_ref[...], preferred_element_type=jnp.float32)
            conv_ref[0, pl.ds(r0, th), :, :] = y.reshape(th, w_out, c_out)
            # Per-channel partial sums for the train-mode BatchNorm statistics.
            s_img = s_img + jnp.sum(y, axis=0, keepdims=True)
            q_img = q_img + jnp.sum(y * y, axis=0, keepdims=True)

        sum_ref[...] += s_img
        sqs_ref[...] += q_img

    return kernel


# --------------------------- kernel 2: BatchNorm (batch stats) + ReLU ---------------------------
def _make_bn_relu_kernel(count, eps):
    inv_count = 1.0 / float(count)

    def kernel(y_ref, sum_ref, sqs_ref, g_ref, b_ref, o_ref):
        mean = sum_ref[...] * inv_count                                    # (1, Cout)
        var = jnp.maximum(sqs_ref[...] * inv_count - mean * mean, 0.0)     # biased var
        scale = g_ref[...] * lax.rsqrt(var + eps)
        bias = b_ref[...] - mean * scale
        # Single fused multiply-add + ReLU, one lane-dense full-block store.
        o_ref[...] = jnp.maximum(y_ref[...] * scale + bias, 0.0)

    return kernel


# --------------------------------------------- wrapper ---------------------------------------------
def basic_conv_forward(x, weight, gamma, beta, *, padding=1, eps=1e-5):
    """basic_conv forward: Conv2d(k, stride=1, bias=False) -> BatchNorm2d (train mode) -> ReLU.

    x      : (N, Cin, H, W)    float32 (NCHW, PyTorch layout)
    weight : (Cout, Cin, K, K) float32 (PyTorch OIHW layout)
    gamma  : (Cout,) float32   BatchNorm weight
    beta   : (Cout,) float32   BatchNorm bias
    returns: (N, Cout, Hout, Wout) float32, Hout = H + 2*padding - K + 1
    """
    n, c_in, h, w = x.shape
    c_out, c_in_w, kh, kw = weight.shape
    assert c_in_w == c_in and kh == kw, "square kernels with matching Cin only"
    ksize = kh
    h_out = h + 2 * padding - ksize + 1
    w_out = w + 2 * padding - ksize + 1
    hp, wp = h + 2 * padding, w + 2 * padding

    # NCHW -> NHWC (channels on lanes) + zero halo; tiny one-time layout plumbing.
    x_nhwc = jnp.transpose(x, (0, 2, 3, 1)).astype(jnp.float32)
    xp = jnp.pad(x_nhwc, ((0, 0), (padding, padding), (padding, padding), (0, 0)))

    # OIHW -> (K*K*Cin, Cout) bf16, row order matches the in-kernel im2col lane order.
    w_mat = jnp.transpose(weight, (2, 3, 1, 0)).reshape(ksize * ksize * c_in, c_out)
    w_mat = w_mat.astype(jnp.bfloat16)

    th = _pick_row_tile(h_out, w_out)

    conv, ch_sum, ch_sqs = pl.pallas_call(
        _make_conv_stats_kernel(ksize, h_out, w_out, c_in, c_out, th),
        out_shape=(
            jax.ShapeDtypeStruct((n, h_out, w_out, c_out), jnp.float32),
            jax.ShapeDtypeStruct((1, c_out), jnp.float32),
            jax.ShapeDtypeStruct((1, c_out), jnp.float32),
        ),
        grid_spec=pltpu.PrefetchScalarGridSpec(
            num_scalar_prefetch=0,
            grid=(n,),
            in_specs=[
                pl.BlockSpec((1, hp, wp, c_in), lambda b: (b, 0, 0, 0)),
                pl.BlockSpec((ksize * ksize * c_in, c_out), lambda b: (0, 0)),
            ],
            out_specs=[
                pl.BlockSpec((1, h_out, w_out, c_out), lambda b: (b, 0, 0, 0)),
                pl.BlockSpec((1, c_out), lambda b: (0, 0)),
                pl.BlockSpec((1, c_out), lambda b: (0, 0)),
            ],
            scratch_shapes=[pltpu.VMEM((th, w_out, ksize * ksize * c_in), jnp.float32)],
        ),
        compiler_params=pltpu.CompilerParams(
            # Batch axis carries the resident stats accumulators -> must stay sequential.
            dimension_semantics=("arbitrary",),
        ),
    )(xp, w_mat)

    count = n * h_out * w_out
    y = pl.pallas_call(
        _make_bn_relu_kernel(count, eps),
        out_shape=jax.ShapeDtypeStruct((n, h_out, w_out, c_out), jnp.float32),
        grid_spec=pltpu.PrefetchScalarGridSpec(
            num_scalar_prefetch=0,
            grid=(n,),
            in_specs=[
                pl.BlockSpec((1, h_out, w_out, c_out), lambda b: (b, 0, 0, 0)),
                pl.BlockSpec((1, c_out), lambda b: (0, 0)),
                pl.BlockSpec((1, c_out), lambda b: (0, 0)),
                pl.BlockSpec((1, c_out), lambda b: (0, 0)),
                pl.BlockSpec((1, c_out), lambda b: (0, 0)),
            ],
            out_specs=pl.BlockSpec((1, h_out, w_out, c_out), lambda b: (b, 0, 0, 0)),
        ),
        compiler_params=pltpu.CompilerParams(dimension_semantics=("parallel",)),
    )(conv, ch_sum, ch_sqs,
      gamma.reshape(1, c_out).astype(jnp.float32),
      beta.reshape(1, c_out).astype(jnp.float32))

    return jnp.transpose(y, (0, 3, 1, 2))   # back to NCHW


# ----------------------------------------- f32 reference -----------------------------------------
def _reference_forward(x, weight, gamma, beta, padding=1, eps=1e-5):
    y = lax.conv_general_dilated(
        x, weight, window_strides=(1, 1),
        padding=((padding, padding), (padding, padding)),
        dimension_numbers=("NCHW", "OIHW", "NCHW"))
    mean = jnp.mean(y, axis=(0, 2, 3), keepdims=True)
    var = jnp.mean((y - mean) ** 2, axis=(0, 2, 3), keepdims=True)   # biased (train-mode BN)
    y = (y - mean) * lax.rsqrt(var + eps)
    return jnp.maximum(y * gamma.reshape(1, -1, 1, 1) + beta.reshape(1, -1, 1, 1), 0.0)


if __name__ == "__main__":
    key = jax.random.PRNGKey(0)
    kx, kw_, kg, kb = jax.random.split(key, 4)
    N, C_IN, H, W, C_OUT, K = 2, 4, 16, 16, 64, 3

    x = jax.random.normal(kx, (N, C_IN, H, W), jnp.float32)
    weight = jax.random.normal(kw_, (C_OUT, C_IN, K, K), jnp.float32) * (2.0 / (K * K * C_IN)) ** 0.5
    gamma = 1.0 + 0.1 * jax.random.normal(kg, (C_OUT,), jnp.float32)
    beta = 0.1 * jax.random.normal(kb, (C_OUT,), jnp.float32)

    fwd = jax.jit(functools.partial(basic_conv_forward, padding=1))   # padding=1: VGG-style "same" 3x3
    out = fwd(x, weight, gamma, beta)
    jax.block_until_ready(out)
    assert out.shape == (N, C_OUT, H, W), out.shape

    ref = _reference_forward(x, weight, gamma, beta, padding=1)
    max_err = float(jnp.max(jnp.abs(out - ref)))
    assert max_err < 1e-1, f"max abs error vs f32 reference too large: {max_err}"
    print("KERNEL_OK")
</pallas_src>

<mosaic_0001>
module attributes {stable_mosaic.version = 11 : i64} {
  func.func @kernel(%arg0: i32, %arg1: memref<1x18x18x4xf32, #tpu.memory_space<vmem>>, %arg2: memref<36x64xbf16, #tpu.memory_space<vmem>>, %arg3: memref<1x16x16x64xf32, #tpu.memory_space<vmem>>, %arg4: memref<1x64xf32, #tpu.memory_space<vmem>>, %arg5: memref<1x64xf32, #tpu.memory_space<vmem>>, %arg6: memref<16x16x36xf32, #tpu.memory_space<vmem>>) attributes {dimension_semantics = [#tpu.dimension_semantics<arbitrary>], iteration_bounds = array<i64: 2>, scalar_prefetch = 0 : i64, scratch_operands = 1 : i64, tpu.core_type = #tpu.core_type<tc>, window_params = [{transform_indices = @transform_0, window_bounds = array<i64: 1, 18, 18, 4>}, {pipeline_mode = #tpu.pipeline_mode<synchronous>, transform_indices = @transform_1, window_bounds = array<i64: 36, 64>}, {transform_indices = @transform_2, window_bounds = array<i64: 1, 16, 16, 64>}, {pipeline_mode = #tpu.pipeline_mode<synchronous>, transform_indices = @transform_3, window_bounds = array<i64: 1, 64>}, {pipeline_mode = #tpu.pipeline_mode<synchronous>, transform_indices = @transform_4, window_bounds = array<i64: 1, 64>}]} {
    %c0_i32 = arith.constant 0 : i32
    %0 = arith.cmpi eq, %arg0, %c0_i32 : i32
    %1 = arith.extui %0 : i1 to i32
    %c0_i32_0 = arith.constant 0 : i32
    %2 = arith.cmpi ne, %1, %c0_i32_0 : i32
    scf.if %2 {
      %cst_74 = arith.constant 0.000000e+00 : f32
      %54 = vector.broadcast %cst_74 : f32 to vector<1x64xf32>
      %c0_75 = arith.constant 0 : index
      %c0_76 = arith.constant 0 : index
      %55 = vector.load %arg4[%c0_75, %c0_76] : memref<1x64xf32, #tpu.memory_space<vmem>>, vector<1x64xf32>
      tpu.vector_store %arg4[%c0_75, %c0_76], %54 {strides = array<i32>} : memref<1x64xf32, #tpu.memory_space<vmem>>, vector<1x64xf32>,
      %cst_77 = arith.constant 0.000000e+00 : f32
      %56 = vector.broadcast %cst_77 : f32 to vector<1x64xf32>
      %c0_78 = arith.constant 0 : index
      %c0_79 = arith.constant 0 : index
      %57 = vector.load %arg5[%c0_78, %c0_79] : memref<1x64xf32, #tpu.memory_space<vmem>>, vector<1x64xf32>
      tpu.vector_store %arg5[%c0_78, %c0_79], %56 {strides = array<i32>} : memref<1x64xf32, #tpu.memory_space<vmem>>, vector<1x64xf32>,
    } else {
    }
    %cst = arith.constant 0.000000e+00 : f32
    %3 = vector.broadcast %cst : f32 to vector<1x64xf32>
    %cst_1 = arith.constant 0.000000e+00 : f32
    %4 = vector.broadcast %cst_1 : f32 to vector<1x64xf32>
    %c0 = arith.constant 0 : index
    %c0_2 = arith.constant 0 : index
    %c0_3 = arith.constant 0 : index
    %c0_4 = arith.constant 0 : index
    %5 = vector.load %arg1[%c0, %c0_2, %c0_3, %c0_4] : memref<1x18x18x4xf32, #tpu.memory_space<vmem>>, vector<1x16x16x4xf32>
    %6 = vector.shape_cast %5 : vector<1x16x16x4xf32> to vector<16x16x4xf32>
    %c0_5 = arith.constant 0 : index
    %c0_6 = arith.constant 0 : index
    %c0_7 = arith.constant 0 : index
    %7 = vector.load %arg6[%c0_5, %c0_6, %c0_7] : memref<16x16x36xf32, #tpu.memory_space<vmem>>, vector<16x16x4xf32>
    tpu.vector_store %arg6[%c0_5, %c0_6, %c0_7], %6 {strides = array<i32>} : memref<16x16x36xf32, #tpu.memory_space<vmem>>, vector<16x16x4xf32>,
    %c0_8 = arith.constant 0 : index
    %c0_9 = arith.constant 0 : index
    %c1 = arith.constant 1 : index
    %c0_10 = arith.constant 0 : index
    %8 = vector.load %arg1[%c0_8, %c0_9, %c1, %c0_10] : memref<1x18x18x4xf32, #tpu.memory_space<vmem>>, vector<1x16x16x4xf32>
    %9 = vector.shape_cast %8 : vector<1x16x16x4xf32> to vector<16x16x4xf32>
    %c0_11 = arith.constant 0 : index
    %c0_12 = arith.constant 0 : index
    %c4 = arith.constant 4 : index
    %10 = vector.load %arg6[%c0_11, %c0_12, %c4] : memref<16x16x36xf32, #tpu.memory_space<vmem>>, vector<16x16x4xf32>
    tpu.vector_store %arg6[%c0_11, %c0_12, %c4], %9 {strides = array<i32>} : memref<16x16x36xf32, #tpu.memory_space<vmem>>, vector<16x16x4xf32>,
    %c0_13 = arith.constant 0 : index
    %c0_14 = arith.constant 0 : index
    %c2 = arith.constant 2 : index
    %c0_15 = arith.constant 0 : index
    %11 = vector.load %arg1[%c0_13, %c0_14, %c2, %c0_15] : memref<1x18x18x4xf32, #tpu.memory_space<vmem>>, vector<1x16x16x4xf32>
    %12 = vector.shape_cast %11 : vector<1x16x16x4xf32> to vector<16x16x4xf32>
    %c0_16 = arith.constant 0 : index
    %c0_17 = arith.constant 0 : index
    %c8 = arith.constant 8 : index
    %13 = vector.load %arg6[%c0_16, %c0_17, %c8] : memref<16x16x36xf32, #tpu.memory_space<vmem>>, vector<16x16x4xf32>
    tpu.vector_store %arg6[%c0_16, %c0_17, %c8], %12 {strides = array<i32>} : memref<16x16x36xf32, #tpu.memory_space<vmem>>, vector<16x16x4xf32>,
    %c0_18 = arith.constant 0 : index
    %c1_19 = arith.constant 1 : index
    %c0_20 = arith.constant 0 : index
    %c0_21 = arith.constant 0 : index
    %14 = vector.load %arg1[%c0_18, %c1_19, %c0_20, %c0_21] : memref<1x18x18x4xf32, #tpu.memory_space<vmem>>, vector<1x16x16x4xf32>
    %15 = vector.shape_cast %14 : vector<1x16x16x4xf32> to vector<16x16x4xf32>
    %c0_22 = arith.constant 0 : index
    %c0_23 = arith.constant 0 : index
    %c12 = arith.constant 12 : index
    %16 = vector.load %arg6[%c0_22, %c0_23, %c12] : memref<16x16x36xf32, #tpu.memory_space<vmem>>, vector<16x16x4xf32>
    tpu.vector_store %arg6[%c0_22, %c0_23, %c12], %15 {strides = array<i32>} : memref<16x16x36xf32, #tpu.memory_space<vmem>>, vector<16x16x4xf32>,
    %c0_24 = arith.constant 0 : index
    %c1_25 = arith.constant 1 : index
    %c1_26 = arith.constant 1 : index
    %c0_27 = arith.constant 0 : index
    %17 = vector.load %arg1[%c0_24, %c1_25, %c1_26, %c0_27] : memref<1x18x18x4xf32, #tpu.memory_space<vmem>>, vector<1x16x16x4xf32>
    %18 = vector.shape_cast %17 : vector<1x16x16x4xf32> to vector<16x16x4xf32>
    %c0_28 = arith.constant 0 : index
    %c0_29 = arith.constant 0 : index
    %c16 = arith.constant 16 : index
    %19 = vector.load %arg6[%c0_28, %c0_29, %c16] : memref<16x16x36xf32, #tpu.memory_space<vmem>>, vector<16x16x4xf32>
    tpu.vector_store %arg6[%c0_28, %c0_29, %c16], %18 {strides = array<i32>} : memref<16x16x36xf32, #tpu.memory_space<vmem>>, vector<16x16x4xf32>,
    %c0_30 = arith.constant 0 : index
    %c1_31 = arith.constant 1 : index
    %c2_32 = arith.constant 2 : index
    %c0_33 = arith.constant 0 : index
    %20 = vector.load %arg1[%c0_30, %c1_31, %c2_32, %c0_33] : memref<1x18x18x4xf32, #tpu.memory_space<vmem>>, vector<1x16x16x4xf32>
    %21 = vector.shape_cast %20 : vector<1x16x16x4xf32> to vector<16x16x4xf32>
    %c0_34 = arith.constant 0 : index
    %c0_35 = arith.constant 0 : index
    %c20 = arith.constant 20 : index
    %22 = vector.load %arg6[%c0_34, %c0_35, %c20] : memref<16x16x36xf32, #tpu.memory_space<vmem>>, vector<16x16x4xf32>
    tpu.vector_store %arg6[%c0_34, %c0_35, %c20], %21 {strides = array<i32>} : memref<16x16x36xf32, #tpu.memory_space<vmem>>, vector<16x16x4xf32>,
    %c0_36 = arith.constant 0 : index
    %c2_37 = arith.constant 2 : index
    %c0_38 = arith.constant 0 : index
    %c0_39 = arith.constant 0 : index
    %23 = vector.load %arg1[%c0_36, %c2_37, %c0_38, %c0_39] : memref<1x18x18x4xf32, #tpu.memory_space<vmem>>, vector<1x16x16x4xf32>
    %24 = vector.shape_cast %23 : vector<1x16x16x4xf32> to vector<16x16x4xf32>
    %c0_40 = arith.constant 0 : index
    %c0_41 = arith.constant 0 : index
    %c24 = arith.constant 24 : index
    %25 = vector.load %arg6[%c0_40, %c0_41, %c24] : memref<16x16x36xf32, #tpu.memory_space<vmem>>, vector<16x16x4xf32>
    tpu.vector_store %arg6[%c0_40, %c0_41, %c24], %24 {strides = array<i32>} : memref<16x16x36xf32, #tpu.memory_space<vmem>>, vector<16x16x4xf32>,
    %c0_42 = arith.constant 0 : index
    %c2_43 = arith.constant 2 : index
    %c1_44 = arith.constant 1 : index
    %c0_45 = arith.constant 0 : index
    %26 = vector.load %arg1[%c0_42, %c2_43, %c1_44, %c0_45] : memref<1x18x18x4xf32, #tpu.memory_space<vmem>>, vector<1x16x16x4xf32>
    %27 = vector.shape_cast %26 : vector<1x16x16x4xf32> to vector<16x16x4xf32>
    %c0_46 = arith.constant 0 : index
    %c0_47 = arith.constant 0 : index
    %c28 = arith.constant 28 : index
    %28 = vector.load %arg6[%c0_46, %c0_47, %c28] : memref<16x16x36xf32, #tpu.memory_space<vmem>>, vector<16x16x4xf32>
    tpu.vector_store %arg6[%c0_46, %c0_47, %c28], %27 {strides = array<i32>} : memref<16x16x36xf32, #tpu.memory_space<vmem>>, vector<16x16x4xf32>,
    %c0_48 = arith.constant 0 : index
    %c2_49 = arith.constant 2 : index
    %c2_50 = arith.constant 2 : index
    %c0_51 = arith.constant 0 : index
    %29 = vector.load %arg1[%c0_48, %c2_49, %c2_50, %c0_51] : memref<1x18x18x4xf32, #tpu.memory_space<vmem>>, vector<1x16x16x4xf32>
    %30 = vector.shape_cast %29 : vector<1x16x16x4xf32> to vector<16x16x4xf32>
    %c0_52 = arith.constant 0 : index
    %c0_53 = arith.constant 0 : index
    %c32 = arith.constant 32 : index
    %31 = vector.load %arg6[%c0_52, %c0_53, %c32] : memref<16x16x36xf32, #tpu.memory_space<vmem>>, vector<16x16x4xf32>
    tpu.vector_store %arg6[%c0_52, %c0_53, %c32], %30 {strides = array<i32>} : memref<16x16x36xf32, #tpu.memory_space<vmem>>, vector<16x16x4xf32>,
    %c0_54 = arith.constant 0 : index
    %c0_55 = arith.constant 0 : index
    %c0_56 = arith.constant 0 : index
    %32 = vector.load %arg6[%c0_54, %c0_55, %c0_56] : memref<16x16x36xf32, #tpu.memory_space<vmem>>, vector<16x16x36xf32>
    %33 = vector.shape_cast %32 : vector<16x16x36xf32> to vector<256x36xf32>
    %34 = arith.truncf %33 : vector<256x36xf32> to vector<256x36xbf16>
    %c0_57 = arith.constant 0 : index
    %c0_58 = arith.constant 0 : index
    %35 = vector.load %arg2[%c0_57, %c0_58] : memref<36x64xbf16, #tpu.memory_space<vmem>>, vector<36x64xbf16>
    %cst_59 = arith.constant dense<0.000000e+00> : vector<256x64xf32>
    %36 = tpu.matmul %34, %35, %cst_59 {dimension_numbers = #tpu.dot_dimension_numbers<[1], [0], [0], [1], [0, 0, 1, 1], [], []>} : vector<256x36xbf16>, vector<36x64xbf16>, vector<256x64xf32> -> vector<256x64xf32>
    %37 = vector.shape_cast %36 : vector<256x64xf32> to vector<16x16x64xf32>
    %c0_60 = arith.constant 0 : index
    %c0_61 = arith.constant 0 : index
    %c0_62 = arith.constant 0 : index
    %c0_63 = arith.constant 0 : index
    %38 = vector.load %arg3[%c0_60, %c0_61, %c0_62, %c0_63] : memref<1x16x16x64xf32, #tpu.memory_space<vmem>>, vector<1x16x16x64xf32>
    %39 = vector.shape_cast %38 : vector<1x16x16x64xf32> to vector<16x16x64xf32>
    %40 = vector.shape_cast %37 : vector<16x16x64xf32> to vector<1x16x16x64xf32>
    tpu.vector_store %arg3[%c0_60, %c0_61, %c0_62, %c0_63], %40 {strides = array<i32>} : memref<1x16x16x64xf32, #tpu.memory_space<vmem>>, vector<1x16x16x64xf32>,
    %cst_64 = arith.constant dense<0.000000e+00> : vector<64xf32>
    %41 = vector.multi_reduction <add>, %36, %cst_64 [0] : vector<256x64xf32> to vector<64xf32>
    %42 = vector.shape_cast %41 : vector<64xf32> to vector<1x64xf32>
    %43 = arith.addf %3, %42 : vector<1x64xf32>
    %44 = arith.mulf %36, %36 : vector<256x64xf32>
    %cst_65 = arith.constant dense<0.000000e+00> : vector<64xf32>
    %45 = vector.multi_reduction <add>, %44, %cst_65 [0] : vector<256x64xf32> to vector<64xf32>
    %46 = vector.shape_cast %45 : vector<64xf32> to vector<1x64xf32>
    %47 = arith.addf %4, %46 : vector<1x64xf32>
    %c0_66 = arith.constant 0 : index
    %c0_67 = arith.constant 0 : index
    %48 = vector.load %arg4[%c0_66, %c0_67] : memref<1x64xf32, #tpu.memory_space<vmem>>, vector<1x64xf32>
    %49 = arith.addf %48, %43 : vector<1x64xf32>
    %c0_68 = arith.constant 0 : index
    %c0_69 = arith.constant 0 : index
    %50 = vector.load %arg4[%c0_68, %c0_69] : memref<1x64xf32, #tpu.memory_space<vmem>>, vector<1x64xf32>
    tpu.vector_store %arg4[%c0_68, %c0_69], %49 {strides = array<i32>} : memref<1x64xf32, #tpu.memory_space<vmem>>, vector<1x64xf32>,
    %c0_70 = arith.constant 0 : index
    %c0_71 = arith.constant 0 : index
    %51 = vector.load %arg5[%c0_70, %c0_71] : memref<1x64xf32, #tpu.memory_space<vmem>>, vector<1x64xf32>
    %52 = arith.addf %51, %47 : vector<1x64xf32>
    %c0_72 = arith.constant 0 : index
    %c0_73 = arith.constant 0 : index
    %53 = vector.load %arg5[%c0_72, %c0_73] : memref<1x64xf32, #tpu.memory_space<vmem>>, vector<1x64xf32>
    tpu.vector_store %arg5[%c0_72, %c0_73], %52 {strides = array<i32>} : memref<1x64xf32, #tpu.memory_space<vmem>>, vector<1x64xf32>,
    return
  }
  func.func @transform_0(%arg0: i32) -> (i32, i32, i32, i32) {
    %c0_i32 = arith.constant 0 : i32
    %c0_i32_0 = arith.constant 0 : i32
    %c0_i32_1 = arith.constant 0 : i32
    %c0_i32_2 = arith.constant 0 : i32
    return %arg0, %c0_i32, %c0_i32_0, %c0_i32_1 : i32, i32, i32, i32
  }
  func.func @transform_1(%arg0: i32) -> (i32, i32) {
    %c0_i32 = arith.constant 0 : i32
    %c0_i32_0 = arith.constant 0 : i32
    %c0_i32_1 = arith.constant 0 : i32
    return %c0_i32, %c0_i32_0 : i32, i32
  }
  func.func @transform_2(%arg0: i32) -> (i32, i32, i32, i32) {
    %c0_i32 = arith.constant 0 : i32
    %c0_i32_0 = arith.constant 0 : i32
    %c0_i32_1 = arith.constant 0 : i32
    %c0_i32_2 = arith.constant 0 : i32
    return %arg0, %c0_i32, %c0_i32_0, %c0_i32_1 : i32, i32, i32, i32
  }
  func.func @transform_3(%arg0: i32) -> (i32, i32) {
    %c0_i32 = arith.constant 0 : i32
    %c0_i32_0 = arith.constant 0 : i32
    %c0_i32_1 = arith.constant 0 : i32
    return %c0_i32, %c0_i32_0 : i32, i32
  }
  func.func @transform_4(%arg0: i32) -> (i32, i32) {
    %c0_i32 = arith.constant 0 : i32
    %c0_i32_0 = arith.constant 0 : i32
    %c0_i32_1 = arith.constant 0 : i32
    return %c0_i32, %c0_i32_0 : i32, i32
  }
}

module attributes {stable_mosaic.version = 11 : i64} {
  func.func @kernel(%arg0: i32, %arg1: memref<1x16x16x64xf32, #tpu.memory_space<vmem>>, %arg2: memref<1x64xf32, #tpu.memory_space<vmem>>, %arg3: memref<1x64xf32, #tpu.memory_space<vmem>>, %arg4: memref<1x64xf32, #tpu.memory_space<vmem>>, %arg5: memref<1x64xf32, #tpu.memory_space<vmem>>, %arg6: memref<1x16x16x64xf32, #tpu.memory_space<vmem>>) attributes {dimension_semantics = [#tpu.dimension_semantics<parallel>], iteration_bounds = array<i64: 2>, scalar_prefetch = 0 : i64, scratch_operands = 0 : i64, tpu.core_type = #tpu.core_type<tc>, window_params = [{transform_indices = @transform_0, window_bounds = array<i64: 1, 16, 16, 64>}, {pipeline_mode = #tpu.pipeline_mode<synchronous>, transform_indices = @transform_1, window_bounds = array<i64: 1, 64>}, {pipeline_mode = #tpu.pipeline_mode<synchronous>, transform_indices = @transform_2, window_bounds = array<i64: 1, 64>}, {pipeline_mode = #tpu.pipeline_mode<synchronous>, transform_indices = @transform_3, window_bounds = array<i64: 1, 64>}, {pipeline_mode = #tpu.pipeline_mode<synchronous>, transform_indices = @transform_4, window_bounds = array<i64: 1, 64>}, {transform_indices = @transform_5, window_bounds = array<i64: 1, 16, 16, 64>}]} {
    %c0 = arith.constant 0 : index
    %c0_0 = arith.constant 0 : index
    %0 = vector.load %arg2[%c0, %c0_0] : memref<1x64xf32, #tpu.memory_space<vmem>>, vector<1x64xf32>
    %cst = arith.constant 0.001953125 : f32
    %1 = vector.broadcast %cst : f32 to vector<1x64xf32>
    %2 = arith.mulf %0, %1 : vector<1x64xf32>
    %c0_1 = arith.constant 0 : index
    %c0_2 = arith.constant 0 : index
    %3 = vector.load %arg3[%c0_1, %c0_2] : memref<1x64xf32, #tpu.memory_space<vmem>>, vector<1x64xf32>
    %cst_3 = arith.constant 0.001953125 : f32
    %4 = vector.broadcast %cst_3 : f32 to vector<1x64xf32>
    %5 = arith.mulf %3, %4 : vector<1x64xf32>
    %6 = arith.mulf %2, %2 : vector<1x64xf32>
    %7 = arith.subf %5, %6 : vector<1x64xf32>
    %cst_4 = arith.constant 0.000000e+00 : f32
    %8 = vector.broadcast %cst_4 : f32 to vector<1x64xf32>
    %9 = arith.maximumf %7, %8 : vector<1x64xf32>
    %c0_5 = arith.constant 0 : index
    %c0_6 = arith.constant 0 : index
    %10 = vector.load %arg4[%c0_5, %c0_6] : memref<1x64xf32, #tpu.memory_space<vmem>>, vector<1x64xf32>
    %cst_7 = arith.constant 9.99999974E-6 : f32
    %11 = vector.broadcast %cst_7 : f32 to vector<1x64xf32>
    %12 = arith.addf %9, %11 : vector<1x64xf32>
    %13 = math.rsqrt %12 : vector<1x64xf32>
    %14 = arith.mulf %10, %13 : vector<1x64xf32>
    %c0_8 = arith.constant 0 : index
    %c0_9 = arith.constant 0 : index
    %15 = vector.load %arg5[%c0_8, %c0_9] : memref<1x64xf32, #tpu.memory_space<vmem>>, vector<1x64xf32>
    %16 = arith.mulf %2, %14 : vector<1x64xf32>
    %17 = arith.subf %15, %16 : vector<1x64xf32>
    %c0_10 = arith.constant 0 : index
    %c0_11 = arith.constant 0 : index
    %c0_12 = arith.constant 0 : index
    %c0_13 = arith.constant 0 : index
    %18 = vector.load %arg1[%c0_10, %c0_11, %c0_12, %c0_13] : memref<1x16x16x64xf32, #tpu.memory_space<vmem>>, vector<1x16x16x64xf32>
    %19 = vector.shape_cast %14 : vector<1x64xf32> to vector<1x1x1x64xf32>
    %20 = vector.broadcast %19 : vector<1x1x1x64xf32> to vector<1x16x16x64xf32>
    %21 = arith.mulf %18, %20 : vector<1x16x16x64xf32>
    %22 = vector.shape_cast %17 : vector<1x64xf32> to vector<1x1x1x64xf32>
    %23 = vector.broadcast %22 : vector<1x1x1x64xf32> to vector<1x16x16x64xf32>
    %24 = arith.addf %21, %23 : vector<1x16x16x64xf32>
    %cst_14 = arith.constant 0.000000e+00 : f32
    %25 = vector.broadcast %cst_14 : f32 to vector<1x16x16x64xf32>
    %26 = arith.maximumf %24, %25 : vector<1x16x16x64xf32>
    %c0_15 = arith.constant 0 : index
    %c0_16 = arith.constant 0 : index
    %c0_17 = arith.constant 0 : index
    %c0_18 = arith.constant 0 : index
    %27 = vector.load %arg6[%c0_15, %c0_16, %c0_17, %c0_18] : memref<1x16x16x64xf32, #tpu.memory_space<vmem>>, vector<1x16x16x64xf32>
    tpu.vector_store %arg6[%c0_15, %c0_16, %c0_17, %c0_18], %26 {strides = array<i32>} : memref<1x16x16x64xf32, #tpu.memory_space<vmem>>, vector<1x16x16x64xf32>,
    return
  }
  func.func @transform_0(%arg0: i32) -> (i32, i32, i32, i32) {
    %c0_i32 = arith.constant 0 : i32
    %c0_i32_0 = arith.constant 0 : i32
    %c0_i32_1 = arith.constant 0 : i32
    %c0_i32_2 = arith.constant 0 : i32
    return %arg0, %c0_i32, %c0_i32_0, %c0_i32_1 : i32, i32, i32, i32
  }
  func.func @transform_1(%arg0: i32) -> (i32, i32) {
    %c0_i32 = arith.constant 0 : i32
    %c0_i32_0 = arith.constant 0 : i32
    %c0_i32_1 = arith.constant 0 : i32
    return %c0_i32, %c0_i32_0 : i32, i32
  }
  func.func @transform_2(%arg0: i32) -> (i32, i32) {
    %c0_i32 = arith.constant 0 : i32
    %c0_i32_0 = arith.constant 0 : i32
    %c0_i32_1 = arith.constant 0 : i32
    return %c0_i32, %c0_i32_0 : i32, i32
  }
  func.func @transform_3(%arg0: i32) -> (i32, i32) {
    %c0_i32 = arith.constant 0 : i32
    %c0_i32_0 = arith.constant 0 : i32
    %c0_i32_1 = arith.constant 0 : i32
    return %c0_i32, %c0_i32_0 : i32, i32
  }
  func.func @transform_4(%arg0: i32) -> (i32, i32) {
    %c0_i32 = arith.constant 0 : i32
    %c0_i32_0 = arith.constant 0 : i32
    %c0_i32_1 = arith.constant 0 : i32
    return %c0_i32, %c0_i32_0 : i32, i32
  }
  func.func @transform_5(%arg0: i32) -> (i32, i32, i32, i32) {
    %c0_i32 = arith.constant 0 : i32
    %c0_i32_0 = arith.constant 0 : i32
    %c0_i32_1 = arith.constant 0 : i32
    %c0_i32_2 = arith.constant 0 : i32
    return %arg0, %c0_i32, %c0_i32_0, %c0_i32_1 : i32, i32, i32, i32
  }
}

</mosaic_0001>

<bundles_post_ra>
// kernel: basic_conv_forward.3
= control target key start
LH: loop header
LB: loop body
LE: loop exit
PB: predicated region body
PF: predicated region fallthrough
CT: control target
= control target key end

     0   :  { %10 = vsyncpa [#allocation3], 0  ;;  %s914_s0 = inlined_call_operand.vmem [shape: f32[2,16,16,64], index: 0, kind: input, shape index: {}]   ;;  %s915_s1 = inlined_call_operand.vmem [shape: f32[1,64], index: 1, kind: input, shape index: {}]   ;;  %s916_s2 = inlined_call_operand.vmem [shape: f32[1,64], index: 2, kind: input, shape index: {}]   ;;  %s917_s3 = inlined_call_operand.vmem [shape: f32[1,64], index: 3, kind: input, shape index: {}]   ;;  %s918_s4 = inlined_call_operand.vmem [shape: f32[1,64], index: 4, kind: input, shape index: {}]   ;;  %s919_s5 = inlined_call_operand.hbm [shape: f32[2,16,16,64], index: 5, kind: output, shape index: {}]  }
   0x1   :  { %12 = vsyncpa [#allocation3 + $0x1], 0  ;;  %s644_s18 = smov 0   ;;  %s646_s19 = smov 0  }
   0x2   :  { %s648_s20 = smov 0   ;;  %s650_s21 = smov 0  }
   0x3 LB: > { %s665_s22 = sadd.s32 4294967295, %s610_s21   ;;  %s491_s23 = sadd.s32 4294967294, %s610_s21   ;;  %s610_s21 = sphi %s650_s21, %s925_s21   ;;  %s606_s20 = sphi %s648_s20, %s924_s20   ;;  %s602_s19 = sphi %s646_s19, %s923_s19   ;;  %s598_s18 = sphi %s644_s18, %s922_s18  }
   0x4   : > { %s669_s24 = sadd.s32 1, %s610_s21   ;;  %s135_s25 = sadd.s32 1, %s606_s20 }
   0x5   : > { %s132_s26 = ssub.s32 %s610_s21, %s669_s24  ;;  %p145_p0 = scmp.ne.s32.totalorder %s606_s20, %s602_s19 }
   0x6   : > { %p133_p1 = scmp.eq.s32.totalorder %s132_s26, 0  ;;  %p146_p2 = scmp.eq.s32.totalorder %s665_s22, 1 }
   0x7   : > { %p151_p3 = scmp.ne.s32.totalorder %s602_s19, %s598_s18  ;;  %p152_p4 = scmp.eq.s32.totalorder %s491_s23, 1 }
   0x8   : > { %s680_s27 = scalar_select %p133_p1, %s606_s20, %s135_s25  }
   0x9   : > { %p682_p5 = por %p146_p2, %p145_p0  ;;  %p686_p6 = por %p152_p4, %p151_p3 }
   0xa   : > { %p494_p7 = scmp.ge.s32.totalorder %s610_s21, 1  ;;  %p190_p8 = scmp.lt.s32.totalorder %s610_s21, 3 }
   0xc   : > { %p191_p9 = pnand %p494_p7, %p190_p8 }
   0xd   : > { %p218_p10 = scmp.lt.s32.totalorder (!%p191_p9), %s665_s22, 1  ;;  %s215_s23 = sand.u32 (!%p191_p9), 1, %s602_s19  }
   0xe   : > { %194 = sbr.rel (%p191_p9) target bundleno = 95 (0x5f), region = 40  ;;  %s495_s25 = sshll.u32 (!%p191_p9), %s215_s23, 8 }
   0xf   : > { %s753_s26 = scalar_lea.vmem (!%p191_p9), [#allocation2], %s495_s25  ;;  %s504_s30 = sshll.u32 (!%p191_p9), %s665_s22, 8 }
  0x10   : > { %s425_s7 = scalar_lea.hbm (!%p191_p9), %s919_s5, %s504_s30  ;;  %s426_s8 = sshll.u32 (!%p191_p9), %s753_s26, 4  ;;  %s427_s8 = int_to_ptr.vmem [resolvable:$true] %s426_s8 }
  0x13   : > { %v223_v0 = vld [vmem:[%s915_s1] sm:$0x1]  ;;  %s219_s9 = scalar_select %p218_p10, %s665_s22, 1  ;;  %vm380_vm3 = vcmask 523264  }
  0x14   : > { %v225_v1 = vld [vmem:[%s916_s2] sm:$0x1]  ;;  %v224_v2 = vmul.f32 0.001953125, %v223_v0 }
  0x15   : > { %v226_v3 = vmul.f32 0.001953125, %v225_v1  ;;  %s503_s10 = sshll.u32 %s219_s9, 8  ;;  %v230_v13 = vld [vmem:[%s917_s3] sm:$0x1]  ;;  %s428_s9 = sshll.u32 %s425_s7, 4  ;;  %s429_s9 = int_to_ptr.hbm [resolvable:$true] %s428_s9 }
  0x16   : > { %v227_v4 = vmul.f32 %v224_v2, %v224_v2  ;;  %s706_s15 = scalar_lea.vmem %s914_s0, %s503_s10  ;;  %v243_v17 = vld [vmem:[%s918_s4] sm:$0x1]  ;;  %s414_s10 = scalar_lea.sflag [#allocation3], %s215_s23 }
  0x17   : > { %v246_v18 = vld [vmem:[%s706_s15] sm:$0xff]  ;;  %v247_v19 = vld [vmem:[%s706_s15 + $0x8] sm:$0xff]  ;;  %v248_v20 = vld [vmem:[%s706_s15 + $0x10] sm:$0xff]  ;;  %s562_s11 = sshra.s32 %s429_s9, 4  ;;  %s563_s11 = int_to_ptr.hbm [resolvable:$true] %s562_s11 }
  0x18   : > { %v228_v5 = vsub.f32 %v226_v3, %v227_v4  ;;  %v249_v23 = vld [vmem:[%s706_s15 + $0x18] sm:$0xff]  ;;  %v250_v24 = vld [vmem:[%s706_s15 + $0x20] sm:$0xff]  ;;  %v251_v25 = vld [vmem:[%s706_s15 + $0x28] sm:$0xff]  ;;  %s564_s12 = scalar_lea.hbm %s563_s11, 256  ;;  %p569_p0 = scmp.lt.s32.totalorder %s563_s11, %s919_s5 }
  0x19   : > { %v252_v26 = vld [vmem:[%s706_s15 + $0x30] sm:$0xff]  ;;  %v253_v31 = vld [vmem:[%s706_s15 + $0x38] sm:$0xff]  ;;  %v254_v32 = vld [vmem:[%s706_s15 + $0x40] sm:$0xff]  ;;  %p565_p11 = scmp.ne.s32.totalorder %s563_s11, %s564_s12 }
  0x1a   : > { %v229_v6 = vmax.f32 %v228_v5, 0.0  ;;  %v255_v38 = vld [vmem:[%s706_s15 + $0x48] sm:$0xff]  ;;  %v256_v39 = vld [vmem:[%s706_s15 + $0x50] sm:$0xff]  ;;  %v257_v46 = vld [vmem:[%s706_s15 + $0x58] sm:$0xff] }
  0x1b   : > { %v258_v51 = vld [vmem:[%s706_s15 + $0x60] sm:$0xff]  ;;  %v259_v56 = vld [vmem:[%s706_s15 + $0x68] sm:$0xff]  ;;  %v260_v60 = vld [vmem:[%s706_s15 + $0x70] sm:$0xff]  ;;  %p566_p12 = pnand %p565_p11, %p682_p5 }
  0x1c   : > { %v231_v7 = vadd.f32 1e-05, %v229_v6  ;;  %v261_v0 = vld [vmem:[%s706_s15 + $0x78] sm:$0xff]  ;;  %v262_v4 = vld [vmem:[%s706_s15 + $0x80] sm:$0xff] }
  0x1d   : > { %p567_p13 = pneg %p566_p12 }
  0x1e   : > { %546 = vrsqrt.f32 %v231_v7  ;;  %vm238_vm0 = vweird.f32 %v231_v7 }
  0x24   : > { %v547_v8 = vpop.eup %546 }
  0x25   : > { %v233_v9 = vmul.f32 %v547_v8, %v231_v7  ;;  %vm239_vm1 = vweird.f32 %v547_v8 }
  0x26   : > { %vm240_vm2 = vmor %vm238_vm0, %vm239_vm1 }
  0x27   : > { %v234_v10 = vmul.f32 %v547_v8, %v233_v9 }
  0x29   : > { %v235_v11 = vmul.f32 0.5, %v234_v10 }
  0x2b   : > { %v236_v12 = vsub.f32 1.5, %v235_v11 }
  0x2d   : > { %v237_v14 = vmul.f32 %v547_v8, %v236_v12  ;;  %v264_v12 = vld [vmem:[%s706_s15 + $0x90] sm:$0xff] }
  0x2f   : > { %v241_v15 = vsel %vm240_vm2, %v547_v8, %v237_v14  ;;  %v263_v8 = vld [vmem:[%s706_s15 + $0x88] sm:$0xff] }
  0x30   : > { %v242_v16 = vmul.f32 %v241_v15, %v230_v13 }
  0x32   : > { %v244_v21 = vmul.f32 %v242_v16, %v224_v2  ;;  %v714_v22 = vperm.slane %v242_v16, 0  ;;  %v265_v16 = vld [vmem:[%s706_s15 + $0x98] sm:$0xff] }
  0x34   : > { %v245_v27 = vsub.f32 %v243_v17, %v244_v21  ;;  %v281_v28 = vmul.f32 %v714_v22, %v246_v18  ;;  %v282_v29 = vmul.f32 %v714_v22, %v247_v19  ;;  %v283_v30 = vmul.f32 %v714_v22, %v248_v20  ;;  %v266_v20 = vld [vmem:[%s706_s15 + $0xa0] sm:$0xff] }
  0x35   : > { %v284_v33 = vmul.f32 %v714_v22, %v249_v23  ;;  %v285_v34 = vmul.f32 %v714_v22, %v250_v24  ;;  %v286_v35 = vmul.f32 %v714_v22, %v251_v25  ;;  %v287_v37 = vmul.f32 %v714_v22, %v252_v26  ;;  %v267_v25 = vld [vmem:[%s706_s15 + $0xa8] sm:$0xff] }
  0x36   : > { %v731_v36 = vperm.slane %v245_v27, 0  ;;  %v288_v40 = vmul.f32 %v714_v22, %v253_v31  ;;  %v289_v41 = vmul.f32 %v714_v22, %v254_v32  ;;  %v290_v49 = vmul.f32 %v714_v22, %v255_v38  ;;  %v270_v38 = vld [vmem:[%s706_s15 + $0xc0] sm:$0xff] }
  0x37   : > { %v291_v50 = vmul.f32 %v714_v22, %v256_v39  ;;  %v292_v59 = vmul.f32 %v714_v22, %v257_v46  ;;  %v293_v63 = vmul.f32 %v714_v22, %v258_v51  ;;  %v294_v3 = vmul.f32 %v714_v22, %v259_v56  ;;  %v272_v46 = vld [vmem:[%s706_s15 + $0xd0] sm:$0xff] }
  0x38   : > { %v316_v42 = vadd.f32 %v731_v36, %v281_v28  ;;  %v317_v43 = vadd.f32 %v731_v36, %v282_v29  ;;  %v318_v44 = vadd.f32 %v731_v36, %v283_v30  ;;  %v319_v45 = vadd.f32 %v731_v36, %v284_v33  ;;  %v268_v29 = vld [vmem:[%s706_s15 + $0xb0] sm:$0xff]  ;;  %v269_v33 = vld [vmem:[%s706_s15 + $0xb8] sm:$0xff] }
  0x39   : > { %v320_v47 = vadd.f32 %v731_v36, %v285_v34  ;;  %v321_v48 = vadd.f32 %v731_v36, %v286_v35  ;;  %v322_v55 = vadd.f32 %v731_v36, %v287_v37  ;;  %v323_v58 = vadd.f32 %v731_v36, %v288_v40 }
  0x3a   : > { %v348_v52 = vmax.f32 %v316_v42, 0.0  ;;  %v349_v53 = vmax.f32 %v317_v43, 0.0  ;;  %v350_v54 = vmax.f32 %v318_v44, 0.0  ;;  %v351_v57 = vmax.f32 %v319_v45, 0.0  ;;  %v271_v42 = vld [vmem:[%s706_s15 + $0xc8] sm:$0xff] }
  0x3b   : > { %v352_v61 = vmax.f32 %v320_v47, 0.0  ;;  %v324_v62 = vadd.f32 %v731_v36, %v289_v41  ;;  %v353_v1 = vmax.f32 %v321_v48, 0.0  ;;  %v325_v2 = vadd.f32 %v731_v36, %v290_v49 }
  0x3c   : > { %381 = vst.msk [vmem:[%s753_s26] sm:$0xff] %vm380_vm3, %v348_v52  ;;  %v354_v5 = vmax.f32 %v322_v55, 0.0  ;;  %v326_v6 = vadd.f32 %v731_v36, %v291_v50  ;;  %v295_v7 = vmul.f32 %v714_v22, %v260_v60  ;;  %v355_v9 = vmax.f32 %v323_v58, 0.0  ;;  %v273_v50 = vld [vmem:[%s706_s15 + $0xd8] sm:$0xff]  ;;  %v275_v58 = vld [vmem:[%s706_s15 + $0xe8] sm:$0xff] }
  0x3d   : > { %382 = vst.msk [vmem:[%s753_s26 + $0x8] sm:$0xff] %vm380_vm3, %v349_v53  ;;  %v327_v10 = vadd.f32 %v731_v36, %v292_v59  ;;  %v296_v11 = vmul.f32 %v714_v22, %v261_v0  ;;  %v356_v13 = vmax.f32 %v324_v62, 0.0  ;;  %v328_v14 = vadd.f32 %v731_v36, %v293_v63  ;;  %v276_v62 = vld [vmem:[%s706_s15 + $0xf0] sm:$0xff] }
  0x3e   : > { %383 = vst.msk [vmem:[%s753_s26 + $0x10] sm:$0xff] %vm380_vm3, %v350_v54  ;;  %v297_v15 = vmul.f32 %v714_v22, %v262_v4  ;;  %v357_v17 = vmax.f32 %v325_v2, 0.0  ;;  %v329_v18 = vadd.f32 %v731_v36, %v294_v3  ;;  %v298_v19 = vmul.f32 %v714_v22, %v263_v8  ;;  %v274_v54 = vld [vmem:[%s706_s15 + $0xe0] sm:$0xff]  ;;  %v277_v2 = vld [vmem:[%s706_s15 + $0xf8] sm:$0xff]  ;;  %s568_s15 = scalar_lea.hbm %s919_s5, 512 }
  0x3f   : > { %384 = vst.msk [vmem:[%s753_s26 + $0x18] sm:$0xff] %vm380_vm3, %v351_v57  ;;  %v358_v21 = vmax.f32 %v326_v6, 0.0  ;;  %v330_v23 = vadd.f32 %v731_v36, %v295_v7  ;;  %v299_v24 = vmul.f32 %v714_v22, %v264_v12  ;;  %v359_v26 = vmax.f32 %v327_v10, 0.0  ;;  %p570_p1 = scmp.lt.s32.totalorder %s568_s15, %s564_s12 }
  0x40   : > { %385 = vst.msk [vmem:[%s753_s26 + $0x20] sm:$0xff] %vm380_vm3, %v352_v61  ;;  %v331_v27 = vadd.f32 %v731_v36, %v296_v11  ;;  %v300_v28 = vmul.f32 %v714_v22, %v265_v16  ;;  %v360_v30 = vmax.f32 %v328_v14, 0.0  ;;  %v332_v31 = vadd.f32 %v731_v36, %v297_v15 }
  0x41   : > { %386 = vst.msk [vmem:[%s753_s26 + $0x28] sm:$0xff] %vm380_vm3, %v353_v1  ;;  %v301_v32 = vmul.f32 %v714_v22, %v266_v20  ;;  %v361_v34 = vmax.f32 %v329_v18, 0.0  ;;  %v333_v35 = vadd.f32 %v731_v36, %v298_v19  ;;  %v302_v37 = vmul.f32 %v714_v22, %v267_v25  ;;  %p571_p2 = por %p570_p1, %p569_p0 }
  0x42   : > { %387 = vst.msk [vmem:[%s753_s26 + $0x30] sm:$0xff] %vm380_vm3, %v354_v5  ;;  %v362_v39 = vmax.f32 %v330_v23, 0.0  ;;  %v334_v40 = vadd.f32 %v731_v36, %v299_v24  ;;  %v303_v41 = vmul.f32 %v714_v22, %v268_v29  ;;  %v363_v43 = vmax.f32 %v331_v27, 0.0 }
  0x43   : > { %388 = vst.msk [vmem:[%s753_s26 + $0x38] sm:$0xff] %vm380_vm3, %v355_v9  ;;  %v335_v44 = vadd.f32 %v731_v36, %v300_v28  ;;  %v304_v45 = vmul.f32 %v714_v22, %v269_v33  ;;  %v364_v47 = vmax.f32 %v332_v31, 0.0  ;;  %v336_v48 = vadd.f32 %v731_v36, %v301_v32  ;;  %p572_p3 = pnand %p571_p2, %p567_p13 }
  0x44   : > { %389 = vst.msk [vmem:[%s753_s26 + $0x40] sm:$0xff] %vm380_vm3, %v356_v13  ;;  %v305_v49 = vmul.f32 %v714_v22, %v270_v38  ;;  %v365_v51 = vmax.f32 %v333_v35, 0.0  ;;  %v337_v52 = vadd.f32 %v731_v36, %v302_v37  ;;  %v306_v53 = vmul.f32 %v714_v22, %v271_v42 }
  0x45   : > { %390 = vst.msk [vmem:[%s753_s26 + $0x48] sm:$0xff] %vm380_vm3, %v357_v17  ;;  %v366_v55 = vmax.f32 %v334_v40, 0.0  ;;  %v338_v56 = vadd.f32 %v731_v36, %v303_v41  ;;  %v307_v57 = vmul.f32 %v714_v22, %v272_v46  ;;  %v367_v59 = vmax.f32 %v335_v44, 0.0 }
  0x46   : > { %391 = vst.msk [vmem:[%s753_s26 + $0x50] sm:$0xff] %vm380_vm3, %v358_v21  ;;  %v339_v60 = vadd.f32 %v731_v36, %v304_v45  ;;  %v308_v61 = vmul.f32 %v714_v22, %v273_v50  ;;  %v368_v63 = vmax.f32 %v336_v48, 0.0  ;;  %v340_v0 = vadd.f32 %v731_v36, %v305_v49 }
  0x47   : > { %392 = vst.msk [vmem:[%s753_s26 + $0x58] sm:$0xff] %vm380_vm3, %v359_v26  ;;  %v309_v1 = vmul.f32 %v714_v22, %v274_v54  ;;  %v369_v3 = vmax.f32 %v337_v52, 0.0  ;;  %v341_v4 = vadd.f32 %v731_v36, %v306_v53  ;;  %v310_v5 = vmul.f32 %v714_v22, %v275_v58 }
  0x48   : > { %393 = vst.msk [vmem:[%s753_s26 + $0x60] sm:$0xff] %vm380_vm3, %v360_v30  ;;  %v370_v6 = vmax.f32 %v338_v56, 0.0  ;;  %v342_v7 = vadd.f32 %v731_v36, %v307_v57  ;;  %v311_v8 = vmul.f32 %v714_v22, %v276_v62  ;;  %v371_v9 = vmax.f32 %v339_v60, 0.0 }
  0x49   : > { %394 = vst.msk [vmem:[%s753_s26 + $0x68] sm:$0xff] %vm380_vm3, %v361_v34  ;;  %v343_v10 = vadd.f32 %v731_v36, %v308_v61  ;;  %v312_v11 = vmul.f32 %v714_v22, %v277_v2  ;;  %v372_v12 = vmax.f32 %v340_v0, 0.0  ;;  %v344_v13 = vadd.f32 %v731_v36, %v309_v1 }
  0x4a   : > { %395 = vst.msk [vmem:[%s753_s26 + $0x70] sm:$0xff] %vm380_vm3, %v362_v39  ;;  %v373_v14 = vmax.f32 %v341_v4, 0.0  ;;  %v345_v15 = vadd.f32 %v731_v36, %v310_v5  ;;  %v374_v16 = vmax.f32 %v342_v7, 0.0  ;;  %v346_v22 = vadd.f32 %v731_v36, %v311_v8 }
  0x4b   : > { %396 = vst.msk [vmem:[%s753_s26 + $0x78] sm:$0xff] %vm380_vm3, %v363_v43  ;;  %v375_v17 = vmax.f32 %v343_v10, 0.0  ;;  %v347_v18 = vadd.f32 %v731_v36, %v312_v11  ;;  %v376_v19 = vmax.f32 %v344_v13, 0.0 }
  0x4c   : > { %397 = vst.msk [vmem:[%s753_s26 + $0x80] sm:$0xff] %vm380_vm3, %v364_v47  ;;  %v377_v20 = vmax.f32 %v345_v15, 0.0  ;;  %v378_v21 = vmax.f32 %v346_v22, 0.0 }
  0x4d   : > { %398 = vst.msk [vmem:[%s753_s26 + $0x88] sm:$0xff] %vm380_vm3, %v365_v51  ;;  %v379_v23 = vmax.f32 %v347_v18, 0.0 }
  0x4e   : > { %399 = vst.msk [vmem:[%s753_s26 + $0x90] sm:$0xff] %vm380_vm3, %v366_v55 }
  0x4f   : > { %400 = vst.msk [vmem:[%s753_s26 + $0x98] sm:$0xff] %vm380_vm3, %v367_v59 }
  0x50   : > { %401 = vst.msk [vmem:[%s753_s26 + $0xa0] sm:$0xff] %vm380_vm3, %v368_v63 }
  0x51   : > { %402 = vst.msk [vmem:[%s753_s26 + $0xa8] sm:$0xff] %vm380_vm3, %v369_v3 }
  0x52   : > { %403 = vst.msk [vmem:[%s753_s26 + $0xb0] sm:$0xff] %vm380_vm3, %v370_v6 }
  0x53   : > { %404 = vst.msk [vmem:[%s753_s26 + $0xb8] sm:$0xff] %vm380_vm3, %v371_v9 }
  0x54   : > { %405 = vst.msk [vmem:[%s753_s26 + $0xc0] sm:$0xff] %vm380_vm3, %v372_v12 }
  0x55   : > { %406 = vst.msk [vmem:[%s753_s26 + $0xc8] sm:$0xff] %vm380_vm3, %v373_v14 }
  0x56   : > { %407 = vst.msk [vmem:[%s753_s26 + $0xd0] sm:$0xff] %vm380_vm3, %v374_v16 }
  0x57   : > { %408 = vst.msk [vmem:[%s753_s26 + $0xd8] sm:$0xff] %vm380_vm3, %v375_v17 }
  0x58   : > { %409 = vst.msk [vmem:[%s753_s26 + $0xe0] sm:$0xff] %vm380_vm3, %v376_v19 }
  0x59   : > { %410 = vst.msk [vmem:[%s753_s26 + $0xe8] sm:$0xff] %vm380_vm3, %v377_v20 }
  0x5a   : > { %411 = vst.msk [vmem:[%s753_s26 + $0xf0] sm:$0xff] %vm380_vm3, %v378_v21 }
  0x5b   : > { %412 = vst.msk [vmem:[%s753_s26 + $0xf8] sm:$0xff] %vm380_vm3, %v379_v23 }
  0x5c   : > { %575 = shalt.err (!%p572_p3)
}
  0x5d   : > { %s612_s23 = smov 128   ;;  %s613_s25 = smov 8  }
  0x5e   : > { %505 = dma.vmem_to_hbm [thread:$0]  (%p682_p5), %s427_s8, 4096, %s429_s9, %s414_s10, %s612_s23, %s612_s23, %s613_s25  }
  0x5f PF: > { %p511_p4 = scmp.ge.s32.totalorder %s610_s21, 2  ;;  %s443_s26 = sand.u32 1, %s598_s18  }
  0x60   : > { %s444_s30 = scalar_lea.sflag [#allocation3], %s443_s26 }
  0x61   : > { %p508_p7 = pnand %p511_p4, %p686_p6 }
  0x63   : > { %p509_p8 = pneg %p508_p7 }
  0x65   : > { %593 = dma.done.wait (%p509_p8), %s444_s30, 4096  }
  0x66   : > { %595 = vsyncadd (%p509_p8), %s444_s30, 4294963200  ;;  %p15_p9 = scmp.ge.s32.totalorder %s669_s24, 4   ;;  %s922_s18 = smov %s602_s19 }
  0x67   : > { %s923_s19 = smov %s606_s20  ;;  %s924_s20 = smov %s680_s27 }
  0x68   : > { %s925_s21 = smov %s669_s24  ;;  %17 = sbr.rel (!%p15_p9) target bundleno = 3 (0x3), region = 75 }
  0x6d   :  { %450 = vsyncpa [#allocation3], 1 }
  0x6e   :  { %452 = vsyncpa [#allocation3 + $0x1], 1 }

// kernel: basic_conv_forward.2
= control target key start
LH: loop header
LB: loop body
LE: loop exit
PB: predicated region body
PF: predicated region fallthrough
CT: control target
= control target key end

     0   :  { %s2600_s15 = smov 0   ;;  %s3956_s0 = inlined_call_operand.vmem [shape: f32[2,18,18,4], index: 0, kind: input, shape index: {}]   ;;  %s3957_s1 = inlined_call_operand.vmem [shape: bf16[36,64], index: 1, kind: input, shape index: {}]   ;;  %s3958_s2 = inlined_call_operand.vmem [shape: f32[2,16,16,64], index: 2, kind: output, shape index: {0}]   ;;  %s3959_s3 = inlined_call_operand.vmem [shape: f32[1,64], index: 3, kind: output, shape index: {1}]   ;;  %s3960_s4 = inlined_call_operand.vmem [shape: f32[1,64], index: 4, kind: output, shape index: {2}]  }
   0x1 LB: > { %s2301_s16 = sadd.s32 4294967295, %s2564_s15   ;;  %p2305_p0 = scmp.ge.s32.totalorder %s2564_s15, 1  ;;  %s2564_s15 = sphi %s2600_s15, %s15_s15  }
   0x2   : > { %p157_p1 = scmp.lt.s32.totalorder %s2564_s15, 3 }
   0x4   : > { %p158_p2 = pnand %p2305_p0, %p157_p1 }
   0x6   : > { %161 = sbr.rel (%p158_p2) target bundleno = 989 (0x3dd), region = 28 }
   0xb   : > { %p183_p3 = scmp.lt.s32.totalorder %s2301_s16, 1  ;;  %p2309_p4 = scmp.ne.s32.totalorder %s2301_s16, 0 }
   0xd   : > { %s184_s17 = scalar_select %p183_p3, %s2301_s16, 1 }
   0xe   : > { %197 = sbr.rel (%p2309_p4) target bundleno = 22 (0x16), region = 32 }
   0xf   : > { %s2540_s18 = smul.u32 432, %s184_s17  ;;  %s2528_s19 = sshll.u32 %s184_s17, 8 }
  0x10   : > { %s2611_s22 = scalar_lea.vmem %s3958_s2, %s2528_s19 }
  0x11   : > { %s2616_s25 = scalar_lea.vmem %s3956_s0, %s2540_s18 }
  0x13   : > { %vm198_vm0 = vcmask 516096   ;;  %v2566_v0 = vmov 0.0  }
  0x14   : > { %199 = vst.msk [vmem:[%s3959_s3] sm:$0x1] %vm198_vm0, %v2566_v0 }
  0x15   : > { %200 = vst.msk [vmem:[%s3960_s4] sm:$0x1] %vm198_vm0, %v2566_v0 }
  0x16 PF: > { %v2625_v1 = vld [vmem:[%s2616_s25 + $0x19] sm:$0xff]  ;;  %v266_v2 = vld [vmem:[%s2616_s25 + $0x1] sm:$0xff]  ;;  %s2567_s30 = smov 4   ;;  %v2632_v3 = vld [vmem:[%s2616_s25 + $0x31] sm:$0xff]  ;;  %vm233_vm1 = vcmask 31744   ;;  %s2568_s5 = smov 8  }
  0x17   : > { %334 = vrot.lane.b32.xlu1 %v2625_v1, %s2567_s30  ;;  %330 = vrot.lane.b32.xlu0 %v266_v2, %s2567_s30  ;;  %v2637_v4 = vld [vmem:[%s2616_s25 + $0x21] sm:$0xff]  ;;  %v267_v5 = vld [vmem:[%s2616_s25 + $0x9] sm:$0xff]  ;;  %vm426_vm2 = vcmask 64544   ;;  %s2569_s6 = smov 12   ;;  %vm619_vm3 = vcmask 97344   ;;  %s2570_s7 = smov 16  }
  0x18   : > { %338 = vrot.lane.b32.xlu2 %v2632_v3, %s2567_s30  ;;  %v2641_v6 = vld [vmem:[%s2616_s25 + $0x39] sm:$0xff]  ;;  %v2649_v7 = vld [vmem:[%s2616_s25 + $0x51] sm:$0xff]  ;;  %v2652_v8 = vld [vmem:[%s2616_s25 + $0x49] sm:$0xff]  ;;  %vm813_vm4 = vcmask 130144   ;;  %s2571_s8 = smov 20   ;;  %vm1006_vm5 = vcmask 162944  }
  0x19   : > { %v2655_v9 = vld [vmem:[%s2616_s25 + $0x61] sm:$0xff]  ;;  %v2664_v10 = vld [vmem:[%s2616_s25 + $0x79] sm:$0xff]  ;;  %v2667_v11 = vld [vmem:[%s2616_s25 + $0x69] sm:$0xff]  ;;  %s2572_s9 = smov 24   ;;  %s2573_s10 = smov 28   ;;  %vm1199_vm6 = vcmask 195744  }
  0x1a   : > { %v2670_v12 = vld [vmem:[%s2616_s25 + $0x81] sm:$0xff]  ;;  %v2679_v13 = vld [vmem:[%s2616_s25 + $0x99] sm:$0xff]  ;;  %v2682_v14 = vld [vmem:[%s2616_s25 + $0x91] sm:$0xff]  ;;  %s2574_s11 = smov 32   ;;  %vm1929_vm7 = vcmask 1041408   ;;  %vm1393_vm8 = vcmask 228544  }
  0x1b   : > { %v2685_v15 = vld [vmem:[%s2616_s25 + $0xa9] sm:$0xff]  ;;  %v2694_v16 = vld [vmem:[%s2616_s25 + $0xc1] sm:$0xff]  ;;  %v2697_v17 = vld [vmem:[%s2616_s25 + $0xb1] sm:$0xff]  ;;  %vm1586_vm9 = vcmask 261344   ;;  %vm1779_vm10 = vcmask 294144   ;;  %vm1880_vm11 = vcmask 293888  }
  0x1c   : > { %v2700_v18 = vld [vmem:[%s2616_s25 + $0xc9] sm:$0xff]  ;;  %v2709_v19 = vld [vmem:[%s2616_s25 + $0xe1] sm:$0xff]  ;;  %v2712_v20 = vld [vmem:[%s2616_s25 + $0xd9] sm:$0xff]  ;;  %vm2022_vm12 = vcmask 523264   ;;  %vm2229_vm13 = vcmask 516096  }
  0x1d   : > { %v2715_v21 = vld [vmem:[%s2616_s25 + $0xf1] sm:$0xff]  ;;  %v2724_v22 = vld [vmem:[%s2616_s25 + $0x109] sm:$0xff]  ;;  %v2727_v23 = vld [vmem:[%s2616_s25 + $0xf9] sm:$0xff] }
  0x1e   : > { %v2730_v24 = vld [vmem:[%s2616_s25 + $0x111] sm:$0xff]  ;;  %v2739_v25 = vld [vmem:[%s2616_s25 + $0x129] sm:$0xff]  ;;  %v2742_v26 = vld [vmem:[%s2616_s25 + $0x121] sm:$0xff] }
  0x1f   : > { %336 = vrot.lane.b32.xlu1 %v2637_v4, %s2567_s30  ;;  %332 = vrot.lane.b32.xlu0 %v267_v5, %s2567_s30  ;;  %v2745_v27 = vld [vmem:[%s2616_s25 + $0x139] sm:$0xff]  ;;  %v2754_v28 = vld [vmem:[%s2616_s25 + $0x151] sm:$0xff] }
  0x20   : > { %340 = vrot.lane.b32.xlu2 %v2641_v6, %s2567_s30  ;;  %v2757_v29 = vld [vmem:[%s2616_s25 + $0x141] sm:$0xff]  ;;  %v2760_v30 = vld [vmem:[%s2616_s25 + $0x159] sm:$0xff]  ;;  %v2769_v31 = vld [vmem:[%s2616_s25 + $0x171] sm:$0xff] }
  0x21   : > { %3990 = vst [vmem:[#allocation3_spill] sm:$0xff] %v2760_v30  ;;  %v2772_v32 = vld [vmem:[%s2616_s25 + $0x169] sm:$0xff]  ;;  %v201_v35 = vld [vmem:[%s2616_s25] sm:$0xff]  ;;  %v2787_v36 = vld [vmem:[%s2616_s25 + $0x18] sm:$0xff] }
  0x22   : > { %3991 = vst [vmem:[#allocation4_spill] sm:$0xff] %v2769_v31  ;;  %v459_v33 = vld [vmem:[%s2616_s25 + $0x2] sm:$0xff]  ;;  %v2780_v34 = vld [vmem:[%s2616_s25 + $0x30] sm:$0xff]  ;;  %v2793_v37 = vld [vmem:[%s2616_s25 + $0x1a] sm:$0xff] }
  0x23   : > { %3992 = vst [vmem:[#allocation5_spill] sm:$0xff] %v2772_v32  ;;  %v460_v38 = vld [vmem:[%s2616_s25 + $0xa] sm:$0xff]  ;;  %v2797_v39 = vld [vmem:[%s2616_s25 + $0x22] sm:$0xff]  ;;  %v2803_v40 = vld [vmem:[%s2616_s25 + $0x38] sm:$0xff] }
  0x24   : > { %238 = vst.msk [vmem:[#allocation2 + $0x20] sm:$0xff] %vm233_vm1, %v2780_v34  ;;  %v2810_v41 = vld [vmem:[%s2616_s25 + $0x20] sm:$0xff]  ;;  %v202_v42 = vld [vmem:[%s2616_s25 + $0x8] sm:$0xff]  ;;  %v2820_v45 = vld [vmem:[%s2616_s25 + $0x32] sm:$0xff] }
  0x25   : > { %234 = vst.msk [vmem:[#allocation2] sm:$0xff] %vm233_vm1, %v201_v35  ;;  %v2817_v44 = vld [vmem:[%s2616_s25 + $0x3a] sm:$0xff]  ;;  %v2824_v46 = vld [vmem:[%s2616_s25 + $0x4a] sm:$0xff]  ;;  %v2848_v51 = vld [vmem:[%s2616_s25 + $0x62] sm:$0xff] }
  0x26   : > { %236 = vst.msk [vmem:[#allocation2 + $0x10] sm:$0xff] %vm233_vm1, %v2787_v36  ;;  %v2831_v47 = vld [vmem:[%s2616_s25 + $0x60] sm:$0xff]  ;;  %v2838_v48 = vld [vmem:[%s2616_s25 + $0x50] sm:$0xff]  ;;  %v2841_v49 = vld [vmem:[%s2616_s25 + $0x48] sm:$0xff] }
  0x27   : > { %344 = vrot.lane.b32.xlu1 %v2649_v7, %s2567_s30  ;;  %342 = vrot.lane.b32.xlu0 %v2652_v8, %s2567_s30  ;;  %3993 = vst [vmem:[#allocation6_spill] sm:$0xff] %v2793_v37  ;;  %v2851_v52 = vld [vmem:[%s2616_s25 + $0x52] sm:$0xff]  ;;  %v2855_v53 = vld [vmem:[%s2616_s25 + $0x6a] sm:$0xff] }
  0x28   : > { %346 = vrot.lane.b32.xlu2 %v2655_v9, %s2567_s30  ;;  %3994 = vst [vmem:[#allocation7_spill] sm:$0xff] %v2797_v39  ;;  %v2862_v54 = vld [vmem:[%s2616_s25 + $0x80] sm:$0xff]  ;;  %v2869_v55 = vld [vmem:[%s2616_s25 + $0x78] sm:$0xff]  ;;  %v2872_v56 = vld [vmem:[%s2616_s25 + $0x68] sm:$0xff] }
  0x29   : > { %239 = vst.msk [vmem:[#allocation2 + $0x28] sm:$0xff] %vm233_vm1, %v2803_v40  ;;  %v2879_v58 = vld [vmem:[%s2616_s25 + $0x82] sm:$0xff]  ;;  %v2882_v59 = vld [vmem:[%s2616_s25 + $0x7a] sm:$0xff]  ;;  %v2886_v60 = vld [vmem:[%s2616_s25 + $0x92] sm:$0xff] }
  0x2a   : > { %237 = vst.msk [vmem:[#allocation2 + $0x18] sm:$0xff] %vm233_vm1, %v2810_v41  ;;  %v2893_v61 = vld [vmem:[%s2616_s25 + $0xa8] sm:$0xff]  ;;  %v2901_v0 = vld [vmem:[%s2616_s25 + $0x98] sm:$0xff]  ;;  %v2905_v5 = vld [vmem:[%s2616_s25 + $0x90] sm:$0xff] }
  0x2b   : > { %235 = vst.msk [vmem:[#allocation2 + $0x8] sm:$0xff] %vm233_vm1, %v202_v42  ;;  %v2911_v35 = vld [vmem:[%s2616_s25 + $0x9a] sm:$0xff]  ;;  %v2926_v42 = vld [vmem:[%s2616_s25 + $0xc8] sm:$0xff] }
  0x2c   : > { %3995 = vst [vmem:[#allocation8_spill] sm:$0xff] %v2817_v44 }
  0x2d   : > { %3996 = vst [vmem:[#allocation9_spill] sm:$0xff] %v2820_v45 }
  0x2e   : > { %3997 = vst [vmem:[#allocation10_spill] sm:$0xff] %v2824_v46 }
  0x2f   : > { %350 = vrot.lane.b32.xlu1 %v2664_v10, %s2567_s30  ;;  %348 = vrot.lane.b32.xlu0 %v2667_v11, %s2567_s30  ;;  %242 = vst.msk [vmem:[#allocation2 + $0x40] sm:$0xff] %vm233_vm1, %v2831_v47 }
  0x30   : > { %352 = vrot.lane.b32.xlu2 %v2670_v12, %s2567_s30  ;;  %241 = vst.msk [vmem:[#allocation2 + $0x38] sm:$0xff] %vm233_vm1, %v2838_v48 }
  0x31   : > { %240 = vst.msk [vmem:[#allocation2 + $0x30] sm:$0xff] %vm233_vm1, %v2841_v49 }
  0x32   : > { %3998 = vst [vmem:[#allocation11_spill] sm:$0xff] %v2848_v51 }
  0x33   : > { %3999 = vst [vmem:[#allocation12_spill] sm:$0xff] %v2851_v52 }
  0x34   : > { %4000 = vst [vmem:[#allocation13_spill] sm:$0xff] %v2855_v53 }
  0x35   : > { %245 = vst.msk [vmem:[#allocation2 + $0x58] sm:$0xff] %vm233_vm1, %v2862_v54 }
  0x36   : > { %244 = vst.msk [vmem:[#allocation2 + $0x50] sm:$0xff] %vm233_vm1, %v2869_v55 }
  0x37   : > { %356 = vrot.lane.b32.xlu1 %v2679_v13, %s2567_s30  ;;  %354 = vrot.lane.b32.xlu0 %v2682_v14, %s2567_s30  ;;  %243 = vst.msk [vmem:[#allocation2 + $0x48] sm:$0xff] %vm233_vm1, %v2872_v56 }
  0x38   : > { %358 = vrot.lane.b32.xlu2 %v2685_v15, %s2567_s30  ;;  %4001 = vst [vmem:[#allocation14_spill] sm:$0xff] %v2879_v58 }
  0x39   : > { %4002 = vst [vmem:[#allocation15_spill] sm:$0xff] %v2882_v59 }
  0x3a   : > { %4003 = vst [vmem:[#allocation16_spill] sm:$0xff] %v2886_v60 }
  0x3b   : > { %248 = vst.msk [vmem:[#allocation2 + $0x70] sm:$0xff] %vm233_vm1, %v2893_v61 }
  0x3c   : > { %4005 = vst [vmem:[#allocation18_spill] sm:$0xff] %v2911_v35 }
  0x3d   : > { %247 = vst.msk [vmem:[#allocation2 + $0x68] sm:$0xff] %vm233_vm1, %v2901_v0 }
  0x3e   : > { %246 = vst.msk [vmem:[#allocation2 + $0x60] sm:$0xff] %vm233_vm1, %v2905_v5 }
  0x3f   : > { %362 = vrot.lane.b32.xlu1 %v2694_v16, %s2567_s30  ;;  %360 = vrot.lane.b32.xlu0 %v2697_v17, %s2567_s30  ;;  %251 = vst.msk [vmem:[#allocation2 + $0x88] sm:$0xff] %vm233_vm1, %v2926_v42 }
  0x40   : > { %364 = vrot.lane.b32.xlu2 %v2700_v18, %s2567_s30 }
  0x47   : > { %368 = vrot.lane.b32.xlu1 %v2709_v19, %s2567_s30  ;;  %366 = vrot.lane.b32.xlu0 %v2712_v20, %s2567_s30 }
  0x48   : > { %370 = vrot.lane.b32.xlu2 %v2715_v21, %s2567_s30 }
  0x4f   : > { %374 = vrot.lane.b32.xlu1 %v2724_v22, %s2567_s30  ;;  %372 = vrot.lane.b32.xlu0 %v2727_v23, %s2567_s30 }
  0x50   : > { %376 = vrot.lane.b32.xlu2 %v2730_v24, %s2567_s30 }
  0x57   : > { %380 = vrot.lane.b32.xlu1 %v2739_v25, %s2567_s30  ;;  %378 = vrot.lane.b32.xlu0 %v2742_v26, %s2567_s30 }
  0x58   : > { %382 = vrot.lane.b32.xlu2 %v2745_v27, %s2567_s30 }
  0x5f   : > { %386 = vrot.lane.b32.xlu1 %v2754_v28, %s2567_s30  ;;  %384 = vrot.lane.b32.xlu0 %v2757_v29, %s2567_s30 }
  0x60   : > { %388 = vrot.lane.b32.xlu2 %v2760_v30, %s2567_s30  ;;  %v3095_v30 = vld [vmem:[%s2616_s25 + $0x168] sm:$0xff] }
  0x61   : > { %264 = vst.msk [vmem:[#allocation2 + $0xf0] sm:$0xff] %vm233_vm1, %v3095_v30 }
  0x67   : > { %392 = vrot.lane.b32.xlu1 %v2769_v31, %s2567_s30  ;;  %390 = vrot.lane.b32.xlu0 %v2772_v32, %s2567_s30  ;;  %v490_v32 = vld [vmem:[%s2616_s25 + $0x172] sm:$0xff] }
  0x68   : > { %523 = vrot.lane.b32.xlu2 %v459_v33, %s2568_s5  ;;  %v2908_v33 = vld [vmem:[%s2616_s25 + $0xaa] sm:$0xff] }
  0x69   : > { %4004 = vst [vmem:[#allocation17_spill] sm:$0xff] %v2908_v33 }
  0x6f   : > { %527 = vrot.lane.b32.xlu1 %v2793_v37, %s2568_s5  ;;  %525 = vrot.lane.b32.xlu0 %v460_v38, %s2568_s5  ;;  %v2917_v38 = vld [vmem:[%s2616_s25 + $0xb2] sm:$0xff] }
  0x70   : > { %529 = vrot.lane.b32.xlu2 %v2797_v39, %s2568_s5  ;;  %4006 = vst [vmem:[#allocation19_spill] sm:$0xff] %v2917_v38  ;;  %v3066_v39 = vld [vmem:[%s2616_s25 + $0x150] sm:$0xff] }
  0x71   : > { %v3076_v37 = vld [vmem:[%s2616_s25 + $0x152] sm:$0xff]  ;;  %262 = vst.msk [vmem:[#allocation2 + $0xe0] sm:$0xff] %vm233_vm1, %v3066_v39 }
  0x72   : > { %v339_v43 = vpop.permute.xlu2 %338 }
  0x73   : > { %431 = vst.msk [vmem:[#allocation2 + $0x20] sm:$0xff] %vm426_vm2, %v339_v43 }
  0x77   : > { %533 = vrot.lane.b32.xlu1 %v2817_v44, %s2568_s5  ;;  %531 = vrot.lane.b32.xlu0 %v2820_v45, %s2568_s5  ;;  %v3043_v44 = vld [vmem:[%s2616_s25 + $0x12a] sm:$0xff]  ;;  %v3070_v45 = vld [vmem:[%s2616_s25 + $0x140] sm:$0xff] }
  0x78   : > { %535 = vrot.lane.b32.xlu2 %v2824_v46, %s2568_s5  ;;  %v3033_v46 = vld [vmem:[%s2616_s25 + $0x128] sm:$0xff]  ;;  %4017 = vst [vmem:[#allocation30_spill] sm:$0xff] %v3043_v44 }
  0x79   : > { %259 = vst.msk [vmem:[#allocation2 + $0xc8] sm:$0xff] %vm233_vm1, %v3033_v46 }
  0x7a   : > { %v341_v50 = vpop.permute.xlu2 %340  ;;  %261 = vst.msk [vmem:[#allocation2 + $0xd8] sm:$0xff] %vm233_vm1, %v3070_v45 }
  0x7b   : > { %432 = vst.msk [vmem:[#allocation2 + $0x28] sm:$0xff] %vm426_vm2, %v341_v50 }
  0x7f   : > { %539 = vrot.lane.b32.xlu1 %v2848_v51, %s2568_s5  ;;  %537 = vrot.lane.b32.xlu0 %v2851_v52, %s2568_s5  ;;  %v3010_v51 = vld [vmem:[%s2616_s25 + $0x10a] sm:$0xff]  ;;  %v3040_v52 = vld [vmem:[%s2616_s25 + $0x13a] sm:$0xff] }
  0x80   : > { %541 = vrot.lane.b32.xlu2 %v2855_v53, %s2568_s5  ;;  %v3000_v53 = vld [vmem:[%s2616_s25 + $0x108] sm:$0xff]  ;;  %4014 = vst [vmem:[#allocation27_spill] sm:$0xff] %v3010_v51 }
  0x81   : > { %256 = vst.msk [vmem:[#allocation2 + $0xb0] sm:$0xff] %vm233_vm1, %v3000_v53 }
  0x82   : > { %v347_v57 = vpop.permute.xlu2 %346  ;;  %4016 = vst [vmem:[#allocation29_spill] sm:$0xff] %v3040_v52 }
  0x83   : > { %435 = vst.msk [vmem:[#allocation2 + $0x40] sm:$0xff] %vm426_vm2, %v347_v57  ;;  %v2934_v57 = vld [vmem:[%s2616_s25 + $0xc0] sm:$0xff] }
  0x84   : > { %250 = vst.msk [vmem:[#allocation2 + $0x80] sm:$0xff] %vm233_vm1, %v2934_v57 }
  0x87   : > { %545 = vrot.lane.b32.xlu1 %v2879_v58, %s2568_s5  ;;  %543 = vrot.lane.b32.xlu0 %v2882_v59, %s2568_s5  ;;  %v2977_v58 = vld [vmem:[%s2616_s25 + $0xe2] sm:$0xff]  ;;  %v3007_v59 = vld [vmem:[%s2616_s25 + $0x112] sm:$0xff] }
  0x88   : > { %547 = vrot.lane.b32.xlu2 %v2886_v60, %s2568_s5  ;;  %v2967_v60 = vld [vmem:[%s2616_s25 + $0xe0] sm:$0xff]  ;;  %4011 = vst [vmem:[#allocation24_spill] sm:$0xff] %v2977_v58 }
  0x89   : > { %v335_v62 = vpop.permute.xlu1 %334  ;;  %v331_v63 = vpop.permute.xlu0 %330  ;;  %253 = vst.msk [vmem:[#allocation2 + $0x98] sm:$0xff] %vm233_vm1, %v2967_v60 }
  0x8a   : > { %429 = vst.msk [vmem:[#allocation2 + $0x10] sm:$0xff] %vm426_vm2, %v335_v62  ;;  %v353_v2 = vpop.permute.xlu2 %352 }
  0x8b   : > { %427 = vst.msk [vmem:[#allocation2] sm:$0xff] %vm426_vm2, %v331_v63  ;;  %v2938_v63 = vld [vmem:[%s2616_s25 + $0xb0] sm:$0xff] }
  0x8c   : > { %438 = vst.msk [vmem:[#allocation2 + $0x58] sm:$0xff] %vm426_vm2, %v353_v2  ;;  %v2941_v2 = vld [vmem:[%s2616_s25 + $0xca] sm:$0xff] }
  0x8d   : > { %4007 = vst [vmem:[#allocation20_spill] sm:$0xff] %v2941_v2 }
  0x8e   : > { %249 = vst.msk [vmem:[#allocation2 + $0x78] sm:$0xff] %vm233_vm1, %v2938_v63 }
  0x8f   : > { %551 = vrot.lane.b32.xlu1 %v2908_v33, %s2568_s5  ;;  %549 = vrot.lane.b32.xlu0 %v2911_v35, %s2568_s5  ;;  %v2944_v33 = vld [vmem:[%s2616_s25 + $0xc2] sm:$0xff]  ;;  %v2974_v35 = vld [vmem:[%s2616_s25 + $0xf2] sm:$0xff]  ;;  %4013 = vst [vmem:[#allocation26_spill] sm:$0xff] %v3007_v59 }
  0x90   : > { %553 = vrot.lane.b32.xlu2 %v2917_v38, %s2568_s5  ;;  %4008 = vst [vmem:[#allocation21_spill] sm:$0xff] %v2944_v33 }
  0x91   : > { %v337_v43 = vpop.permute.xlu1 %336  ;;  %v333_v50 = vpop.permute.xlu0 %332  ;;  %4010 = vst [vmem:[#allocation23_spill] sm:$0xff] %v2974_v35 }
  0x92   : > { %430 = vst.msk [vmem:[#allocation2 + $0x18] sm:$0xff] %vm426_vm2, %v337_v43  ;;  %v359_v62 = vpop.permute.xlu2 %358  ;;  %v2950_v43 = vld [vmem:[%s2616_s25 + $0xda] sm:$0xff] }
  0x93   : > { %428 = vst.msk [vmem:[#allocation2 + $0x8] sm:$0xff] %vm426_vm2, %v333_v50  ;;  %v2959_v50 = vld [vmem:[%s2616_s25 + $0xf0] sm:$0xff] }
  0x94   : > { %441 = vst.msk [vmem:[#allocation2 + $0x70] sm:$0xff] %vm426_vm2, %v359_v62 }
  0x95   : > { %4009 = vst [vmem:[#allocation22_spill] sm:$0xff] %v2950_v43 }
  0x96   : > { %254 = vst.msk [vmem:[#allocation2 + $0xa0] sm:$0xff] %vm233_vm1, %v2959_v50 }
  0x97   : > { %557 = vrot.lane.b32.xlu1 %v2941_v2, %s2568_s5  ;;  %555 = vrot.lane.b32.xlu0 %v2944_v33, %s2568_s5  ;;  %v2971_v33 = vld [vmem:[%s2616_s25 + $0xd8] sm:$0xff] }
  0x98   : > { %559 = vrot.lane.b32.xlu2 %v2950_v43, %s2568_s5  ;;  %252 = vst.msk [vmem:[#allocation2 + $0x90] sm:$0xff] %vm233_vm1, %v2971_v33 }
  0x99   : > { %v345_v62 = vpop.permute.xlu1 %344  ;;  %v343_v38 = vpop.permute.xlu0 %342 }
  0x9a   : > { %434 = vst.msk [vmem:[#allocation2 + $0x38] sm:$0xff] %vm426_vm2, %v345_v62  ;;  %v365_v2 = vpop.permute.xlu2 %364  ;;  %v2983_v62 = vld [vmem:[%s2616_s25 + $0xfa] sm:$0xff] }
  0x9b   : > { %433 = vst.msk [vmem:[#allocation2 + $0x30] sm:$0xff] %vm426_vm2, %v343_v38  ;;  %v2992_v38 = vld [vmem:[%s2616_s25 + $0x110] sm:$0xff] }
  0x9c   : > { %444 = vst.msk [vmem:[#allocation2 + $0x88] sm:$0xff] %vm426_vm2, %v365_v2 }
  0x9d   : > { %4012 = vst [vmem:[#allocation25_spill] sm:$0xff] %v2983_v62 }
  0x9e   : > { %257 = vst.msk [vmem:[#allocation2 + $0xb8] sm:$0xff] %vm233_vm1, %v2992_v38 }
  0x9f   : > { %563 = vrot.lane.b32.xlu1 %v2974_v35, %s2568_s5  ;;  %561 = vrot.lane.b32.xlu0 %v2977_v58, %s2568_s5  ;;  %v3004_v58 = vld [vmem:[%s2616_s25 + $0xf8] sm:$0xff] }
  0xa0   : > { %565 = vrot.lane.b32.xlu2 %v2983_v62, %s2568_s5  ;;  %255 = vst.msk [vmem:[#allocation2 + $0xa8] sm:$0xff] %vm233_vm1, %v3004_v58 }
  0xa1   : > { %v351_v2 = vpop.permute.xlu1 %350  ;;  %v349_v43 = vpop.permute.xlu0 %348 }
  0xa2   : > { %437 = vst.msk [vmem:[#allocation2 + $0x50] sm:$0xff] %vm426_vm2, %v351_v2  ;;  %v371_v35 = vpop.permute.xlu2 %370  ;;  %v3016_v2 = vld [vmem:[%s2616_s25 + $0x122] sm:$0xff] }
  0xa3   : > { %436 = vst.msk [vmem:[#allocation2 + $0x48] sm:$0xff] %vm426_vm2, %v349_v43  ;;  %v3025_v43 = vld [vmem:[%s2616_s25 + $0x138] sm:$0xff] }
  0xa4   : > { %447 = vst.msk [vmem:[#allocation2 + $0xa0] sm:$0xff] %vm426_vm2, %v371_v35 }
  0xa5   : > { %4015 = vst [vmem:[#allocation28_spill] sm:$0xff] %v3016_v2 }
  0xa6   : > { %260 = vst.msk [vmem:[#allocation2 + $0xd0] sm:$0xff] %vm233_vm1, %v3025_v43 }
  0xa7   : > { %569 = vrot.lane.b32.xlu1 %v3007_v59, %s2568_s5  ;;  %567 = vrot.lane.b32.xlu0 %v3010_v51, %s2568_s5  ;;  %v3037_v51 = vld [vmem:[%s2616_s25 + $0x120] sm:$0xff] }
  0xa8   : > { %571 = vrot.lane.b32.xlu2 %v3016_v2, %s2568_s5  ;;  %258 = vst.msk [vmem:[#allocation2 + $0xc0] sm:$0xff] %vm233_vm1, %v3037_v51 }
  0xa9   : > { %v357_v35 = vpop.permute.xlu1 %356  ;;  %v355_v62 = vpop.permute.xlu0 %354 }
  0xaa   : > { %440 = vst.msk [vmem:[#allocation2 + $0x68] sm:$0xff] %vm426_vm2, %v357_v35  ;;  %v377_v59 = vpop.permute.xlu2 %376  ;;  %v3049_v35 = vld [vmem:[%s2616_s25 + $0x142] sm:$0xff] }
  0xab   : > { %439 = vst.msk [vmem:[#allocation2 + $0x60] sm:$0xff] %vm426_vm2, %v355_v62  ;;  %v3058_v62 = vld [vmem:[%s2616_s25 + $0x158] sm:$0xff] }
  0xac   : > { %450 = vst.msk [vmem:[#allocation2 + $0xb8] sm:$0xff] %vm426_vm2, %v377_v59 }
  0xad   : > { %4018 = vst [vmem:[#allocation31_spill] sm:$0xff] %v3049_v35 }
  0xae   : > { %263 = vst.msk [vmem:[#allocation2 + $0xe8] sm:$0xff] %vm233_vm1, %v3058_v62 }
  0xaf   : > { %575 = vrot.lane.b32.xlu1 %v3040_v52, %s2568_s5  ;;  %573 = vrot.lane.b32.xlu0 %v3043_v44, %s2568_s5  ;;  %v3073_v44 = vld [vmem:[%s2616_s25 + $0x15a] sm:$0xff] }
  0xb0   : > { %577 = vrot.lane.b32.xlu2 %v3049_v35, %s2568_s5 }
  0xb1   : > { %v363_v59 = vpop.permute.xlu1 %362  ;;  %v361_v2 = vpop.permute.xlu0 %360 }
  0xb2   : > { %443 = vst.msk [vmem:[#allocation2 + $0x80] sm:$0xff] %vm426_vm2, %v363_v59  ;;  %v383_v52 = vpop.permute.xlu2 %382  ;;  %v489_v59 = vld [vmem:[%s2616_s25 + $0x16a] sm:$0xff] }
  0xb3   : > { %442 = vst.msk [vmem:[#allocation2 + $0x78] sm:$0xff] %vm426_vm2, %v361_v2 }
  0xb4   : > { %453 = vst.msk [vmem:[#allocation2 + $0xd0] sm:$0xff] %vm426_vm2, %v383_v52  ;;  %v3091_v52 = vld [vmem:[%s2616_s25 + $0x170] sm:$0xff] }
  0xb5   : > { %265 = vst.msk [vmem:[#allocation2 + $0xf8] sm:$0xff] %vm233_vm1, %v3091_v52 }
  0xb7   : > { %581 = vrot.lane.b32.xlu1 %v3073_v44, %s2568_s5  ;;  %579 = vrot.lane.b32.xlu0 %v3076_v37, %s2568_s5 }
  0xb8   : > { %583 = vrot.lane.b32.xlu2 %v489_v59, %s2568_s5 }
  0xb9   : > { %v369_v2 = vpop.permute.xlu1 %368  ;;  %v367_v35 = vpop.permute.xlu0 %366 }
  0xba   : > { %446 = vst.msk [vmem:[#allocation2 + $0x98] sm:$0xff] %vm426_vm2, %v369_v2  ;;  %v389_v31 = vpop.permute.xlu2 %388 }
  0xbb   : > { %445 = vst.msk [vmem:[#allocation2 + $0x90] sm:$0xff] %vm426_vm2, %v367_v35 }
  0xbc   : > { %456 = vst.msk [vmem:[#allocation2 + $0xe8] sm:$0xff] %vm426_vm2, %v389_v31 }
  0xbf   : > { %717 = vrot.lane.b32.xlu1 %v2787_v36, %s2569_s6  ;;  %585 = vrot.lane.b32.xlu0 %v490_v32, %s2568_s5 }
  0xc0   : > { %719 = vrot.lane.b32.xlu2 %v2810_v41, %s2569_s6 }
  0xc1   : > { %v375_v59 = vpop.permute.xlu1 %374  ;;  %v373_v35 = vpop.permute.xlu0 %372 }
  0xc2   : > { %449 = vst.msk [vmem:[#allocation2 + $0xb0] sm:$0xff] %vm426_vm2, %v375_v59  ;;  %v524_v31 = vpop.permute.xlu2 %523 }
  0xc3   : > { %448 = vst.msk [vmem:[#allocation2 + $0xa8] sm:$0xff] %vm426_vm2, %v373_v35 }
  0xc4   : > { %620 = vst.msk [vmem:[#allocation2] sm:$0xff] %vm619_vm3, %v524_v31 }
  0xc7   : > { %723 = vrot.lane.b32.xlu1 %v2803_v40, %s2569_s6  ;;  %721 = vrot.lane.b32.xlu0 %v2780_v34, %s2569_s6 }
  0xc8   : > { %725 = vrot.lane.b32.xlu2 %v2841_v49, %s2569_s6 }
  0xc9   : > { %v381_v32 = vpop.permute.xlu1 %380  ;;  %v379_v36 = vpop.permute.xlu0 %378 }
  0xca   : > { %452 = vst.msk [vmem:[#allocation2 + $0xc8] sm:$0xff] %vm426_vm2, %v381_v32  ;;  %v530_v41 = vpop.permute.xlu2 %529 }
  0xcb   : > { %451 = vst.msk [vmem:[#allocation2 + $0xc0] sm:$0xff] %vm426_vm2, %v379_v36 }
  0xcc   : > { %623 = vst.msk [vmem:[#allocation2 + $0x18] sm:$0xff] %vm619_vm3, %v530_v41 }
  0xcf   : > { %729 = vrot.lane.b32.xlu1 %v2831_v47, %s2569_s6  ;;  %727 = vrot.lane.b32.xlu0 %v2838_v48, %s2569_s6 }
  0xd0   : > { %731 = vrot.lane.b32.xlu2 %v2872_v56, %s2569_s6 }
  0xd1   : > { %v387_v2 = vpop.permute.xlu1 %386  ;;  %v385_v34 = vpop.permute.xlu0 %384 }
  0xd2   : > { %455 = vst.msk [vmem:[#allocation2 + $0xe0] sm:$0xff] %vm426_vm2, %v387_v2  ;;  %v536_v59 = vpop.permute.xlu2 %535  ;;  %v2340_v2 = vld [vmem:[%s2616_s25 + $0x180] sm:$0xff] }
  0xd3   : > { %454 = vst.msk [vmem:[#allocation2 + $0xd8] sm:$0xff] %vm426_vm2, %v385_v34  ;;  %v2341_v34 = vld [vmem:[%s2616_s25 + $0x188] sm:$0xff] }
  0xd4   : > { %626 = vst.msk [vmem:[#allocation2 + $0x30] sm:$0xff] %vm619_vm3, %v536_v59 }
  0xd7   : > { %735 = vrot.lane.b32.xlu1 %v2862_v54, %s2569_s6  ;;  %733 = vrot.lane.b32.xlu0 %v2869_v55, %s2569_s6 }
  0xd8   : > { %737 = vrot.lane.b32.xlu2 %v2905_v5, %s2569_s6 }
  0xd9   : > { %v393_v47 = vpop.permute.xlu1 %392  ;;  %v391_v35 = vpop.permute.xlu0 %390 }
  0xda   : > { %458 = vst.msk [vmem:[#allocation2 + $0xf8] sm:$0xff] %vm426_vm2, %v393_v47  ;;  %v542_v56 = vpop.permute.xlu2 %541 }
  0xdb   : > { %457 = vst.msk [vmem:[#allocation2 + $0xf0] sm:$0xff] %vm426_vm2, %v391_v35  ;;  %v4019_v35 = vld [vmem:[#allocation5_spill] sm:$0xff] }
  0xdc   : > { %629 = vst.msk [vmem:[#allocation2 + $0x48] sm:$0xff] %vm619_vm3, %v542_v56 }
  0xdf   : > { %741 = vrot.lane.b32.xlu1 %v2893_v61, %s2569_s6  ;;  %739 = vrot.lane.b32.xlu0 %v2901_v0, %s2569_s6 }
  0xe0   : > { %743 = vrot.lane.b32.xlu2 %v2938_v63, %s2569_s6 }
  0xe1   : > { %v528_v54 = vpop.permute.xlu1 %527  ;;  %v526_v55 = vpop.permute.xlu0 %525 }
  0xe2   : > { %622 = vst.msk [vmem:[#allocation2 + $0x10] sm:$0xff] %vm619_vm3, %v528_v54  ;;  %v548_v31 = vpop.permute.xlu2 %547  ;;  %v4021_v54 = vld [vmem:[#allocation4_spill] sm:$0xff] }
  0xe3   : > { %621 = vst.msk [vmem:[#allocation2 + $0x8] sm:$0xff] %vm619_vm3, %v526_v55  ;;  %v2373_v55 = vld [vmem:[%s2616_s25 + $0x189] sm:$0xff] }
  0xe4   : > { %632 = vst.msk [vmem:[#allocation2 + $0x60] sm:$0xff] %vm619_vm3, %v548_v31  ;;  %v2372_v31 = vld [vmem:[%s2616_s25 + $0x181] sm:$0xff] }
  0xe7   : > { %747 = vrot.lane.b32.xlu1 %v2926_v42, %s2569_s6  ;;  %745 = vrot.lane.b32.xlu0 %v2934_v57, %s2569_s6 }
  0xe8   : > { %749 = vrot.lane.b32.xlu2 %v2971_v33, %s2569_s6 }
  0xe9   : > { %v534_v61 = vpop.permute.xlu1 %533  ;;  %v532_v32 = vpop.permute.xlu0 %531 }
  0xea   : > { %625 = vst.msk [vmem:[#allocation2 + $0x28] sm:$0xff] %vm619_vm3, %v534_v61  ;;  %v554_v63 = vpop.permute.xlu2 %553 }
  0xeb   : > { %624 = vst.msk [vmem:[#allocation2 + $0x20] sm:$0xff] %vm619_vm3, %v532_v32 }
  0xec   : > { %635 = vst.msk [vmem:[#allocation2 + $0x78] sm:$0xff] %vm619_vm3, %v554_v63  ;;  %v4022_v63 = vld [vmem:[#allocation6_spill] sm:$0xff] }
  0xef   : > { %753 = vrot.lane.b32.xlu1 %v2959_v50, %s2569_s6  ;;  %751 = vrot.lane.b32.xlu0 %v2967_v60, %s2569_s6 }
  0xf0   : > { %755 = vrot.lane.b32.xlu2 %v3004_v58, %s2569_s6 }
  0xf1   : > { %v540_v42 = vpop.permute.xlu1 %539  ;;  %v538_v57 = vpop.permute.xlu0 %537 }
  0xf2   : > { %628 = vst.msk [vmem:[#allocation2 + $0x40] sm:$0xff] %vm619_vm3, %v540_v42  ;;  %v560_v33 = vpop.permute.xlu2 %559 }
  0xf3   : > { %627 = vst.msk [vmem:[#allocation2 + $0x38] sm:$0xff] %vm619_vm3, %v538_v57  ;;  %v4023_v57 = vld [vmem:[#allocation9_spill] sm:$0xff] }
  0xf4   : > { %638 = vst.msk [vmem:[#allocation2 + $0x90] sm:$0xff] %vm619_vm3, %v560_v33  ;;  %v4024_v33 = vld [vmem:[#allocation7_spill] sm:$0xff] }
  0xf7   : > { %759 = vrot.lane.b32.xlu1 %v2992_v38, %s2569_s6  ;;  %757 = vrot.lane.b32.xlu0 %v3000_v53, %s2569_s6 }
  0xf8   : > { %761 = vrot.lane.b32.xlu2 %v3037_v51, %s2569_s6 }
  0xf9   : > { %v546_v36 = vpop.permute.xlu1 %545  ;;  %v544_v60 = vpop.permute.xlu0 %543 }
  0xfa   : > { %631 = vst.msk [vmem:[#allocation2 + $0x58] sm:$0xff] %vm619_vm3, %v546_v36  ;;  %v566_v41 = vpop.permute.xlu2 %565 }
  0xfb   : > { %630 = vst.msk [vmem:[#allocation2 + $0x50] sm:$0xff] %vm619_vm3, %v544_v60 }
  0xfc   : > { %641 = vst.msk [vmem:[#allocation2 + $0xa8] sm:$0xff] %vm619_vm3, %v566_v41  ;;  %v4025_v41 = vld [vmem:[#allocation8_spill] sm:$0xff] }
  0xff   : > { %765 = vrot.lane.b32.xlu1 %v3025_v43, %s2569_s6  ;;  %763 = vrot.lane.b32.xlu0 %v3033_v46, %s2569_s6 }
 0x100   : > { %767 = vrot.lane.b32.xlu2 %v3070_v45, %s2569_s6 }
 0x101   : > { %v552_v53 = vpop.permute.xlu1 %551  ;;  %v550_v38 = vpop.permute.xlu0 %549 }
 0x102   : > { %634 = vst.msk [vmem:[#allocation2 + $0x70] sm:$0xff] %vm619_vm3, %v552_v53  ;;  %v572_v51 = vpop.permute.xlu2 %571 }
 0x103   : > { %633 = vst.msk [vmem:[#allocation2 + $0x68] sm:$0xff] %vm619_vm3, %v550_v38  ;;  %v4026_v38 = vld [vmem:[#allocation12_spill] sm:$0xff] }
 0x104   : > { %644 = vst.msk [vmem:[#allocation2 + $0xc0] sm:$0xff] %vm619_vm3, %v572_v51  ;;  %v4027_v51 = vld [vmem:[#allocation10_spill] sm:$0xff] }
 0x107   : > { %771 = vrot.lane.b32.xlu1 %v3058_v62, %s2569_s6  ;;  %769 = vrot.lane.b32.xlu0 %v3066_v39, %s2569_s6 }
 0x108   : > { %773 = vrot.lane.b32.xlu2 %v3095_v30, %s2569_s6 }
 0x109   : > { %v558_v46 = vpop.permute.xlu1 %557  ;;  %v556_v43 = vpop.permute.xlu0 %555 }
 0x10a   : > { %637 = vst.msk [vmem:[#allocation2 + $0x88] sm:$0xff] %vm619_vm3, %v558_v46  ;;  %v578_v45 = vpop.permute.xlu2 %577 }
 0x10b   : > { %636 = vst.msk [vmem:[#allocation2 + $0x80] sm:$0xff] %vm619_vm3, %v556_v43 }
 0x10c   : > { %647 = vst.msk [vmem:[#allocation2 + $0xd8] sm:$0xff] %vm619_vm3, %v578_v45  ;;  %v4028_v45 = vld [vmem:[#allocation11_spill] sm:$0xff] }
 0x10f   : > { %777 = vrot.lane.b32.xlu1 %v2340_v2, %s2569_s6  ;;  %775 = vrot.lane.b32.xlu0 %v3091_v52, %s2569_s6 }
 0x110   : > { %779 = vrot.lane.b32.xlu2 %v2341_v34, %s2569_s6  ;;  %v4029_v34 = vld [vmem:[#allocation15_spill] sm:$0xff] }
 0x111   : > { %v564_v39 = vpop.permute.xlu1 %563  ;;  %v562_v62 = vpop.permute.xlu0 %561 }
 0x112   : > { %640 = vst.msk [vmem:[#allocation2 + $0xa0] sm:$0xff] %vm619_vm3, %v564_v39  ;;  %v584_v30 = vpop.permute.xlu2 %583  ;;  %v4030_v39 = vld [vmem:[#allocation13_spill] sm:$0xff] }
 0x113   : > { %639 = vst.msk [vmem:[#allocation2 + $0x98] sm:$0xff] %vm619_vm3, %v562_v62 }
 0x114   : > { %650 = vst.msk [vmem:[#allocation2 + $0xf0] sm:$0xff] %vm619_vm3, %v584_v30 }
 0x117   : > { %912 = vrot.lane.b32.xlu1 %v2637_v4, %s2570_s7  ;;  %910 = vrot.lane.b32.xlu0 %v2625_v1, %s2570_s7 }
 0x118   : > { %914 = vrot.lane.b32.xlu2 %v2632_v3, %s2570_s7 }
 0x119   : > { %v570_v59 = vpop.permute.xlu1 %569  ;;  %v568_v52 = vpop.permute.xlu0 %567 }
 0x11a   : > { %643 = vst.msk [vmem:[#allocation2 + $0xb8] sm:$0xff] %vm619_vm3, %v570_v59  ;;  %v720_v47 = vpop.permute.xlu2 %719  ;;  %v4031_v59 = vld [vmem:[#allocation14_spill] sm:$0xff] }
 0x11b   : > { %642 = vst.msk [vmem:[#allocation2 + $0xb0] sm:$0xff] %vm619_vm3, %v568_v52 }
 0x11c   : > { %815 = vst.msk [vmem:[#allocation2 + $0x8] sm:$0xff] %vm813_vm4, %v720_v47  ;;  %v4032_v47 = vld [vmem:[#allocation18_spill] sm:$0xff] }
 0x11f   : > { %918 = vrot.lane.b32.xlu1 %v2652_v8, %s2570_s7  ;;  %916 = vrot.lane.b32.xlu0 %v2641_v6, %s2570_s7 }
 0x120   : > { %920 = vrot.lane.b32.xlu2 %v2649_v7, %s2570_s7 }
 0x121   : > { %v576_v1 = vpop.permute.xlu1 %575  ;;  %v574_v4 = vpop.permute.xlu0 %573 }
 0x122   : > { %646 = vst.msk [vmem:[#allocation2 + $0xd0] sm:$0xff] %vm619_vm3, %v576_v1  ;;  %v726_v3 = vpop.permute.xlu2 %725  ;;  %v4033_v1 = vld [vmem:[#allocation16_spill] sm:$0xff] }
 0x123   : > { %645 = vst.msk [vmem:[#allocation2 + $0xc8] sm:$0xff] %vm619_vm3, %v574_v4 }
 0x124   : > { %818 = vst.msk [vmem:[#allocation2 + $0x20] sm:$0xff] %vm813_vm4, %v726_v3 }
 0x127   : > { %924 = vrot.lane.b32.xlu1 %v2667_v11, %s2570_s7  ;;  %922 = vrot.lane.b32.xlu0 %v2655_v9, %s2570_s7 }
 0x128   : > { %926 = vrot.lane.b32.xlu2 %v2664_v10, %s2570_s7 }
 0x129   : > { %v582_v8 = vpop.permute.xlu1 %581  ;;  %v580_v6 = vpop.permute.xlu0 %579 }
 0x12a   : > { %649 = vst.msk [vmem:[#allocation2 + $0xe8] sm:$0xff] %vm619_vm3, %v582_v8  ;;  %v732_v7 = vpop.permute.xlu2 %731  ;;  %v4034_v8 = vld [vmem:[#allocation17_spill] sm:$0xff] }
 0x12b   : > { %648 = vst.msk [vmem:[#allocation2 + $0xe0] sm:$0xff] %vm619_vm3, %v580_v6 }
 0x12c   : > { %821 = vst.msk [vmem:[#allocation2 + $0x38] sm:$0xff] %vm813_vm4, %v732_v7  ;;  %v4035_v7 = vld [vmem:[#allocation21_spill] sm:$0xff] }
 0x12f   : > { %930 = vrot.lane.b32.xlu1 %v2682_v14, %s2570_s7  ;;  %928 = vrot.lane.b32.xlu0 %v2670_v12, %s2570_s7 }
 0x130   : > { %932 = vrot.lane.b32.xlu2 %v2679_v13, %s2570_s7 }
 0x131   : > { %v718_v11 = vpop.permute.xlu1 %717  ;;  %v586_v9 = vpop.permute.xlu0 %585 }
 0x132   : > { %814 = vst.msk [vmem:[#allocation2] sm:$0xff] %vm813_vm4, %v718_v11  ;;  %v738_v10 = vpop.permute.xlu2 %737  ;;  %v4036_v11 = vld [vmem:[#allocation19_spill] sm:$0xff] }
 0x133   : > { %651 = vst.msk [vmem:[#allocation2 + $0xf8] sm:$0xff] %vm619_vm3, %v586_v9 }
 0x134   : > { %824 = vst.msk [vmem:[#allocation2 + $0x50] sm:$0xff] %vm813_vm4, %v738_v10 }
 0x137   : > { %936 = vrot.lane.b32.xlu1 %v2697_v17, %s2570_s7  ;;  %934 = vrot.lane.b32.xlu0 %v2685_v15, %s2570_s7 }
 0x138   : > { %938 = vrot.lane.b32.xlu2 %v2694_v16, %s2570_s7 }
 0x139   : > { %v724_v14 = vpop.permute.xlu1 %723  ;;  %v722_v12 = vpop.permute.xlu0 %721 }
 0x13a   : > { %817 = vst.msk [vmem:[#allocation2 + $0x18] sm:$0xff] %vm813_vm4, %v724_v14  ;;  %v744_v13 = vpop.permute.xlu2 %743  ;;  %v4037_v14 = vld [vmem:[#allocation20_spill] sm:$0xff] }
 0x13b   : > { %816 = vst.msk [vmem:[#allocation2 + $0x10] sm:$0xff] %vm813_vm4, %v722_v12 }
 0x13c   : > { %827 = vst.msk [vmem:[#allocation2 + $0x68] sm:$0xff] %vm813_vm4, %v744_v13  ;;  %v4038_v13 = vld [vmem:[#allocation24_spill] sm:$0xff] }
 0x13f   : > { %942 = vrot.lane.b32.xlu1 %v2712_v20, %s2570_s7  ;;  %940 = vrot.lane.b32.xlu0 %v2700_v18, %s2570_s7 }
 0x140   : > { %944 = vrot.lane.b32.xlu2 %v2709_v19, %s2570_s7 }
 0x141   : > { %v730_v17 = vpop.permute.xlu1 %729  ;;  %v728_v15 = vpop.permute.xlu0 %727 }
 0x142   : > { %820 = vst.msk [vmem:[#allocation2 + $0x30] sm:$0xff] %vm813_vm4, %v730_v17  ;;  %v750_v16 = vpop.permute.xlu2 %749  ;;  %v4039_v17 = vld [vmem:[#allocation22_spill] sm:$0xff] }
 0x143   : > { %819 = vst.msk [vmem:[#allocation2 + $0x28] sm:$0xff] %vm813_vm4, %v728_v15 }
 0x144   : > { %830 = vst.msk [vmem:[#allocation2 + $0x80] sm:$0xff] %vm813_vm4, %v750_v16 }
 0x147   : > { %948 = vrot.lane.b32.xlu1 %v2727_v23, %s2570_s7  ;;  %946 = vrot.lane.b32.xlu0 %v2715_v21, %s2570_s7 }
 0x148   : > { %950 = vrot.lane.b32.xlu2 %v2724_v22, %s2570_s7 }
 0x149   : > { %v736_v20 = vpop.permute.xlu1 %735  ;;  %v734_v18 = vpop.permute.xlu0 %733 }
 0x14a   : > { %823 = vst.msk [vmem:[#allocation2 + $0x48] sm:$0xff] %vm813_vm4, %v736_v20  ;;  %v756_v19 = vpop.permute.xlu2 %755  ;;  %v4040_v20 = vld [vmem:[#allocation23_spill] sm:$0xff] }
 0x14b   : > { %822 = vst.msk [vmem:[#allocation2 + $0x40] sm:$0xff] %vm813_vm4, %v734_v18 }
 0x14c   : > { %833 = vst.msk [vmem:[#allocation2 + $0x98] sm:$0xff] %vm813_vm4, %v756_v19  ;;  %v4041_v19 = vld [vmem:[#allocation27_spill] sm:$0xff] }
 0x14f   : > { %954 = vrot.lane.b32.xlu1 %v2742_v26, %s2570_s7  ;;  %952 = vrot.lane.b32.xlu0 %v2730_v24, %s2570_s7 }
 0x150   : > { %956 = vrot.lane.b32.xlu2 %v2739_v25, %s2570_s7 }
 0x151   : > { %v742_v23 = vpop.permute.xlu1 %741  ;;  %v740_v21 = vpop.permute.xlu0 %739 }
 0x152   : > { %826 = vst.msk [vmem:[#allocation2 + $0x60] sm:$0xff] %vm813_vm4, %v742_v23  ;;  %v762_v22 = vpop.permute.xlu2 %761  ;;  %v4042_v23 = vld [vmem:[#allocation25_spill] sm:$0xff] }
 0x153   : > { %825 = vst.msk [vmem:[#allocation2 + $0x58] sm:$0xff] %vm813_vm4, %v740_v21 }
 0x154   : > { %836 = vst.msk [vmem:[#allocation2 + $0xb0] sm:$0xff] %vm813_vm4, %v762_v22 }
 0x157   : > { %960 = vrot.lane.b32.xlu1 %v2757_v29, %s2570_s7  ;;  %958 = vrot.lane.b32.xlu0 %v2745_v27, %s2570_s7  ;;  %v4020_v29 = vld [vmem:[#allocation3_spill] sm:$0xff] }
 0x158   : > { %962 = vrot.lane.b32.xlu2 %v2754_v28, %s2570_s7 }
 0x159   : > { %v748_v24 = vpop.permute.xlu1 %747  ;;  %v746_v26 = vpop.permute.xlu0 %745 }
 0x15a   : > { %829 = vst.msk [vmem:[#allocation2 + $0x78] sm:$0xff] %vm813_vm4, %v748_v24  ;;  %v768_v25 = vpop.permute.xlu2 %767  ;;  %v4043_v24 = vld [vmem:[#allocation26_spill] sm:$0xff] }
 0x15b   : > { %828 = vst.msk [vmem:[#allocation2 + $0x70] sm:$0xff] %vm813_vm4, %v746_v26 }
 0x15c   : > { %839 = vst.msk [vmem:[#allocation2 + $0xc8] sm:$0xff] %vm813_vm4, %v768_v25  ;;  %v4044_v25 = vld [vmem:[#allocation30_spill] sm:$0xff] }
 0x15f   : > { %966 = vrot.lane.b32.xlu1 %v4019_v35, %s2570_s7  ;;  %964 = vrot.lane.b32.xlu0 %v4020_v29, %s2570_s7  ;;  %v4045_v35 = vld [vmem:[#allocation28_spill] sm:$0xff] }
 0x160   : > { %968 = vrot.lane.b32.xlu2 %v4021_v54, %s2570_s7 }
 0x161   : > { %v754_v27 = vpop.permute.xlu1 %753  ;;  %v752_v56 = vpop.permute.xlu0 %751 }
 0x162   : > { %832 = vst.msk [vmem:[#allocation2 + $0x90] sm:$0xff] %vm813_vm4, %v754_v27  ;;  %v774_v28 = vpop.permute.xlu2 %773 }
 0x163   : > { %831 = vst.msk [vmem:[#allocation2 + $0x88] sm:$0xff] %vm813_vm4, %v752_v56  ;;  %v4046_v56 = vld [vmem:[#allocation29_spill] sm:$0xff] }
 0x164   : > { %842 = vst.msk [vmem:[#allocation2 + $0xe0] sm:$0xff] %vm813_vm4, %v774_v28  ;;  %v4047_v28 = vld [vmem:[#allocation31_spill] sm:$0xff] }
 0x167   : > { %972 = vrot.lane.b32.xlu1 %v2373_v55, %s2570_s7  ;;  %970 = vrot.lane.b32.xlu0 %v2372_v31, %s2570_s7 }
 0x168   : > { %1103 = vrot.lane.b32.xlu2 %v4022_v63, %s2571_s8 }
 0x169   : > { %v760_v61 = vpop.permute.xlu1 %759  ;;  %v758_v32 = vpop.permute.xlu0 %757 }
 0x16a   : > { %835 = vst.msk [vmem:[#allocation2 + $0xa8] sm:$0xff] %vm813_vm4, %v760_v61  ;;  %v780_v42 = vpop.permute.xlu2 %779 }
 0x16b   : > { %834 = vst.msk [vmem:[#allocation2 + $0xa0] sm:$0xff] %vm813_vm4, %v758_v32  ;;  %v2406_v32 = vld [vmem:[%s2616_s25 + $0x30] sm:$0xff] }
 0x16c   : > { %845 = vst.msk [vmem:[#allocation2 + $0xf8] sm:$0xff] %vm813_vm4, %v780_v42 }
 0x16f   : > { %1107 = vrot.lane.b32.xlu1 %v4023_v57, %s2571_s8  ;;  %1105 = vrot.lane.b32.xlu0 %v4024_v33, %s2571_s8  ;;  %v2470_v57 = vld [vmem:[%s2616_s25 + $0x32] sm:$0xff] }
 0x170   : > { %1109 = vrot.lane.b32.xlu2 %v4025_v41, %s2571_s8  ;;  %v2439_v33 = vld [vmem:[%s2616_s25 + $0x39] sm:$0xff] }
 0x171   : > { %v766_v36 = vpop.permute.xlu1 %765  ;;  %v764_v60 = vpop.permute.xlu0 %763 }
 0x172   : > { %838 = vst.msk [vmem:[#allocation2 + $0xc0] sm:$0xff] %vm813_vm4, %v766_v36  ;;  %v915_v53 = vpop.permute.xlu2 %914  ;;  %v2471_v36 = vld [vmem:[%s2616_s25 + $0x3a] sm:$0xff] }
 0x173   : > { %837 = vst.msk [vmem:[#allocation2 + $0xb8] sm:$0xff] %vm813_vm4, %v764_v60 }
 0x174   : > { %1009 = vst.msk [vmem:[#allocation2 + $0x10] sm:$0xff] %vm1006_vm5, %v915_v53 }
 0x177   : > { %1113 = vrot.lane.b32.xlu1 %v4026_v38, %s2571_s8  ;;  %1111 = vrot.lane.b32.xlu0 %v4027_v51, %s2571_s8 }
 0x178   : > { %1115 = vrot.lane.b32.xlu2 %v4028_v45, %s2571_s8  ;;  %v2447_v45 = vld [vmem:[%s2616_s25 + $0x99] sm:$0xff] }
 0x179   : > { %v772_v46 = vpop.permute.xlu1 %771  ;;  %v770_v43 = vpop.permute.xlu0 %769 }
 0x17a   : > { %841 = vst.msk [vmem:[#allocation2 + $0xd8] sm:$0xff] %vm813_vm4, %v772_v46  ;;  %v921_v2 = vpop.permute.xlu2 %920  ;;  %v2440_v46 = vld [vmem:[%s2616_s25 + $0x49] sm:$0xff] }
 0x17b   : > { %840 = vst.msk [vmem:[#allocation2 + $0xd0] sm:$0xff] %vm813_vm4, %v770_v43 }
 0x17c   : > { %1012 = vst.msk [vmem:[#allocation2 + $0x28] sm:$0xff] %vm1006_vm5, %v921_v2  ;;  %v2446_v2 = vld [vmem:[%s2616_s25 + $0x91] sm:$0xff] }
 0x17f   : > { %1119 = vrot.lane.b32.xlu1 %v4029_v34, %s2571_s8  ;;  %1117 = vrot.lane.b32.xlu0 %v4030_v39, %s2571_s8  ;;  %v2472_v34 = vld [vmem:[%s2616_s25 + $0x4a] sm:$0xff] }
 0x180   : > { %1121 = vrot.lane.b32.xlu2 %v4031_v59, %s2571_s8  ;;  %v2473_v59 = vld [vmem:[%s2616_s25 + $0x52] sm:$0xff] }
 0x181   : > { %v778_v62 = vpop.permute.xlu1 %777  ;;  %v776_v30 = vpop.permute.xlu0 %775 }
 0x182   : > { %844 = vst.msk [vmem:[#allocation2 + $0xf0] sm:$0xff] %vm813_vm4, %v778_v62  ;;  %v927_v52 = vpop.permute.xlu2 %926 }
 0x183   : > { %843 = vst.msk [vmem:[#allocation2 + $0xe8] sm:$0xff] %vm813_vm4, %v776_v30  ;;  %v2478_v30 = vld [vmem:[%s2616_s25 + $0x92] sm:$0xff] }
 0x184   : > { %1015 = vst.msk [vmem:[#allocation2 + $0x40] sm:$0xff] %vm1006_vm5, %v927_v52  ;;  %v2479_v52 = vld [vmem:[%s2616_s25 + $0x9a] sm:$0xff] }
 0x187   : > { %1125 = vrot.lane.b32.xlu1 %v4032_v47, %s2571_s8  ;;  %1123 = vrot.lane.b32.xlu0 %v4033_v1, %s2571_s8 }
 0x188   : > { %1127 = vrot.lane.b32.xlu2 %v4034_v8, %s2571_s8 }
 0x189   : > { %v913_v4 = vpop.permute.xlu1 %912  ;;  %v911_v3 = vpop.permute.xlu0 %910 }
 0x18a   : > { %1008 = vst.msk [vmem:[#allocation2 + $0x8] sm:$0xff] %vm1006_vm5, %v913_v4  ;;  %v933_v6 = vpop.permute.xlu2 %932 }
 0x18b   : > { %1007 = vst.msk [vmem:[#allocation2] sm:$0xff] %vm1006_vm5, %v911_v3  ;;  %v2454_v3 = vld [vmem:[%s2616_s25 + $0xf1] sm:$0xff] }
 0x18c   : > { %1018 = vst.msk [vmem:[#allocation2 + $0x58] sm:$0xff] %vm1006_vm5, %v933_v6 }
 0x18f   : > { %1131 = vrot.lane.b32.xlu1 %v4035_v7, %s2571_s8  ;;  %1129 = vrot.lane.b32.xlu0 %v4036_v11, %s2571_s8  ;;  %v2486_v11 = vld [vmem:[%s2616_s25 + $0xf2] sm:$0xff] }
 0x190   : > { %1133 = vrot.lane.b32.xlu2 %v4037_v14, %s2571_s8 }
 0x191   : > { %v919_v9 = vpop.permute.xlu1 %918  ;;  %v917_v10 = vpop.permute.xlu0 %916 }
 0x192   : > { %1011 = vst.msk [vmem:[#allocation2 + $0x20] sm:$0xff] %vm1006_vm5, %v919_v9  ;;  %v939_v12 = vpop.permute.xlu2 %938  ;;  %v2455_v9 = vld [vmem:[%s2616_s25 + $0xf9] sm:$0xff] }
 0x193   : > { %1010 = vst.msk [vmem:[#allocation2 + $0x18] sm:$0xff] %vm1006_vm5, %v917_v10 }
 0x194   : > { %1021 = vst.msk [vmem:[#allocation2 + $0x70] sm:$0xff] %vm1006_vm5, %v939_v12  ;;  %v2411_v12 = vld [vmem:[%s2616_s25 + $0x68] sm:$0xff] }
 0x197   : > { %1137 = vrot.lane.b32.xlu1 %v4038_v13, %s2571_s8  ;;  %1135 = vrot.lane.b32.xlu0 %v4039_v17, %s2571_s8  ;;  %v2410_v13 = vld [vmem:[%s2616_s25 + $0x60] sm:$0xff]  ;;  %v2416_v17 = vld [vmem:[%s2616_s25 + $0xa8] sm:$0xff] }
 0x198   : > { %1139 = vrot.lane.b32.xlu2 %v4040_v20, %s2571_s8 }
 0x199   : > { %v925_v15 = vpop.permute.xlu1 %924  ;;  %v923_v16 = vpop.permute.xlu0 %922 }
 0x19a   : > { %1014 = vst.msk [vmem:[#allocation2 + $0x38] sm:$0xff] %vm1006_vm5, %v925_v15  ;;  %v945_v18 = vpop.permute.xlu2 %944 }
 0x19b   : > { %1013 = vst.msk [vmem:[#allocation2 + $0x30] sm:$0xff] %vm1006_vm5, %v923_v16 }
 0x19c   : > { %1024 = vst.msk [vmem:[#allocation2 + $0x88] sm:$0xff] %vm1006_vm5, %v945_v18  ;;  %v2442_v18 = vld [vmem:[%s2616_s25 + $0x61] sm:$0xff] }
 0x19f   : > { %1143 = vrot.lane.b32.xlu1 %v4041_v19, %s2571_s8  ;;  %1141 = vrot.lane.b32.xlu0 %v4042_v23, %s2571_s8  ;;  %v2417_v19 = vld [vmem:[%s2616_s25 + $0xb0] sm:$0xff] }
 0x1a0   : > { %1145 = vrot.lane.b32.xlu2 %v4043_v24, %s2571_s8  ;;  %v2443_v23 = vld [vmem:[%s2616_s25 + $0x69] sm:$0xff] }
 0x1a1   : > { %v931_v21 = vpop.permute.xlu1 %930  ;;  %v929_v22 = vpop.permute.xlu0 %928 }
 0x1a2   : > { %1017 = vst.msk [vmem:[#allocation2 + $0x50] sm:$0xff] %vm1006_vm5, %v931_v21  ;;  %v951_v26 = vpop.permute.xlu2 %950 }
 0x1a3   : > { %1016 = vst.msk [vmem:[#allocation2 + $0x48] sm:$0xff] %vm1006_vm5, %v929_v22 }
 0x1a4   : > { %1027 = vst.msk [vmem:[#allocation2 + $0xa0] sm:$0xff] %vm1006_vm5, %v951_v26  ;;  %v2449_v26 = vld [vmem:[%s2616_s25 + $0xb1] sm:$0xff] }
 0x1a7   : > { %1149 = vrot.lane.b32.xlu1 %v4044_v25, %s2571_s8  ;;  %1147 = vrot.lane.b32.xlu0 %v4045_v35, %s2571_s8  ;;  %v2448_v25 = vld [vmem:[%s2616_s25 + $0xa9] sm:$0xff] }
 0x1a8   : > { %1151 = vrot.lane.b32.xlu2 %v4046_v56, %s2571_s8  ;;  %v2474_v35 = vld [vmem:[%s2616_s25 + $0x62] sm:$0xff] }
 0x1a9   : > { %v937_v29 = vpop.permute.xlu1 %936  ;;  %v935_v27 = vpop.permute.xlu0 %934 }
 0x1aa   : > { %1020 = vst.msk [vmem:[#allocation2 + $0x68] sm:$0xff] %vm1006_vm5, %v937_v29  ;;  %v957_v54 = vpop.permute.xlu2 %956 }
 0x1ab   : > { %1019 = vst.msk [vmem:[#allocation2 + $0x60] sm:$0xff] %vm1006_vm5, %v935_v27 }
 0x1ac   : > { %1030 = vst.msk [vmem:[#allocation2 + $0xb8] sm:$0xff] %vm1006_vm5, %v957_v54  ;;  %v2480_v54 = vld [vmem:[%s2616_s25 + $0xaa] sm:$0xff] }
 0x1af   : > { %1155 = vrot.lane.b32.xlu1 %v3076_v37, %s2571_s8  ;;  %1153 = vrot.lane.b32.xlu0 %v4047_v28, %s2571_s8  ;;  %v2438_v37 = vld [vmem:[%s2616_s25 + $0x31] sm:$0xff] }
 0x1b0   : > { %1157 = vrot.lane.b32.xlu2 %v3073_v44, %s2571_s8  ;;  %v2475_v28 = vld [vmem:[%s2616_s25 + $0x6a] sm:$0xff] }
 0x1b1   : > { %v943_v55 = vpop.permute.xlu1 %942  ;;  %v941_v31 = vpop.permute.xlu0 %940 }
 0x1b2   : > { %1023 = vst.msk [vmem:[#allocation2 + $0x80] sm:$0xff] %vm1006_vm5, %v943_v55  ;;  %v963_v61 = vpop.permute.xlu2 %962  ;;  %v1864_v55 = vld [vmem:[%s3957_s1 + $0x10] sm:$0x3] }
 0x1b3   : > { %1022 = vst.msk [vmem:[#allocation2 + $0x78] sm:$0xff] %vm1006_vm5, %v941_v31  ;;  %v2481_v31 = vld [vmem:[%s2616_s25 + $0xb2] sm:$0xff] }
 0x1b4   : > { %1033 = vst.msk [vmem:[#allocation2 + $0xd0] sm:$0xff] %vm1006_vm5, %v963_v61  ;;  %v1874_v61 = vunpack.c.l.b16 %v1864_v55 }
 0x1b7   : > { %1299 = vrot.lane.b32.xlu1 %v2803_v40, %s2572_s9  ;;  %1297 = vrot.lane.b32.xlu0 %v2406_v32, %s2572_s9  ;;  %v1877_v32 = vpack.c.b16 %v1874_v61, %v1874_v61 }
 0x1b8   : > { %1490 = vrot.lane.b32.xlu2 %v2438_v37, %s2573_s10 }
 0x1b9   : > { %v949_v63 = vpop.permute.xlu1 %948  ;;  %v947_v44 = vpop.permute.xlu0 %946 }
 0x1ba   : > { %1026 = vst.msk [vmem:[#allocation2 + $0x98] sm:$0xff] %vm1006_vm5, %v949_v63  ;;  %v969_v42 = vpop.permute.xlu2 %968 }
 0x1bb   : > { %1025 = vst.msk [vmem:[#allocation2 + $0x90] sm:$0xff] %vm1006_vm5, %v947_v44  ;;  %v1931_v44 = vsel %vm1929_vm7, %v1877_v32, 0 }
 0x1bc   : > { %1036 = vst.msk [vmem:[#allocation2 + $0xe8] sm:$0xff] %vm1006_vm5, %v969_v42  ;;  %1938 = vmatpush.bf16.msra.mxu0 %v1931_v44  ;;  %2531 = vmatpush.bf16.msra.mxu1 %v1931_v44 }
 0x1bd   : > { %2532 = vmatpush.bf16.msra.mxu2 %v1931_v44  ;;  %2533 = vmatpush.bf16.msra.mxu3 %v1931_v44 }
 0x1bf   : > { %1683 = vrot.lane.b32.xlu1 %v2470_v57, %s2574_s11  ;;  %1492 = vrot.lane.b32.xlu0 %v2439_v33, %s2573_s10  ;;  %v2425_v57 = vld [vmem:[%s2616_s25 + $0x110] sm:$0xff]  ;;  %v2424_v33 = vld [vmem:[%s2616_s25 + $0x108] sm:$0xff] }
 0x1c0   : > { %1685 = vrot.lane.b32.xlu2 %v2471_v36, %s2574_s11  ;;  %v2530_v36 = vld [vmem:[%s3957_s1 + $0x8] sm:$0xff] }
 0x1c1   : > { %v955_v40 = vpop.permute.xlu1 %954  ;;  %v953_v60 = vpop.permute.xlu0 %952  ;;  %1939 = vmatpush.bf16.msra.mxu0 %v2530_v36  ;;  %2534 = vmatpush.bf16.msra.mxu1 %v2530_v36 }
 0x1c2   : > { %1029 = vst.msk [vmem:[#allocation2 + $0xb0] sm:$0xff] %vm1006_vm5, %v955_v40  ;;  %v1104_v41 = vpop.permute.xlu2 %1103  ;;  %v2430_v40 = vld [vmem:[%s2616_s25 + $0x150] sm:$0xff]  ;;  %2535 = vmatpush.bf16.msra.mxu2 %v2530_v36  ;;  %2536 = vmatpush.bf16.msra.mxu3 %v2530_v36 }
 0x1c3   : > { %1028 = vst.msk [vmem:[#allocation2 + $0xa8] sm:$0xff] %vm1006_vm5, %v953_v60  ;;  %v2433_v36 = vld [vmem:[%s2616_s25 + $0x170] sm:$0xff] }
 0x1c4   : > { %1200 = vst.msk [vmem:[#allocation2] sm:$0xff] %vm1199_vm6, %v1104_v41 }
 0x1c7   : > { %1303 = vrot.lane.b32.xlu1 %v2838_v48, %s2572_s9  ;;  %1301 = vrot.lane.b32.xlu0 %v2841_v49, %s2572_s9  ;;  %v2441_v48 = vld [vmem:[%s2616_s25 + $0x51] sm:$0xff] }
 0x1c8   : > { %1313 = vrot.lane.b32.xlu2 %v2905_v5, %s2572_s9 }
 0x1c9   : > { %v961_v53 = vpop.permute.xlu1 %960  ;;  %v959_v38 = vpop.permute.xlu0 %958 }
 0x1ca   : > { %1032 = vst.msk [vmem:[#allocation2 + $0xc8] sm:$0xff] %vm1006_vm5, %v961_v53  ;;  %v1110_v51 = vpop.permute.xlu2 %1109  ;;  %v2529_v53 = vld [vmem:[%s3957_s1] sm:$0xff] }
 0x1cb   : > { %1031 = vst.msk [vmem:[#allocation2 + $0xc0] sm:$0xff] %vm1006_vm5, %v959_v38  ;;  %1940 = vmatpush.bf16.msra.mxu0 %v2529_v53  ;;  %2537 = vmatpush.bf16.msra.mxu1 %v2529_v53 }
 0x1cc   : > { %1203 = vst.msk [vmem:[#allocation2 + $0x18] sm:$0xff] %vm1199_vm6, %v1110_v51  ;;  %v2456_v51 = vld [vmem:[%s2616_s25 + $0x109] sm:$0xff]  ;;  %2538 = vmatpush.bf16.msra.mxu2 %v2529_v53  ;;  %2539 = vmatpush.bf16.msra.mxu3 %v2529_v53 }
 0x1cf   : > { %1494 = vrot.lane.b32.xlu1 %v2440_v46, %s2573_s10  ;;  %1315 = vrot.lane.b32.xlu0 %v2901_v0, %s2572_s9  ;;  %v2431_v46 = vld [vmem:[%s2616_s25 + $0x158] sm:$0xff] }
 0x1d0   : > { %1496 = vrot.lane.b32.xlu2 %v2441_v48, %s2573_s10  ;;  %v2457_v48 = vld [vmem:[%s2616_s25 + $0x111] sm:$0xff] }
 0x1d1   : > { %v967_v49 = vpop.permute.xlu1 %966  ;;  %v965_v43 = vpop.permute.xlu0 %964 }
 0x1d2   : > { %1035 = vst.msk [vmem:[#allocation2 + $0xe0] sm:$0xff] %vm1006_vm5, %v967_v49  ;;  %v1116_v5 = vpop.permute.xlu2 %1115 }
 0x1d3   : > { %1034 = vst.msk [vmem:[#allocation2 + $0xd8] sm:$0xff] %vm1006_vm5, %v965_v43 }
 0x1d4   : > { %1206 = vst.msk [vmem:[#allocation2 + $0x30] sm:$0xff] %vm1199_vm6, %v1116_v5 }
 0x1d7   : > { %1508 = vrot.lane.b32.xlu1 %v2447_v45, %s2573_s10  ;;  %1506 = vrot.lane.b32.xlu0 %v2446_v2, %s2573_s10  ;;  %v2463_v45 = vld [vmem:[%s2616_s25 + $0x159] sm:$0xff]  ;;  %v2462_v2 = vld [vmem:[%s2616_s25 + $0x151] sm:$0xff] }
 0x1d8   : > { %1687 = vrot.lane.b32.xlu2 %v2472_v34, %s2574_s11  ;;  %v2488_v34 = vld [vmem:[%s2616_s25 + $0x10a] sm:$0xff] }
 0x1d9   : > { %v973_v0 = vpop.permute.xlu1 %972  ;;  %v971_v39 = vpop.permute.xlu0 %970 }
 0x1da   : > { %1038 = vst.msk [vmem:[#allocation2 + $0xf8] sm:$0xff] %vm1006_vm5, %v973_v0  ;;  %v1122_v62 = vpop.permute.xlu2 %1121 }
 0x1db   : > { %1037 = vst.msk [vmem:[#allocation2 + $0xf0] sm:$0xff] %vm1006_vm5, %v971_v39 }
 0x1dc   : > { %1209 = vst.msk [vmem:[#allocation2 + $0x48] sm:$0xff] %vm1199_vm6, %v1122_v62 }
 0x1df   : > { %1699 = vrot.lane.b32.xlu1 %v2478_v30, %s2574_s11  ;;  %1689 = vrot.lane.b32.xlu0 %v2473_v59, %s2574_s11  ;;  %v2494_v30 = vld [vmem:[%s2616_s25 + $0x152] sm:$0xff] }
 0x1e0   : > { %1701 = vrot.lane.b32.xlu2 %v2479_v52, %s2574_s11  ;;  %v2489_v59 = vld [vmem:[%s2616_s25 + $0x112] sm:$0xff]  ;;  %v2495_v52 = vld [vmem:[%s2616_s25 + $0x15a] sm:$0xff] }
 0x1e1   : > { %v1108_v47 = vpop.permute.xlu1 %1107  ;;  %v1106_v1 = vpop.permute.xlu0 %1105 }
 0x1e2   : > { %1202 = vst.msk [vmem:[#allocation2 + $0x10] sm:$0xff] %vm1199_vm6, %v1108_v47  ;;  %v1128_v4 = vpop.permute.xlu2 %1127 }
 0x1e3   : > { %1201 = vst.msk [vmem:[#allocation2 + $0x8] sm:$0xff] %vm1199_vm6, %v1106_v1 }
 0x1e4   : > { %1212 = vst.msk [vmem:[#allocation2 + $0x60] sm:$0xff] %vm1199_vm6, %v1128_v4 }
 0x1e7   : > { %1331 = vrot.lane.b32.xlu1 %v3004_v58, %s2572_s9  ;;  %1329 = vrot.lane.b32.xlu0 %v2959_v50, %s2572_s9  ;;  %v2487_v58 = vld [vmem:[%s2616_s25 + $0xfa] sm:$0xff] }
 0x1e8   : > { %1522 = vrot.lane.b32.xlu2 %v2454_v3, %s2573_s10  ;;  %v2413_v3 = vld [vmem:[%s2616_s25 + $0x80] sm:$0xff] }
 0x1e9   : > { %v1114_v8 = vpop.permute.xlu1 %1113  ;;  %v1112_v6 = vpop.permute.xlu0 %1111 }
 0x1ea   : > { %1205 = vst.msk [vmem:[#allocation2 + $0x28] sm:$0xff] %vm1199_vm6, %v1114_v8  ;;  %v1134_v7 = vpop.permute.xlu2 %1133  ;;  %v2412_v8 = vld [vmem:[%s2616_s25 + $0x78] sm:$0xff] }
 0x1eb   : > { %1204 = vst.msk [vmem:[#allocation2 + $0x20] sm:$0xff] %vm1199_vm6, %v1112_v6  ;;  %v2418_v6 = vld [vmem:[%s2616_s25 + $0xc0] sm:$0xff] }
 0x1ec   : > { %1215 = vst.msk [vmem:[#allocation2 + $0x78] sm:$0xff] %vm1199_vm6, %v1134_v7 }
 0x1ef   : > { %1715 = vrot.lane.b32.xlu1 %v2486_v11, %s2574_s11  ;;  %1524 = vrot.lane.b32.xlu0 %v2455_v9, %s2573_s10 }
 0x1f0   : > { %1717 = vrot.lane.b32.xlu2 %v2487_v58, %s2574_s11 }
 0x1f1   : > { %v1120_v50 = vpop.permute.xlu1 %1119  ;;  %v1118_v10 = vpop.permute.xlu0 %1117 }
 0x1f2   : > { %1208 = vst.msk [vmem:[#allocation2 + $0x40] sm:$0xff] %vm1199_vm6, %v1120_v50  ;;  %v1140_v14 = vpop.permute.xlu2 %1139 }
 0x1f3   : > { %1207 = vst.msk [vmem:[#allocation2 + $0x38] sm:$0xff] %vm1199_vm6, %v1118_v10 }
 0x1f4   : > { %1218 = vst.msk [vmem:[#allocation2 + $0x90] sm:$0xff] %vm1199_vm6, %v1140_v14  ;;  %v2444_v14 = vld [vmem:[%s2616_s25 + $0x79] sm:$0xff] }
 0x1f7   : > { %1307 = vrot.lane.b32.xlu1 %v2411_v12, %s2572_s9  ;;  %1305 = vrot.lane.b32.xlu0 %v2410_v13, %s2572_s9  ;;  %v2419_v12 = vld [vmem:[%s2616_s25 + $0xc8] sm:$0xff] }
 0x1f8   : > { %1317 = vrot.lane.b32.xlu2 %v2416_v17, %s2572_s9  ;;  %v2445_v13 = vld [vmem:[%s2616_s25 + $0x81] sm:$0xff] }
 0x1f9   : > { %v1126_v15 = vpop.permute.xlu1 %1125  ;;  %v1124_v16 = vpop.permute.xlu0 %1123 }
 0x1fa   : > { %1211 = vst.msk [vmem:[#allocation2 + $0x58] sm:$0xff] %vm1199_vm6, %v1126_v15  ;;  %v1146_v20 = vpop.permute.xlu2 %1145 }
 0x1fb   : > { %1210 = vst.msk [vmem:[#allocation2 + $0x50] sm:$0xff] %vm1199_vm6, %v1124_v16 }
 0x1fc   : > { %1221 = vst.msk [vmem:[#allocation2 + $0xa8] sm:$0xff] %vm1199_vm6, %v1146_v20  ;;  %v2451_v20 = vld [vmem:[%s2616_s25 + $0xc9] sm:$0xff] }
 0x1ff   : > { %1498 = vrot.lane.b32.xlu1 %v2442_v18, %s2573_s10  ;;  %1319 = vrot.lane.b32.xlu0 %v2417_v19, %s2572_s9  ;;  %v2450_v18 = vld [vmem:[%s2616_s25 + $0xc1] sm:$0xff] }
 0x200   : > { %1500 = vrot.lane.b32.xlu2 %v2443_v23, %s2573_s10  ;;  %v2476_v19 = vld [vmem:[%s2616_s25 + $0x7a] sm:$0xff] }
 0x201   : > { %v1132_v21 = vpop.permute.xlu1 %1131  ;;  %v1130_v22 = vpop.permute.xlu0 %1129 }
 0x202   : > { %1214 = vst.msk [vmem:[#allocation2 + $0x70] sm:$0xff] %vm1199_vm6, %v1132_v21  ;;  %v1152_v24 = vpop.permute.xlu2 %1151 }
 0x203   : > { %1213 = vst.msk [vmem:[#allocation2 + $0x68] sm:$0xff] %vm1199_vm6, %v1130_v22 }
 0x204   : > { %1224 = vst.msk [vmem:[#allocation2 + $0xc0] sm:$0xff] %vm1199_vm6, %v1152_v24  ;;  %v2482_v24 = vld [vmem:[%s2616_s25 + $0xc2] sm:$0xff] }
 0x207   : > { %1512 = vrot.lane.b32.xlu1 %v2449_v26, %s2573_s10  ;;  %1510 = vrot.lane.b32.xlu0 %v2448_v25, %s2573_s10  ;;  %v2477_v26 = vld [vmem:[%s2616_s25 + $0x82] sm:$0xff]  ;;  %v2483_v25 = vld [vmem:[%s2616_s25 + $0xca] sm:$0xff] }
 0x208   : > { %1691 = vrot.lane.b32.xlu2 %v2474_v35, %s2574_s11 }
 0x209   : > { %v1138_v29 = vpop.permute.xlu1 %1137  ;;  %v1136_v27 = vpop.permute.xlu0 %1135 }
 0x20a   : > { %1217 = vst.msk [vmem:[#allocation2 + $0x88] sm:$0xff] %vm1199_vm6, %v1138_v29  ;;  %v1158_v56 = vpop.permute.xlu2 %1157 }
 0x20b   : > { %1216 = vst.msk [vmem:[#allocation2 + $0x80] sm:$0xff] %vm1199_vm6, %v1136_v27 }
 0x20c   : > { %1227 = vst.msk [vmem:[#allocation2 + $0xd8] sm:$0xff] %vm1199_vm6, %v1158_v56  ;;  %v2427_v56 = vld [vmem:[%s2616_s25 + $0x128] sm:$0xff] }
 0x20f   : > { %1703 = vrot.lane.b32.xlu1 %v2480_v54, %s2574_s11  ;;  %1693 = vrot.lane.b32.xlu0 %v2475_v28, %s2574_s11  ;;  %v2426_v54 = vld [vmem:[%s2616_s25 + $0x120] sm:$0xff]  ;;  %v2432_v28 = vld [vmem:[%s2616_s25 + $0x168] sm:$0xff] }
 0x210   : > { %1705 = vrot.lane.b32.xlu2 %v2481_v31, %s2574_s11 }
 0x211   : > { %v1144_v37 = vpop.permute.xlu1 %1143  ;;  %v1142_v63 = vpop.permute.xlu0 %1141 }
 0x212   : > { %1220 = vst.msk [vmem:[#allocation2 + $0xa0] sm:$0xff] %vm1199_vm6, %v1144_v37  ;;  %v1491_v42 = vpop.permute.xlu2 %1490 }
 0x213   : > { %1219 = vst.msk [vmem:[#allocation2 + $0x98] sm:$0xff] %vm1199_vm6, %v1142_v63 }
 0x217   : > { %1335 = vrot.lane.b32.xlu1 %v2425_v57, %s2572_s9  ;;  %1333 = vrot.lane.b32.xlu0 %v2424_v33, %s2572_s9  ;;  %v2458_v33 = vld [vmem:[%s2616_s25 + $0x121] sm:$0xff] }
 0x218   : > { %1345 = vrot.lane.b32.xlu2 %v2430_v40, %s2572_s9  ;;  %v2459_v40 = vld [vmem:[%s2616_s25 + $0x129] sm:$0xff] }
 0x219   : > { %v1150_v60 = vpop.permute.xlu1 %1149  ;;  %v1148_v41 = vpop.permute.xlu0 %1147 }
 0x21a   : > { %1223 = vst.msk [vmem:[#allocation2 + $0xb8] sm:$0xff] %vm1199_vm6, %v1150_v60  ;;  %v1686_v38 = vpop.permute.xlu2 %1685 }
 0x21b   : > { %1222 = vst.msk [vmem:[#allocation2 + $0xb0] sm:$0xff] %vm1199_vm6, %v1148_v41 }
 0x21f   : > { %1526 = vrot.lane.b32.xlu1 %v2456_v51, %s2573_s10  ;;  %1347 = vrot.lane.b32.xlu0 %v2431_v46, %s2572_s9  ;;  %v2464_v51 = vld [vmem:[%s2616_s25 + $0x169] sm:$0xff] }
 0x220   : > { %1528 = vrot.lane.b32.xlu2 %v2457_v48, %s2573_s10  ;;  %v2490_v46 = vld [vmem:[%s2616_s25 + $0x122] sm:$0xff] }
 0x221   : > { %v1156_v49 = vpop.permute.xlu1 %1155  ;;  %v1154_v43 = vpop.permute.xlu0 %1153 }
 0x222   : > { %1226 = vst.msk [vmem:[#allocation2 + $0xd0] sm:$0xff] %vm1199_vm6, %v1156_v49  ;;  %v1314_v5 = vpop.permute.xlu2 %1313 }
 0x223   : > { %1225 = vst.msk [vmem:[#allocation2 + $0xc8] sm:$0xff] %vm1199_vm6, %v1154_v43 }
 0x224   : > { %1402 = vst.msk [vmem:[#allocation2 + $0x40] sm:$0xff] %vm1393_vm8, %v1314_v5 }
 0x227   : > { %1540 = vrot.lane.b32.xlu1 %v2463_v45, %s2573_s10  ;;  %1538 = vrot.lane.b32.xlu0 %v2462_v2, %s2573_s10 }
 0x228   : > { %1719 = vrot.lane.b32.xlu2 %v2488_v34, %s2574_s11  ;;  %v2496_v34 = vld [vmem:[%s2616_s25 + $0x16a] sm:$0xff] }
 0x229   : > { %v1300_v0 = vpop.permute.xlu1 %1299  ;;  %v1298_v39 = vpop.permute.xlu0 %1297 }
 0x22a   : > { %1395 = vst.msk [vmem:[#allocation2 + $0x8] sm:$0xff] %vm1393_vm8, %v1300_v0  ;;  %v1497_v62 = vpop.permute.xlu2 %1496  ;;  %v2491_v0 = vld [vmem:[%s2616_s25 + $0x12a] sm:$0xff] }
 0x22b   : > { %1394 = vst.msk [vmem:[#allocation2] sm:$0xff] %vm1393_vm8, %v1298_v39  ;;  %v2497_v39 = vld [vmem:[%s2616_s25 + $0x172] sm:$0xff] }
 0x22c   : > { %1587 = vst.msk [vmem:[#allocation2] sm:$0xff] %vm1586_vm9, %v1491_v42 }
 0x22f   : > { %1731 = vrot.lane.b32.xlu1 %v2494_v30, %s2574_s11  ;;  %1721 = vrot.lane.b32.xlu0 %v2489_v59, %s2574_s11 }
 0x230   : > { %1733 = vrot.lane.b32.xlu2 %v2495_v52, %s2574_s11  ;;  %v2421_v52 = vld [vmem:[%s2616_s25 + $0xe0] sm:$0xff] }
 0x231   : > { %v1684_v47 = vpop.permute.xlu1 %1683  ;;  %v1493_v1 = vpop.permute.xlu0 %1492 }
 0x232   : > { %1780 = vst.msk [vmem:[#allocation2] sm:$0xff] %vm1779_vm10, %v1684_v47  ;;  %v1688_v4 = vpop.permute.xlu2 %1687  ;;  %v2420_v47 = vld [vmem:[%s2616_s25 + $0xd8] sm:$0xff] }
 0x233   : > { %1588 = vst.msk [vmem:[#allocation2 + $0x8] sm:$0xff] %vm1586_vm9, %v1493_v1  ;;  %v2452_v1 = vld [vmem:[%s2616_s25 + $0xd9] sm:$0xff] }
 0x234   : > { %1781 = vst.msk [vmem:[#allocation2 + $0x8] sm:$0xff] %vm1779_vm10, %v1686_v38  ;;  %v2465_v38 = vld [vmem:[%s2616_s25 + $0x171] sm:$0xff] }
 0x237   : > { %1311 = vrot.lane.b32.xlu1 %v2413_v3, %s2572_s9  ;;  %1309 = vrot.lane.b32.xlu0 %v2412_v8, %s2572_s9 }
 0x238   : > { %1321 = vrot.lane.b32.xlu2 %v2418_v6, %s2572_s9  ;;  %v2484_v6 = vld [vmem:[%s2616_s25 + $0xda] sm:$0xff] }
 0x239   : > { %v1304_v7 = vpop.permute.xlu1 %1303  ;;  %v1302_v11 = vpop.permute.xlu0 %1301  ;;  %v1812_v9 = vld [vmem:[#allocation2] sm:$0xff] }
 0x23a   : > { %1397 = vst.msk [vmem:[#allocation2 + $0x18] sm:$0xff] %vm1393_vm8, %v1304_v7  ;;  %v1702_v50 = vpop.permute.xlu2 %1701  ;;  %v2453_v7 = vld [vmem:[%s2616_s25 + $0xe1] sm:$0xff] }
 0x23b   : > { %1396 = vst.msk [vmem:[#allocation2 + $0x10] sm:$0xff] %vm1393_vm8, %v1302_v11  ;;  %v1813_v58 = vld [vmem:[#allocation2 + $0x8] sm:$0xff] }
 0x23c   : > { %v1844_v10 = vpack.c.bf16 %v1813_v58, %v1812_v9  ;;  %1590 = vst.msk [vmem:[#allocation2 + $0x18] sm:$0xff] %vm1586_vm9, %v1497_v62  ;;  %v2485_v11 = vld [vmem:[%s2616_s25 + $0xe2] sm:$0xff] }
 0x23e   : > { %2510 = vmatmul.msk.bf16.vlgmr.msra.gmra.mxu0 %vm1880_vm11, %v1844_v10  ;;  %v2428_v10 = vld [vmem:[%s2616_s25 + $0x138] sm:$0xff] }
 0x23f   : > { %1502 = vrot.lane.b32.xlu1 %v2444_v14, %s2573_s10  ;;  %1323 = vrot.lane.b32.xlu0 %v2419_v12, %s2572_s9 }
 0x240   : > { %1504 = vrot.lane.b32.xlu2 %v2445_v13, %s2573_s10 }
 0x241   : > { %v1495_v17 = vpop.permute.xlu1 %1494  ;;  %v1316_v15 = vpop.permute.xlu0 %1315 }
 0x242   : > { %1589 = vst.msk [vmem:[#allocation2 + $0x10] sm:$0xff] %vm1586_vm9, %v1495_v17  ;;  %v1523_v16 = vpop.permute.xlu2 %1522 }
 0x243   : > { %1403 = vst.msk [vmem:[#allocation2 + $0x48] sm:$0xff] %vm1393_vm8, %v1316_v15 }
 0x244   : > { %1782 = vst.msk [vmem:[#allocation2 + $0x10] sm:$0xff] %vm1779_vm10, %v1688_v4 }
 0x247   : > { %1516 = vrot.lane.b32.xlu1 %v2451_v20, %s2573_s10  ;;  %1514 = vrot.lane.b32.xlu0 %v2450_v18, %s2573_s10 }
 0x248   : > { %1695 = vrot.lane.b32.xlu2 %v2476_v19, %s2574_s11 }
 0x249   : > { %v1509_v23 = vpop.permute.xlu1 %1508  ;;  %v1507_v21 = vpop.permute.xlu0 %1506 }
 0x24a   : > { %1596 = vst.msk [vmem:[#allocation2 + $0x48] sm:$0xff] %vm1586_vm9, %v1509_v23  ;;  %v1718_v22 = vpop.permute.xlu2 %1717  ;;  %v2434_v23 = vld [vmem:[%s2616_s25 + $0x180] sm:$0xff] }
 0x24b   : > { %1595 = vst.msk [vmem:[#allocation2 + $0x40] sm:$0xff] %vm1586_vm9, %v1507_v21  ;;  %v1814_v31 = vld [vmem:[#allocation2 + $0x10] sm:$0xff]  ;;  %v2429_v21 = vld [vmem:[%s2616_s25 + $0x140] sm:$0xff] }
 0x24c   : > { %1789 = vst.msk [vmem:[#allocation2 + $0x48] sm:$0xff] %vm1779_vm10, %v1702_v50 }
 0x24f   : > { %1707 = vrot.lane.b32.xlu1 %v2482_v24, %s2574_s11  ;;  %1697 = vrot.lane.b32.xlu0 %v2477_v26, %s2574_s11 }
 0x250   : > { %1709 = vrot.lane.b32.xlu2 %v2483_v25, %s2574_s11 }
 0x251   : > { %v1700_v35 = vpop.permute.xlu1 %1699  ;;  %v1690_v29 = vpop.permute.xlu0 %1689 }
 0x252   : > { %1788 = vst.msk [vmem:[#allocation2 + $0x40] sm:$0xff] %vm1779_vm10, %v1700_v35  ;;  %v1318_v27 = vpop.permute.xlu2 %1317  ;;  %v2461_v35 = vld [vmem:[%s2616_s25 + $0x141] sm:$0xff] }
 0x253   : > { %1783 = vst.msk [vmem:[#allocation2 + $0x18] sm:$0xff] %vm1779_vm10, %v1690_v29  ;;  %v1821_v55 = vld [vmem:[#allocation2 + $0x48] sm:$0xff]  ;;  %v2460_v29 = vld [vmem:[%s2616_s25 + $0x139] sm:$0xff] }
 0x254   : > { %1404 = vst.msk [vmem:[#allocation2 + $0x50] sm:$0xff] %vm1393_vm8, %v1318_v27  ;;  %v2466_v27 = vld [vmem:[%s2616_s25 + $0x181] sm:$0xff] }
 0x257   : > { %1339 = vrot.lane.b32.xlu1 %v2427_v56, %s2572_s9  ;;  %1337 = vrot.lane.b32.xlu0 %v2426_v54, %s2572_s9 }
 0x258   : > { %1349 = vrot.lane.b32.xlu2 %v2432_v28, %s2572_s9 }
 0x259   : > { %v1332_v61 = vpop.permute.xlu1 %1331  ;;  %v1330_v32 = vpop.permute.xlu0 %1329  ;;  %v1820_v37 = vld [vmem:[#allocation2 + $0x40] sm:$0xff] }
 0x25a   : > { %1411 = vst.msk [vmem:[#allocation2 + $0x88] sm:$0xff] %vm1393_vm8, %v1332_v61  ;;  %v1815_v63 = vld [vmem:[#allocation2 + $0x18] sm:$0xff]  ;;  %v1848_v44 = vpack.c.bf16 %v1821_v55, %v1820_v37  ;;  %v1501_v57 = vpop.permute.xlu2 %1500  ;;  %v2493_v61 = vld [vmem:[%s2616_s25 + $0x142] sm:$0xff] }
 0x25b   : > { %1410 = vst.msk [vmem:[#allocation2 + $0x80] sm:$0xff] %vm1393_vm8, %v1330_v32  ;;  %v1845_v42 = vpack.c.bf16 %v1815_v63, %v1814_v31  ;;  %v2492_v55 = vld [vmem:[%s2616_s25 + $0x13a] sm:$0xff]  ;;  %v2467_v31 = vld [vmem:[%s2616_s25 + $0x189] sm:$0xff] }
 0x25c   : > { %1603 = vst.msk [vmem:[#allocation2 + $0x80] sm:$0xff] %vm1586_vm9, %v1523_v16  ;;  %2514 = vmatmul.msk.bf16.vlgmr.msra.gmra.mxu1 %vm1880_vm11, %v1848_v44  ;;  %v2499_v44 = vld [vmem:[%s2616_s25 + $0x18a] sm:$0xff] }
 0x25d   : > { %2511 = vmatmul.msk.bf16.gmra.mxu0 %vm1880_vm11, %v1845_v42  ;;  %v2498_v42 = vld [vmem:[%s2616_s25 + $0x182] sm:$0xff] }
 0x25f   : > { %1530 = vrot.lane.b32.xlu1 %v2458_v33, %s2573_s10  ;;  %1351 = vrot.lane.b32.xlu0 %v2433_v36, %s2572_s9 }
 0x260   : > { %1532 = vrot.lane.b32.xlu2 %v2459_v40, %s2573_s10 }
 0x261   : > { %v1716_v60 = vpop.permute.xlu1 %1715  ;;  %v1525_v41 = vpop.permute.xlu0 %1524 }
 0x262   : > { %1796 = vst.msk [vmem:[#allocation2 + $0x80] sm:$0xff] %vm1779_vm10, %v1716_v60  ;;  %v1692_v53 = vpop.permute.xlu2 %1691 }
 0x263   : > { %1604 = vst.msk [vmem:[#allocation2 + $0x88] sm:$0xff] %vm1586_vm9, %v1525_v41 }
 0x264   : > { %1797 = vst.msk [vmem:[#allocation2 + $0x88] sm:$0xff] %vm1779_vm10, %v1718_v22  ;;  %v2435_v22 = vld [vmem:[%s2616_s25 + $0x188] sm:$0xff] }
 0x267   : > { %1544 = vrot.lane.b32.xlu1 %v2465_v38, %s2573_s10  ;;  %1542 = vrot.lane.b32.xlu0 %v2464_v51, %s2573_s10 }
 0x268   : > { %1723 = vrot.lane.b32.xlu2 %v2490_v46, %s2574_s11  ;;  %v2436_v46 = vld [vmem:[%s2616_s25 + $0x198] sm:$0xff] }
 0x269   : > { %v1308_v48 = vpop.permute.xlu1 %1307  ;;  %v1306_v49 = vpop.permute.xlu0 %1305  ;;  %v1828_v43 = vld [vmem:[#allocation2 + $0x80] sm:$0xff] }
 0x26a   : > { %1399 = vst.msk [vmem:[#allocation2 + $0x28] sm:$0xff] %vm1393_vm8, %v1308_v48  ;;  %v1706_v45 = vpop.permute.xlu2 %1705  ;;  %v2437_v48 = vld [vmem:[%s2616_s25 + $0x1a0] sm:$0xff] }
 0x26b   : > { %1398 = vst.msk [vmem:[#allocation2 + $0x20] sm:$0xff] %vm1393_vm8, %v1306_v49  ;;  %v1829_v5 = vld [vmem:[#allocation2 + $0x88] sm:$0xff] }
 0x26c   : > { %v1852_v2 = vpack.c.bf16 %v1829_v5, %v1828_v43  ;;  %1592 = vst.msk [vmem:[#allocation2 + $0x28] sm:$0xff] %vm1586_vm9, %v1501_v57 }
 0x26e   : > { %2518 = vmatmul.msk.bf16.vlgmr.msra.gmra.mxu2 %vm1880_vm11, %v1852_v2  ;;  %v2469_v2 = vld [vmem:[%s2616_s25 + $0x1a1] sm:$0xff] }
 0x26f   : > { %1735 = vrot.lane.b32.xlu1 %v2496_v34, %s2574_s11  ;;  %1725 = vrot.lane.b32.xlu0 %v2491_v0, %s2574_s11 }
 0x270   : > { %1737 = vrot.lane.b32.xlu2 %v2497_v39, %s2574_s11 }
 0x271   : > { %v1499_v62 = vpop.permute.xlu1 %1498  ;;  %v1320_v30 = vpop.permute.xlu0 %1319 }
 0x272   : > { %1591 = vst.msk [vmem:[#allocation2 + $0x20] sm:$0xff] %vm1586_vm9, %v1499_v62  ;;  %v1346_v59 = vpop.permute.xlu2 %1345 }
 0x273   : > { %1405 = vst.msk [vmem:[#allocation2 + $0x58] sm:$0xff] %vm1393_vm8, %v1320_v30 }
 0x274   : > { %1784 = vst.msk [vmem:[#allocation2 + $0x20] sm:$0xff] %vm1779_vm10, %v1692_v53 }
 0x275   : > { %1418 = vst.msk [vmem:[#allocation2 + $0xc0] sm:$0xff] %vm1393_vm8, %v1346_v59  ;;  %v2501_v59 = vld [vmem:[%s2616_s25 + $0x1a2] sm:$0xff] }
 0x277   : > { %1327 = vrot.lane.b32.xlu1 %v2421_v52, %s2572_s9  ;;  %1325 = vrot.lane.b32.xlu0 %v2420_v47, %s2572_s9 }
 0x278   : > { %1518 = vrot.lane.b32.xlu2 %v2452_v1, %s2573_s10 }
 0x279   : > { %v1513_v4 = vpop.permute.xlu1 %1512  ;;  %v1511_v3 = vpop.permute.xlu0 %1510 }
 0x27a   : > { %1598 = vst.msk [vmem:[#allocation2 + $0x58] sm:$0xff] %vm1586_vm9, %v1513_v4  ;;  %v1529_v8 = vpop.permute.xlu2 %1528 }
 0x27b   : > { %1597 = vst.msk [vmem:[#allocation2 + $0x50] sm:$0xff] %vm1586_vm9, %v1511_v3  ;;  %v1816_v12 = vld [vmem:[#allocation2 + $0x20] sm:$0xff] }
 0x27c   : > { %1791 = vst.msk [vmem:[#allocation2 + $0x58] sm:$0xff] %vm1779_vm10, %v1706_v45  ;;  %v2468_v45 = vld [vmem:[%s2616_s25 + $0x199] sm:$0xff] }
 0x27f   : > { %1711 = vrot.lane.b32.xlu1 %v2484_v6, %s2574_s11  ;;  %1520 = vrot.lane.b32.xlu0 %v2453_v7, %s2573_s10 }
 0x280   : > { %1713 = vrot.lane.b32.xlu2 %v2485_v11, %s2574_s11 }
 0x281   : > { %v1704_v9 = vpop.permute.xlu1 %1703  ;;  %v1694_v58 = vpop.permute.xlu0 %1693 }
 0x282   : > { %1790 = vst.msk [vmem:[#allocation2 + $0x50] sm:$0xff] %vm1779_vm10, %v1704_v9  ;;  %v1720_v50 = vpop.permute.xlu2 %1719 }
 0x283   : > { %1785 = vst.msk [vmem:[#allocation2 + $0x28] sm:$0xff] %vm1779_vm10, %v1694_v58  ;;  %v1823_v14 = vld [vmem:[#allocation2 + $0x58] sm:$0xff] }
 0x287   : > { %1161 = vrot.lane.b32.xlu1 %v2497_v39, %s2571_s8  ;;  %1159 = vrot.lane.b32.xlu0 %v2496_v34, %s2571_s8  ;;  %v2500_v34 = vld [vmem:[%s2616_s25 + $0x19a] sm:$0xff] }
 0x288   : > { %1341 = vrot.lane.b32.xlu2 %v2428_v10, %s2572_s9 }
 0x289   : > { %v1336_v13 = vpop.permute.xlu1 %1335  ;;  %v1334_v17 = vpop.permute.xlu0 %1333  ;;  %v1822_v15 = vld [vmem:[#allocation2 + $0x50] sm:$0xff] }
 0x28a   : > { %1413 = vst.msk [vmem:[#allocation2 + $0x98] sm:$0xff] %vm1393_vm8, %v1336_v13  ;;  %v1817_v16 = vld [vmem:[#allocation2 + $0x28] sm:$0xff]  ;;  %v1849_v20 = vpack.c.bf16 %v1823_v14, %v1822_v15  ;;  %v1734_v19 = vpop.permute.xlu2 %1733 }
 0x28b   : > { %1412 = vst.msk [vmem:[#allocation2 + $0x90] sm:$0xff] %vm1393_vm8, %v1334_v17  ;;  %v1846_v18 = vpack.c.bf16 %v1817_v16, %v1816_v12 }
 0x28c   : > { %2515 = vmatmul.msk.bf16.gmra.mxu1 %vm1880_vm11, %v1849_v20  ;;  %1606 = vst.msk [vmem:[#allocation2 + $0x98] sm:$0xff] %vm1586_vm9, %v1529_v8 }
 0x28d   : > { %2512 = vmatmul.msk.bf16.gmra.mxu0 %vm1880_vm11, %v1846_v18 }
 0x28f   : > { %1353 = vrot.lane.b32.xlu1 %v2434_v23, %s2572_s9  ;;  %1343 = vrot.lane.b32.xlu0 %v2429_v21, %s2572_s9 }
 0x290   : > { %1355 = vrot.lane.b32.xlu2 %v2435_v22, %s2572_s9 }
 0x291   : > { %v1527_v24 = vpop.permute.xlu1 %1526  ;;  %v1348_v26 = vpop.permute.xlu0 %1347 }
 0x292   : > { %1605 = vst.msk [vmem:[#allocation2 + $0x90] sm:$0xff] %vm1586_vm9, %v1527_v24  ;;  %v1322_v25 = vpop.permute.xlu2 %1321 }
 0x293   : > { %1419 = vst.msk [vmem:[#allocation2 + $0xc8] sm:$0xff] %vm1393_vm8, %v1348_v26 }
 0x294   : > { %1798 = vst.msk [vmem:[#allocation2 + $0x90] sm:$0xff] %vm1779_vm10, %v1720_v50 }
 0x295   : > { %1406 = vst.msk [vmem:[#allocation2 + $0x60] sm:$0xff] %vm1393_vm8, %v1322_v25 }
 0x297   : > { %1536 = vrot.lane.b32.xlu1 %v2461_v35, %s2573_s10  ;;  %1534 = vrot.lane.b32.xlu0 %v2460_v29, %s2573_s10 }
 0x298   : > { %1546 = vrot.lane.b32.xlu2 %v2466_v27, %s2573_s10 }
 0x299   : > { %v1541_v56 = vpop.permute.xlu1 %1540  ;;  %v1539_v54 = vpop.permute.xlu0 %1538 }
 0x29a   : > { %1612 = vst.msk [vmem:[#allocation2 + $0xc8] sm:$0xff] %vm1586_vm9, %v1541_v56  ;;  %v1505_v28 = vpop.permute.xlu2 %1504 }
 0x29b   : > { %1611 = vst.msk [vmem:[#allocation2 + $0xc0] sm:$0xff] %vm1586_vm9, %v1539_v54  ;;  %v1830_v33 = vld [vmem:[#allocation2 + $0x90] sm:$0xff] }
 0x29c   : > { %1805 = vst.msk [vmem:[#allocation2 + $0xc8] sm:$0xff] %vm1779_vm10, %v1734_v19 }
 0x29f   : > { %1727 = vrot.lane.b32.xlu1 %v2492_v55, %s2574_s11  ;;  %1548 = vrot.lane.b32.xlu0 %v2467_v31, %s2573_s10 }
 0x2a0   : > { %1729 = vrot.lane.b32.xlu2 %v2493_v61, %s2574_s11 }
 0x2a1   : > { %v1732_v32 = vpop.permute.xlu1 %1731  ;;  %v1722_v37 = vpop.permute.xlu0 %1721 }
 0x2a2   : > { %1804 = vst.msk [vmem:[#allocation2 + $0xc0] sm:$0xff] %vm1779_vm10, %v1732_v32  ;;  %v1696_v63 = vpop.permute.xlu2 %1695 }
 0x2a3   : > { %1799 = vst.msk [vmem:[#allocation2 + $0x98] sm:$0xff] %vm1779_vm10, %v1722_v37  ;;  %v1837_v57 = vld [vmem:[#allocation2 + $0xc8] sm:$0xff] }
 0x2a7   : > { %1741 = vrot.lane.b32.xlu1 %v2499_v44, %s2574_s11  ;;  %1739 = vrot.lane.b32.xlu0 %v2498_v42, %s2574_s11 }
 0x2a8   : > { %1163 = vrot.lane.b32.xlu2 %v2498_v42, %s2571_s8 }
 0x2a9   : > { %v1312_v36 = vpop.permute.xlu1 %1311  ;;  %v1310_v40 = vpop.permute.xlu0 %1309  ;;  %v1836_v60 = vld [vmem:[#allocation2 + $0xc0] sm:$0xff] }
 0x2aa   : > { %1401 = vst.msk [vmem:[#allocation2 + $0x38] sm:$0xff] %vm1393_vm8, %v1312_v36  ;;  %v1831_v41 = vld [vmem:[#allocation2 + $0x98] sm:$0xff]  ;;  %v1856_v53 = vpack.c.bf16 %v1837_v57, %v1836_v60  ;;  %v1710_v51 = vpop.permute.xlu2 %1709 }
 0x2ab   : > { %1400 = vst.msk [vmem:[#allocation2 + $0x30] sm:$0xff] %vm1393_vm8, %v1310_v40  ;;  %v1853_v38 = vpack.c.bf16 %v1831_v41, %v1830_v33 }
 0x2ac   : > { %2522 = vmatmul.msk.bf16.vlgmr.msra.gmra.mxu3 %vm1880_vm11, %v1856_v53  ;;  %1594 = vst.msk [vmem:[#allocation2 + $0x38] sm:$0xff] %vm1586_vm9, %v1505_v28 }
 0x2ad   : > { %2519 = vmatmul.msk.bf16.gmra.mxu2 %vm1880_vm11, %v1853_v38 }
 0x2af   : > { %1165 = vrot.lane.b32.xlu0 %v2499_v44, %s2571_s8  ;;  %1357 = vrot.lane.b32.xlu1 %v2436_v46, %s2572_s9 }
 0x2b0   : > { %1359 = vrot.lane.b32.xlu2 %v2437_v48, %s2572_s9 }
 0x2b1   : > { %v1503_v49 = vpop.permute.xlu1 %1502  ;;  %v1324_v43 = vpop.permute.xlu0 %1323 }
 0x2b2   : > { %1593 = vst.msk [vmem:[#allocation2 + $0x30] sm:$0xff] %vm1586_vm9, %v1503_v49  ;;  %v1350_v5 = vpop.permute.xlu2 %1349 }
 0x2b3   : > { %1407 = vst.msk [vmem:[#allocation2 + $0x68] sm:$0xff] %vm1393_vm8, %v1324_v43 }
 0x2b4   : > { %1786 = vst.msk [vmem:[#allocation2 + $0x30] sm:$0xff] %vm1779_vm10, %v1696_v63 }
 0x2b5   : > { %1420 = vst.msk [vmem:[#allocation2 + $0xd0] sm:$0xff] %vm1393_vm8, %v1350_v5 }
 0x2b7   : > { %1550 = vrot.lane.b32.xlu0 %v2468_v45, %s2573_s10  ;;  %1552 = vrot.lane.b32.xlu1 %v2469_v2, %s2573_s10 }
 0x2b8   : > { %1743 = vrot.lane.b32.xlu2 %v2500_v34, %s2574_s11 }
 0x2b9   : > { %v1517_v0 = vpop.permute.xlu1 %1516  ;;  %v1515_v39 = vpop.permute.xlu0 %1514 }
 0x2ba   : > { %1600 = vst.msk [vmem:[#allocation2 + $0x68] sm:$0xff] %vm1586_vm9, %v1517_v0  ;;  %v1533_v30 = vpop.permute.xlu2 %1532 }
 0x2bb   : > { %1599 = vst.msk [vmem:[#allocation2 + $0x60] sm:$0xff] %vm1586_vm9, %v1515_v39  ;;  %v1942_v62 = vpop.f32.mrf.mxu0  ;;  %v1818_v14 = vld [vmem:[#allocation2 + $0x30] sm:$0xff] }
 0x2bc   : > { %2023 = vst.msk [vmem:[%s2611_s22] sm:$0xff] %vm2022_vm12, %v1942_v62  ;;  %v2125_v1 = vmul.f32 %v1942_v62, %v1942_v62  ;;  %v2055_v8 = vsel %vm2022_vm12, %v1942_v62, 0.0 }
 0x2bd   : > { %1793 = vst.msk [vmem:[#allocation2 + $0x68] sm:$0xff] %vm1779_vm10, %v1710_v51 }
 0x2be   : > { %v2157_v9 = vsel %vm2022_vm12, %v2125_v1, 0.0 }
 0x2bf   : > { %1745 = vrot.lane.b32.xlu0 %v2501_v59, %s2574_s11 }
 0x2c1   : > { %v1708_v52 = vpop.permute.xlu1 %1707  ;;  %v1698_v47 = vpop.permute.xlu0 %1697 }
 0x2c2   : > { %1792 = vst.msk [vmem:[#allocation2 + $0x60] sm:$0xff] %vm1779_vm10, %v1708_v52  ;;  %v1724_v3 = vpop.permute.xlu2 %1723 }
 0x2c3   : > { %1787 = vst.msk [vmem:[#allocation2 + $0x38] sm:$0xff] %vm1779_vm10, %v1698_v47  ;;  %v1944_v4 = vpop.f32.mrf.mxu0 }
 0x2c4   : > { %2024 = vst.msk [vmem:[%s2611_s22 + $0x8] sm:$0xff] %vm2022_vm12, %v1944_v4  ;;  %v2056_v6 = vsel %vm2022_vm12, %v1944_v4, 0.0  ;;  %v2126_v7 = vmul.f32 %v1944_v4, %v1944_v4  ;;  %v1825_v10 = vld [vmem:[#allocation2 + $0x68] sm:$0xff] }
 0x2c5   : > { %v2057_v11 = vadd.f32 %v2056_v6, %v2055_v8 }
 0x2c6   : > { %v2158_v58 = vsel %vm2022_vm12, %v2126_v7, 0.0 }
 0x2c7   : > { %v2159_v50 = vadd.f32 %v2158_v58, %v2157_v9 }
 0x2c9   : > { %v1340_v12 = vpop.permute.xlu1 %1339  ;;  %v1338_v13 = vpop.permute.xlu0 %1337  ;;  %v1824_v17 = vld [vmem:[#allocation2 + $0x60] sm:$0xff] }
 0x2ca   : > { %1415 = vst.msk [vmem:[#allocation2 + $0xa8] sm:$0xff] %vm1393_vm8, %v1340_v12  ;;  %v1819_v15 = vld [vmem:[#allocation2 + $0x38] sm:$0xff]  ;;  %v1850_v16 = vpack.c.bf16 %v1825_v10, %v1824_v17  ;;  %v1738_v18 = vpop.permute.xlu2 %1737 }
 0x2cb   : > { %1414 = vst.msk [vmem:[#allocation2 + $0xa0] sm:$0xff] %vm1393_vm8, %v1338_v13  ;;  %v1847_v20 = vpack.c.bf16 %v1819_v15, %v1818_v14 }
 0x2cc   : > { %2516 = vmatmul.msk.bf16.gmra.mxu1 %vm1880_vm11, %v1850_v16  ;;  %1608 = vst.msk [vmem:[#allocation2 + $0xa8] sm:$0xff] %vm1586_vm9, %v1533_v30 }
 0x2cd   : > { %2513 = vmatmul.msk.bf16.gmra.mxu0 %vm1880_vm11, %v1847_v20 }
 0x2d1   : > { %v1531_v19 = vpop.permute.xlu1 %1530  ;;  %v1352_v23 = vpop.permute.xlu0 %1351 }
 0x2d2   : > { %1607 = vst.msk [vmem:[#allocation2 + $0xa0] sm:$0xff] %vm1586_vm9, %v1531_v19  ;;  %v1519_v21 = vpop.permute.xlu2 %1518 }
 0x2d3   : > { %1421 = vst.msk [vmem:[#allocation2 + $0xd8] sm:$0xff] %vm1393_vm8, %v1352_v23 }
 0x2d4   : > { %1800 = vst.msk [vmem:[#allocation2 + $0xa0] sm:$0xff] %vm1779_vm10, %v1724_v3 }
 0x2d9   : > { %v1545_v22 = vpop.permute.xlu1 %1544  ;;  %v1543_v24 = vpop.permute.xlu0 %1542 }
 0x2da   : > { %1614 = vst.msk [vmem:[#allocation2 + $0xd8] sm:$0xff] %vm1586_vm9, %v1545_v22  ;;  %v1947_v26 = vpop.f32.mrf.mxu0  ;;  %v3711_v25 = vpop.f32.mrf.mxu1 }
 0x2db   : > { %1613 = vst.msk [vmem:[#allocation2 + $0xd0] sm:$0xff] %vm1586_vm9, %v1543_v24  ;;  %v2058_v35 = vsel %vm2022_vm12, %v1947_v26, 0.0  ;;  %v2127_v29 = vmul.f32 %v1947_v26, %v1947_v26  ;;  %v1714_v27 = vpop.permute.xlu2 %1713  ;;  %v1832_v40 = vld [vmem:[#allocation2 + $0xa0] sm:$0xff] }
 0x2dc   : > { %2025 = vst.msk [vmem:[%s2611_s22 + $0x10] sm:$0xff] %vm2022_vm12, %v1947_v26  ;;  %v2059_v56 = vadd.f32 %v2058_v35, %v2057_v11 }
 0x2dd   : > { %v2160_v54 = vsel %vm2022_vm12, %v2127_v29, 0.0  ;;  %2031 = vst.msk [vmem:[%s2611_s22 + $0x40] sm:$0xff] %vm2022_vm12, %v3711_v25 }
 0x2de   : > { %v2161_v28 = vadd.f32 %v2160_v54, %v2159_v50  ;;  %1807 = vst.msk [vmem:[#allocation2 + $0xd8] sm:$0xff] %vm1779_vm10, %v1738_v18 }
 0x2e1   : > { %v1736_v55 = vpop.permute.xlu1 %1735  ;;  %v1726_v31 = vpop.permute.xlu0 %1725 }
 0x2e2   : > { %1806 = vst.msk [vmem:[#allocation2 + $0xd0] sm:$0xff] %vm1779_vm10, %v1736_v55  ;;  %v1949_v61 = vpop.f32.mrf.mxu0  ;;  %v3723_v32 = vpop.f32.mrf.mxu1 }
 0x2e3   : > { %1801 = vst.msk [vmem:[#allocation2 + $0xa8] sm:$0xff] %vm1779_vm10, %v1726_v31  ;;  %v2060_v37 = vsel %vm2022_vm12, %v1949_v61, 0.0  ;;  %v2128_v63 = vmul.f32 %v1949_v61, %v1949_v61  ;;  %v1342_v44 = vpop.permute.xlu2 %1341 }
 0x2e4   : > { %2026 = vst.msk [vmem:[%s2611_s22 + $0x18] sm:$0xff] %vm2022_vm12, %v1949_v61  ;;  %v2061_v42 = vadd.f32 %v2060_v37, %v2059_v56 }
 0x2e5   : > { %v2162_v57 = vsel %vm2022_vm12, %v2128_v63, 0.0  ;;  %2032 = vst.msk [vmem:[%s2611_s22 + $0x48] sm:$0xff] %vm2022_vm12, %v3723_v32  ;;  %v1839_v36 = vld [vmem:[#allocation2 + $0xd8] sm:$0xff] }
 0x2e6   : > { %v2163_v33 = vadd.f32 %v2162_v57, %v2161_v28  ;;  %1416 = vst.msk [vmem:[#allocation2 + $0xb0] sm:$0xff] %vm1393_vm8, %v1342_v44 }
 0x2e9   : > { %v1328_v60 = vpop.permute.xlu1 %1327  ;;  %v1326_v41 = vpop.permute.xlu0 %1325  ;;  %v1838_v53 = vld [vmem:[#allocation2 + $0xd0] sm:$0xff] }
 0x2ea   : > { %1409 = vst.msk [vmem:[#allocation2 + $0x78] sm:$0xff] %vm1393_vm8, %v1328_v60  ;;  %v1833_v38 = vld [vmem:[#allocation2 + $0xa8] sm:$0xff]  ;;  %v1857_v51 = vpack.c.bf16 %v1839_v36, %v1838_v53 }
 0x2eb   : > { %1408 = vst.msk [vmem:[#allocation2 + $0x70] sm:$0xff] %vm1393_vm8, %v1326_v41  ;;  %v1854_v46 = vpack.c.bf16 %v1833_v38, %v1832_v40  ;;  %v1356_v48 = vpop.permute.xlu2 %1355 }
 0x2ec   : > { %1601 = vst.msk [vmem:[#allocation2 + $0x70] sm:$0xff] %vm1586_vm9, %v1519_v21  ;;  %2523 = vmatmul.msk.bf16.gmra.mxu3 %vm1880_vm11, %v1857_v51 }
 0x2ed   : > { %2520 = vmatmul.msk.bf16.gmra.mxu2 %vm1880_vm11, %v1854_v46 }
 0x2f1   : > { %v3739_v49 = vpop.f32.mrf.mxu2  ;;  %v1712_v43 = vpop.permute.xlu1 %1711 }
 0x2f2   : > { %2039 = vst.msk [vmem:[%s2611_s22 + $0x80] sm:$0xff] %vm2022_vm12, %v3739_v49  ;;  %v1521_v5 = vpop.permute.xlu0 %1520 }
 0x2f3   : > { %1794 = vst.msk [vmem:[#allocation2 + $0x70] sm:$0xff] %vm1779_vm10, %v1712_v43  ;;  %v1547_v45 = vpop.permute.xlu2 %1546 }
 0x2f4   : > { %1602 = vst.msk [vmem:[#allocation2 + $0x78] sm:$0xff] %vm1586_vm9, %v1521_v5  ;;  %v2133_v5 = vmul.f32 %v3711_v25, %v3711_v25 }
 0x2f5   : > { %1795 = vst.msk [vmem:[#allocation2 + $0x78] sm:$0xff] %vm1779_vm10, %v1714_v27 }
 0x2f9   : > { %v3747_v2 = vpop.f32.mrf.mxu2  ;;  %v1162_v34 = vpop.permute.xlu1 %1161 }
 0x2fa   : > { %2040 = vst.msk [vmem:[%s2611_s22 + $0x88] sm:$0xff] %vm2022_vm12, %v3747_v2  ;;  %v1160_v0 = vpop.permute.xlu0 %1159  ;;  %v1826_v39 = vld [vmem:[#allocation2 + $0x70] sm:$0xff] }
 0x2fb   : > { %1229 = vst.msk [vmem:[#allocation2 + $0xe8] sm:$0xff] %vm1199_vm6, %v1162_v34  ;;  %v1730_v62 = vpop.permute.xlu2 %1729 }
 0x2fc   : > { %1228 = vst.msk [vmem:[#allocation2 + $0xe0] sm:$0xff] %vm1199_vm6, %v1160_v0  ;;  %v1827_v30 = vld [vmem:[#allocation2 + $0x78] sm:$0xff] }
 0x2fd   : > { %v1851_v59 = vpack.c.bf16 %v1827_v30, %v1826_v39  ;;  %1423 = vst.msk [vmem:[#allocation2 + $0xe8] sm:$0xff] %vm1393_vm8, %v1356_v48  ;;  %v2070_v39 = vsel %vm2022_vm12, %v3711_v25, 0.0 }
 0x2ff   : > { %2517 = vmatmul.msk.bf16.gmra.mxu1 %vm1880_vm11, %v1851_v59 }
 0x301   : > { %v1354_v52 = vpop.permute.xlu1 %1353 }
 0x302   : > { %1422 = vst.msk [vmem:[#allocation2 + $0xe0] sm:$0xff] %vm1393_vm8, %v1354_v52  ;;  %v1344_v47 = vpop.permute.xlu0 %1343 }
 0x303   : > { %1417 = vst.msk [vmem:[#allocation2 + $0xb8] sm:$0xff] %vm1393_vm8, %v1344_v47  ;;  %v1164_v1 = vpop.permute.xlu2 %1163  ;;  %v2172_v47 = vsel %vm2022_vm12, %v2133_v5, 0.0 }
 0x304   : > { %1615 = vst.msk [vmem:[#allocation2 + $0xe0] sm:$0xff] %vm1586_vm9, %v1547_v45 }
 0x305   : > { %1230 = vst.msk [vmem:[#allocation2 + $0xf0] sm:$0xff] %vm1199_vm6, %v1164_v1  ;;  %v2072_v1 = vsel %vm2022_vm12, %v3723_v32, 0.0 }
 0x309   : > { %v1537_v4 = vpop.permute.xlu1 %1536  ;;  %v3760_v3 = vpop.f32.mrf.mxu1 }
 0x30a   : > { %1610 = vst.msk [vmem:[#allocation2 + $0xb8] sm:$0xff] %vm1586_vm9, %v1537_v4  ;;  %v1535_v8 = vpop.permute.xlu0 %1534  ;;  %v1952_v6 = vpop.f32.mrf.mxu0  ;;  %v2135_v4 = vmul.f32 %v3760_v3, %v3760_v3  ;;  %v2074_v25 = vsel %vm2022_vm12, %v3760_v3, 0.0 }
 0x30b   : > { %1609 = vst.msk [vmem:[#allocation2 + $0xb0] sm:$0xff] %vm1586_vm9, %v1535_v8  ;;  %v2062_v7 = vsel %vm2022_vm12, %v1952_v6, 0.0  ;;  %v2129_v11 = vmul.f32 %v1952_v6, %v1952_v6  ;;  %v1360_v26 = vpop.permute.xlu2 %1359 }
 0x30c   : > { %2027 = vst.msk [vmem:[%s2611_s22 + $0x20] sm:$0xff] %vm2022_vm12, %v1952_v6  ;;  %v2063_v9 = vadd.f32 %v2062_v7, %v2061_v42 }
 0x30d   : > { %v2164_v58 = vsel %vm2022_vm12, %v2129_v11, 0.0  ;;  %2033 = vst.msk [vmem:[%s2611_s22 + $0x50] sm:$0xff] %vm2022_vm12, %v3760_v3 }
 0x30e   : > { %v2165_v50 = vadd.f32 %v2164_v58, %v2163_v33  ;;  %1803 = vst.msk [vmem:[#allocation2 + $0xb8] sm:$0xff] %vm1779_vm10, %v1730_v62  ;;  %v2134_v62 = vmul.f32 %v3723_v32, %v3723_v32 }
 0x310   : > { %v2174_v7 = vsel %vm2022_vm12, %v2134_v62, 0.0 }
 0x311   : > { %v1728_v10 = vpop.permute.xlu1 %1727  ;;  %v3772_v14 = vpop.f32.mrf.mxu1 }
 0x312   : > { %1802 = vst.msk [vmem:[#allocation2 + $0xb0] sm:$0xff] %vm1779_vm10, %v1728_v10  ;;  %v1549_v12 = vpop.permute.xlu0 %1548  ;;  %v1954_v13 = vpop.f32.mrf.mxu0  ;;  %v2136_v11 = vmul.f32 %v3772_v14, %v3772_v14  ;;  %v2076_v32 = vsel %vm2022_vm12, %v3772_v14, 0.0 }
 0x313   : > { %1616 = vst.msk [vmem:[#allocation2 + $0xe8] sm:$0xff] %vm1586_vm9, %v1549_v12  ;;  %v2064_v17 = vsel %vm2022_vm12, %v1954_v13, 0.0  ;;  %v2130_v15 = vmul.f32 %v1954_v13, %v1954_v13  ;;  %v1744_v55 = vpop.permute.xlu2 %1743 }
 0x314   : > { %2028 = vst.msk [vmem:[%s2611_s22 + $0x28] sm:$0xff] %vm2022_vm12, %v1954_v13  ;;  %v2065_v16 = vadd.f32 %v2064_v17, %v2063_v9  ;;  %v2178_v17 = vsel %vm2022_vm12, %v2136_v11, 0.0 }
 0x315   : > { %v2166_v20 = vsel %vm2022_vm12, %v2130_v15, 0.0  ;;  %2034 = vst.msk [vmem:[%s2611_s22 + $0x58] sm:$0xff] %vm2022_vm12, %v3772_v14  ;;  %v1835_v19 = vld [vmem:[#allocation2 + $0xb8] sm:$0xff] }
 0x316   : > { %v2167_v18 = vadd.f32 %v2166_v20, %v2165_v50  ;;  %v2176_v50 = vsel %vm2022_vm12, %v2135_v4, 0.0 }
 0x319   : > { %v1742_v23 = vpop.permute.xlu1 %1741  ;;  %v1834_v21 = vld [vmem:[#allocation2 + $0xb0] sm:$0xff] }
 0x31a   : > { %1809 = vst.msk [vmem:[#allocation2 + $0xe8] sm:$0xff] %vm1779_vm10, %v1742_v23  ;;  %v1740_v22 = vpop.permute.xlu0 %1739  ;;  %v1855_v24 = vpack.c.bf16 %v1835_v19, %v1834_v21 }
 0x31b   : > { %1808 = vst.msk [vmem:[#allocation2 + $0xe0] sm:$0xff] %vm1779_vm10, %v1740_v22 }
 0x31c   : > { %2521 = vmatmul.msk.bf16.gmra.mxu2 %vm1880_vm11, %v1855_v24 }
 0x321   : > { %v1841_v35 = vld [vmem:[#allocation2 + $0xe8] sm:$0xff]  ;;  %v1358_v29 = vpop.permute.xlu1 %1357 }
 0x322   : > { %v1166_v27 = vpop.permute.xlu0 %1165  ;;  %v1840_v56 = vld [vmem:[#allocation2 + $0xe0] sm:$0xff]  ;;  %1424 = vst.msk [vmem:[#allocation2 + $0xf0] sm:$0xff] %vm1393_vm8, %v1358_v29 }
 0x323   : > { %1231 = vst.msk [vmem:[#allocation2 + $0xf8] sm:$0xff] %vm1199_vm6, %v1166_v27  ;;  %v1858_v54 = vpack.c.bf16 %v1841_v35, %v1840_v56 }
 0x324   : > { %1425 = vst.msk [vmem:[#allocation2 + $0xf8] sm:$0xff] %vm1393_vm8, %v1360_v26 }
 0x325   : > { %2524 = vmatmul.msk.bf16.gmra.mxu3 %vm1880_vm11, %v1858_v54 }
 0x329   : > { %v1553_v28 = vpop.permute.xlu1 %1552 }
 0x32a   : > { %v1551_v31 = vpop.permute.xlu0 %1550  ;;  %1618 = vst.msk [vmem:[#allocation2 + $0xf8] sm:$0xff] %vm1586_vm9, %v1553_v28 }
 0x32b   : > { %1617 = vst.msk [vmem:[#allocation2 + $0xf0] sm:$0xff] %vm1586_vm9, %v1551_v31 }
 0x32c   : > { %1810 = vst.msk [vmem:[#allocation2 + $0xf0] sm:$0xff] %vm1779_vm10, %v1744_v55 }
 0x32f   : > { %v3793_v61 = vpop.f32.mrf.mxu3 }
 0x330   : > { %v3795_v37 = vpop.f32.mrf.mxu2  ;;  %2047 = vst.msk [vmem:[%s2611_s22 + $0xc0] sm:$0xff] %vm2022_vm12, %v3793_v61 }
 0x331   : > { %2041 = vst.msk [vmem:[%s2611_s22 + $0x90] sm:$0xff] %vm2022_vm12, %v3795_v37 }
 0x332   : > { %v1746_v63 = vpop.permute.xlu0 %1745 }
 0x333   : > { %1811 = vst.msk [vmem:[#allocation2 + $0xf8] sm:$0xff] %vm1779_vm10, %v1746_v63  ;;  %v1842_v57 = vld [vmem:[#allocation2 + $0xf0] sm:$0xff]  ;;  %v2141_v63 = vmul.f32 %v3739_v49, %v3739_v49 }
 0x337   : > { %v3804_v44 = vpop.f32.mrf.mxu3 }
 0x338   : > { %v3806_v42 = vpop.f32.mrf.mxu2  ;;  %2048 = vst.msk [vmem:[%s2611_s22 + $0xc8] sm:$0xff] %vm2022_vm12, %v3804_v44 }
 0x339   : > { %2042 = vst.msk [vmem:[%s2611_s22 + $0x98] sm:$0xff] %vm2022_vm12, %v3806_v42 }
 0x33a   : > { %v1843_v33 = vld [vmem:[#allocation2 + $0xf8] sm:$0xff] }
 0x33b   : > { %v1859_v36 = vpack.c.bf16 %v1843_v33, %v1842_v57 }
 0x33d   : > { %2525 = vmatmul.msk.bf16.gmra.mxu3 %vm1880_vm11, %v1859_v36 }
 0x349   : > { %v1972_v40 = vpop.f32.mrf.mxu1 }
 0x34a   : > { %v1957_v60 = vpop.f32.mrf.mxu0  ;;  %2035 = vst.msk [vmem:[%s2611_s22 + $0x60] sm:$0xff] %vm2022_vm12, %v1972_v40  ;;  %v2137_v10 = vmul.f32 %v1972_v40, %v1972_v40  ;;  %v2078_v15 = vsel %vm2022_vm12, %v1972_v40, 0.0 }
 0x34b   : > { %2029 = vst.msk [vmem:[%s2611_s22 + $0x30] sm:$0xff] %vm2022_vm12, %v1957_v60  ;;  %v2066_v41 = vsel %vm2022_vm12, %v1957_v60, 0.0  ;;  %v2131_v53 = vmul.f32 %v1957_v60, %v1957_v60  ;;  %v2086_v60 = vsel %vm2022_vm12, %v3739_v49, 0.0  ;;  %v2090_v49 = vsel %vm2022_vm12, %v3795_v37, 0.0 }
 0x34c   : > { %v2067_v38 = vadd.f32 %v2066_v41, %v2065_v16  ;;  %v2142_v41 = vmul.f32 %v3747_v2, %v3747_v2 }
 0x34d   : > { %v2168_v51 = vsel %vm2022_vm12, %v2131_v53, 0.0 }
 0x34e   : > { %v2169_v46 = vadd.f32 %v2168_v51, %v2167_v18  ;;  %v2180_v18 = vsel %vm2022_vm12, %v2137_v10, 0.0 }
 0x351   : > { %v1974_v48 = vpop.f32.mrf.mxu1 }
 0x352   : > { %v1959_v43 = vpop.f32.mrf.mxu0  ;;  %2036 = vst.msk [vmem:[%s2611_s22 + $0x68] sm:$0xff] %vm2022_vm12, %v1974_v48  ;;  %v2138_v3 = vmul.f32 %v1974_v48, %v1974_v48  ;;  %v2080_v19 = vsel %vm2022_vm12, %v1974_v48, 0.0  ;;  %v2088_v48 = vsel %vm2022_vm12, %v3747_v2, 0.0  ;;  %v2092_v2 = vsel %vm2022_vm12, %v3806_v42, 0.0 }
 0x353   : > { %2030 = vst.msk [vmem:[%s2611_s22 + $0x38] sm:$0xff] %vm2022_vm12, %v1959_v43  ;;  %v2068_v45 = vsel %vm2022_vm12, %v1959_v43, 0.0  ;;  %v2132_v34 = vmul.f32 %v1959_v43, %v1959_v43  ;;  %v2143_v43 = vmul.f32 %v3795_v37, %v3795_v37 }
 0x354   : > { %v2069_v0 = vadd.f32 %v2068_v45, %v2067_v38  ;;  %v2182_v21 = vsel %vm2022_vm12, %v2138_v3, 0.0 }
 0x355   : > { %v2170_v30 = vsel %vm2022_vm12, %v2132_v34, 0.0  ;;  %v2190_v34 = vsel %vm2022_vm12, %v2142_v41, 0.0 }
 0x356   : > { %v2071_v59 = vadd.f32 %v2070_v39, %v2069_v0  ;;  %v2171_v52 = vadd.f32 %v2170_v30, %v2169_v46  ;;  %v2188_v46 = vsel %vm2022_vm12, %v2141_v63, 0.0  ;;  %v2144_v0 = vmul.f32 %v3806_v42, %v3806_v42 }
 0x357   : > { %v2192_v30 = vsel %vm2022_vm12, %v2143_v43, 0.0 }
 0x358   : > { %v2073_v8 = vadd.f32 %v2072_v1, %v2071_v59  ;;  %v2173_v6 = vadd.f32 %v2172_v47, %v2171_v52  ;;  %v2194_v1 = vsel %vm2022_vm12, %v2144_v0, 0.0 }
 0x35a   : > { %v2075_v9 = vadd.f32 %v2074_v25, %v2073_v8  ;;  %v2175_v58 = vadd.f32 %v2174_v7, %v2173_v6 }
 0x35c   : > { %v2177_v12 = vadd.f32 %v2176_v50, %v2175_v58  ;;  %v2077_v13 = vadd.f32 %v2076_v32, %v2075_v9 }
 0x35e   : > { %v2079_v16 = vadd.f32 %v2078_v15, %v2077_v13  ;;  %v2179_v20 = vadd.f32 %v2178_v17, %v2177_v12  ;;  %v2149_v15 = vmul.f32 %v3793_v61, %v3793_v61 }
 0x360   : > { %v2081_v14 = vadd.f32 %v2080_v19, %v2079_v16  ;;  %v2181_v23 = vadd.f32 %v2180_v18, %v2179_v20 }
 0x362   : > { %v2183_v22 = vadd.f32 %v2182_v21, %v2181_v23  ;;  %v2150_v23 = vmul.f32 %v3804_v44, %v3804_v44 }
 0x36f   : > { %v3851_v24 = vpop.f32.mrf.mxu3 }
 0x370   : > { %v1992_v26 = vpop.f32.mrf.mxu2  ;;  %2049 = vst.msk [vmem:[%s2611_s22 + $0xd0] sm:$0xff] %vm2022_vm12, %v3851_v24 }
 0x371   : > { %2043 = vst.msk [vmem:[%s2611_s22 + $0xa0] sm:$0xff] %vm2022_vm12, %v1992_v26  ;;  %v2145_v59 = vmul.f32 %v1992_v26, %v1992_v26  ;;  %v2094_v4 = vsel %vm2022_vm12, %v1992_v26, 0.0 }
 0x373   : > { %v2196_v6 = vsel %vm2022_vm12, %v2145_v59, 0.0 }
 0x377   : > { %v3858_v35 = vpop.f32.mrf.mxu3 }
 0x378   : > { %v1994_v29 = vpop.f32.mrf.mxu2  ;;  %2050 = vst.msk [vmem:[%s2611_s22 + $0xd8] sm:$0xff] %vm2022_vm12, %v3858_v35 }
 0x379   : > { %2044 = vst.msk [vmem:[%s2611_s22 + $0xa8] sm:$0xff] %vm2022_vm12, %v1994_v29  ;;  %v2146_v11 = vmul.f32 %v1994_v29, %v1994_v29  ;;  %v2096_v42 = vsel %vm2022_vm12, %v1994_v29, 0.0  ;;  %v2204_v29 = vsel %vm2022_vm12, %v2149_v15, 0.0 }
 0x37b   : > { %v2198_v32 = vsel %vm2022_vm12, %v2146_v11, 0.0 }
 0x37c   : > { %v1977_v27 = vpop.f32.mrf.mxu1 }
 0x37d   : > { %2037 = vst.msk [vmem:[%s2611_s22 + $0x70] sm:$0xff] %vm2022_vm12, %v1977_v27  ;;  %v2139_v56 = vmul.f32 %v1977_v27, %v1977_v27  ;;  %v2082_v54 = vsel %vm2022_vm12, %v1977_v27, 0.0  ;;  %v2104_v27 = vsel %vm2022_vm12, %v3804_v44, 0.0  ;;  %v2108_v44 = vsel %vm2022_vm12, %v3858_v35, 0.0 }
 0x37e   : > { %v2083_v55 = vadd.f32 %v2082_v54, %v2081_v14  ;;  %v2102_v14 = vsel %vm2022_vm12, %v3793_v61, 0.0  ;;  %v2206_v61 = vsel %vm2022_vm12, %v2150_v23, 0.0 }
 0x37f   : > { %v2184_v28 = vsel %vm2022_vm12, %v2139_v56, 0.0  ;;  %v2151_v56 = vmul.f32 %v3851_v24, %v3851_v24 }
 0x380   : > { %v2185_v36 = vadd.f32 %v2184_v28, %v2183_v22 }
 0x384   : > { %v1979_v31 = vpop.f32.mrf.mxu1 }
 0x385   : > { %2038 = vst.msk [vmem:[%s2611_s22 + $0x78] sm:$0xff] %vm2022_vm12, %v1979_v31  ;;  %v2084_v57 = vsel %vm2022_vm12, %v1979_v31, 0.0  ;;  %v2140_v33 = vmul.f32 %v1979_v31, %v1979_v31  ;;  %v2152_v31 = vmul.f32 %v3858_v35, %v3858_v35 }
 0x386   : > { %v2085_v40 = vadd.f32 %v2084_v57, %v2083_v55  ;;  %v2106_v55 = vsel %vm2022_vm12, %v3851_v24, 0.0 }
 0x387   : > { %v2186_v53 = vsel %vm2022_vm12, %v2140_v33, 0.0  ;;  %v2208_v33 = vsel %vm2022_vm12, %v2151_v56, 0.0  ;;  %v2210_v41 = vsel %vm2022_vm12, %v2152_v31, 0.0 }
 0x388   : > { %v2087_v38 = vadd.f32 %v2086_v60, %v2085_v40  ;;  %v2187_v51 = vadd.f32 %v2186_v53, %v2185_v36 }
 0x38a   : > { %v2089_v5 = vadd.f32 %v2088_v48, %v2087_v38  ;;  %v2189_v45 = vadd.f32 %v2188_v46, %v2187_v51 }
 0x38c   : > { %v2091_v39 = vadd.f32 %v2090_v49, %v2089_v5  ;;  %v2191_v62 = vadd.f32 %v2190_v34, %v2189_v45 }
 0x38e   : > { %v2193_v52 = vadd.f32 %v2192_v30, %v2191_v62  ;;  %v2093_v47 = vadd.f32 %v2092_v2, %v2091_v39 }
 0x390   : > { %v2095_v8 = vadd.f32 %v2094_v4, %v2093_v47  ;;  %v2195_v37 = vadd.f32 %v2194_v1, %v2193_v52 }
 0x392   : > { %v2197_v7 = vadd.f32 %v2196_v6, %v2195_v37  ;;  %v2097_v50 = vadd.f32 %v2096_v42, %v2095_v8 }
 0x394   : > { %v2199_v13 = vadd.f32 %v2198_v32, %v2197_v7  ;;  %v2227_v32 = vld [vmem:[%s3959_s3] sm:$0x1] }
 0x39f   : > { %v1997_v25 = vpop.f32.mrf.mxu2 }
 0x3a0   : > { %2045 = vst.msk [vmem:[%s2611_s22 + $0xb0] sm:$0xff] %vm2022_vm12, %v1997_v25  ;;  %v2147_v9 = vmul.f32 %v1997_v25, %v1997_v25  ;;  %v2098_v58 = vsel %vm2022_vm12, %v1997_v25, 0.0 }
 0x3a1   : > { %v2099_v12 = vadd.f32 %v2098_v58, %v2097_v50 }
 0x3a2   : > { %v2200_v10 = vsel %vm2022_vm12, %v2147_v9, 0.0 }
 0x3a3   : > { %v2201_v18 = vadd.f32 %v2200_v10, %v2199_v13  ;;  %v2231_v13 = vld [vmem:[%s3960_s4] sm:$0x1] }
 0x3a7   : > { %v1999_v17 = vpop.f32.mrf.mxu2 }
 0x3a8   : > { %2046 = vst.msk [vmem:[%s2611_s22 + $0xb8] sm:$0xff] %vm2022_vm12, %v1999_v17  ;;  %v2100_v3 = vsel %vm2022_vm12, %v1999_v17, 0.0  ;;  %v2148_v16 = vmul.f32 %v1999_v17, %v1999_v17  ;;  %v2012_v20 = vpop.f32.mrf.mxu3 }
 0x3a9   : > { %v2101_v19 = vadd.f32 %v2100_v3, %v2099_v12  ;;  %2051 = vst.msk [vmem:[%s2611_s22 + $0xe0] sm:$0xff] %vm2022_vm12, %v2012_v20  ;;  %v2153_v38 = vmul.f32 %v2012_v20, %v2012_v20  ;;  %v2110_v51 = vsel %vm2022_vm12, %v2012_v20, 0.0 }
 0x3aa   : > { %v2202_v21 = vsel %vm2022_vm12, %v2148_v16, 0.0 }
 0x3ab   : > { %v2103_v22 = vadd.f32 %v2102_v14, %v2101_v19  ;;  %v2203_v26 = vadd.f32 %v2202_v21, %v2201_v18  ;;  %v2212_v48 = vsel %vm2022_vm12, %v2153_v38, 0.0 }
 0x3ad   : > { %v2105_v54 = vadd.f32 %v2104_v27, %v2103_v22  ;;  %v2205_v28 = vadd.f32 %v2204_v29, %v2203_v26 }
 0x3af   : > { %v2207_v63 = vadd.f32 %v2206_v61, %v2205_v28  ;;  %v2107_v57 = vadd.f32 %v2106_v55, %v2105_v54 }
 0x3b0   : > { %v2014_v36 = vpop.f32.mrf.mxu3 }
 0x3b1   : > { %v2109_v40 = vadd.f32 %v2108_v44, %v2107_v57  ;;  %v2209_v60 = vadd.f32 %v2208_v33, %v2207_v63  ;;  %2052 = vst.msk [vmem:[%s2611_s22 + $0xe8] sm:$0xff] %vm2022_vm12, %v2014_v36  ;;  %v2154_v43 = vmul.f32 %v2014_v36, %v2014_v36  ;;  %v2112_v45 = vsel %vm2022_vm12, %v2014_v36, 0.0 }
 0x3b3   : > { %v2211_v53 = vadd.f32 %v2210_v41, %v2209_v60  ;;  %v2111_v46 = vadd.f32 %v2110_v51, %v2109_v40  ;;  %v2214_v0 = vsel %vm2022_vm12, %v2154_v43, 0.0 }
 0x3b5   : > { %v2213_v5 = vadd.f32 %v2212_v48, %v2211_v53  ;;  %v2113_v49 = vadd.f32 %v2112_v45, %v2111_v46 }
 0x3b7   : > { %v2215_v62 = vadd.f32 %v2214_v0, %v2213_v5 }
 0x3c0   : > { %v2017_v24 = vpop.f32.mrf.mxu3 }
 0x3c1   : > { %2053 = vst.msk [vmem:[%s2611_s22 + $0xf0] sm:$0xff] %vm2022_vm12, %v2017_v24  ;;  %v2155_v35 = vmul.f32 %v2017_v24, %v2017_v24  ;;  %v2114_v34 = vsel %vm2022_vm12, %v2017_v24, 0.0 }
 0x3c2   : > { %v2115_v30 = vadd.f32 %v2114_v34, %v2113_v49 }
 0x3c3   : > { %v2216_v39 = vsel %vm2022_vm12, %v2155_v35, 0.0 }
 0x3c4   : > { %v2217_v47 = vadd.f32 %v2216_v39, %v2215_v62 }
 0x3c8   : > { %v2019_v2 = vpop.f32.mrf.mxu3 }
 0x3c9   : > { %2054 = vst.msk [vmem:[%s2611_s22 + $0xf8] sm:$0xff] %vm2022_vm12, %v2019_v2  ;;  %v2116_v59 = vsel %vm2022_vm12, %v2019_v2, 0.0  ;;  %v2156_v52 = vmul.f32 %v2019_v2, %v2019_v2 }
 0x3ca   : > { %v2117_v1 = vadd.f32 %v2116_v59, %v2115_v30 }
 0x3cb   : > { %v2218_v4 = vsel %vm2022_vm12, %v2156_v52, 0.0 }
 0x3cc   : > { %v2118_v8 = vrot.slane %v2117_v1, 4  ;;  %v2219_v37 = vadd.f32 %v2218_v4, %v2217_v47 }
 0x3ce   : > { %v2119_v6 = vadd.f32 %v2118_v8, %v2117_v1  ;;  %v2220_v7 = vrot.slane %v2219_v37, 4 }
 0x3d0   : > { %v2120_v25 = vrot.slane %v2119_v6, 2  ;;  %v2221_v11 = vadd.f32 %v2220_v7, %v2219_v37 }
 0x3d2   : > { %v2121_v9 = vadd.f32 %v2120_v25, %v2119_v6  ;;  %v2222_v42 = vrot.slane %v2221_v11, 2 }
 0x3d4   : > { %v2122_v58 = vrot.slane %v2121_v9, 1  ;;  %v2223_v50 = vadd.f32 %v2222_v42, %v2221_v11 }
 0x3d6   : > { %v2123_v10 = vadd.f32 %v2122_v58, %v2121_v9  ;;  %v2224_v12 = vrot.slane %v2223_v50, 1 }
 0x3d8   : > { %v2225_v17 = vadd.f32 %v2224_v12, %v2223_v50  ;;  %v2228_v15 = vadd.f32 %v2227_v32, %v2123_v10 }
 0x3da   : > { %2230 = vst.msk [vmem:[%s3959_s3] sm:$0x1] %vm2229_vm13, %v2228_v15  ;;  %v2232_v3 = vadd.f32 %v2231_v13, %v2225_v17 }
 0x3dc   : > { %2233 = vst.msk [vmem:[%s3960_s4] sm:$0x1] %vm2229_vm13, %v2232_v3 }
 0x3dd PF: > { %s15_s15 = sadd.s32 1, %s2564_s15  }
 0x3de   : > { %p12_p5 = scmp.ge.s32.totalorder %s15_s15, 4  }
 0x3e0   :  { %14 = sbr.rel (!%p12_p5) target bundleno = 1 (0x1), region = 80 }

</bundles_post_ra>
